<compile_context>
chip_gen: v6e
topology: v6e:2x2x1
jax: 0.10.0
libtpu: 0.0.40
codegen_flags: <defaults>
</compile_context>

<pallas_src>
import functools

import jax
import jax.numpy as jnp
from jax import lax
from jax.experimental import pallas as pl
from jax.experimental.pallas import tpu as pltpu

INPUT_DIM = 32
HIDDEN_DIMS = [256, 128, 64]
ATTENTION_DIM = 64
BN_EPS = 1e-5


# ---------------------------------------------------------------------------
# kernel
# ---------------------------------------------------------------------------
def _dvmh_kernel(
    x_ref,
    w_emb_ref, b_emb_ref,
    w_qkv_ref, b_qkv_ref,
    w1_ref, b1_ref,
    w2_ref, b2_ref,
    w3_ref, b3_ref,
    out_ref,
    *, compute_dtype,
):
    # x arrives in natural (TB, 32) layout; contract both operands on their
    # last dim so no separate host-side transpose (extra HBM pass) is needed.
    x = x_ref[...].astype(compute_dtype)                          # (TB, 32)
    emb_acc = lax.dot_general(
        w_emb_ref[...], x,
        dimension_numbers=(((1,), (1,)), ((), ())),
        preferred_element_type=jnp.float32,
    )                                                             # (256, TB) f32

    # Bias add / ReLU in f32 on the VPU; materialize the result directly in
    # compute_dtype (bf16) since it only feeds the next MXU matmul.
    emb = jnp.maximum(emb_acc + b_emb_ref[...], 0.0).astype(compute_dtype)

    # fused Q|K|V projection (dominant matmul), then per-row attention gate
    qkv = jnp.dot(w_qkv_ref[...], emb,
                  preferred_element_type=jnp.float32) + b_qkv_ref[...]  # (192, TB)
    q = qkv[0:ATTENTION_DIM, :]
    k = qkv[ATTENTION_DIM:2 * ATTENTION_DIM, :]
    v = qkv[2 * ATTENTION_DIM:3 * ATTENTION_DIM, :]

    scores = jnp.sum(q * k, axis=0, keepdims=True)                # (1, TB) f32
    weights = jax.nn.sigmoid(scores)                              # (1, TB) f32
    attended = (weights * v).astype(compute_dtype)                # (64, TB)

    # output head: Linear -> BN(folded) -> ReLU (Dropout = identity in eval) x2
    h = jnp.dot(w1_ref[...], attended, preferred_element_type=jnp.float32)
    h = jnp.maximum(h + b1_ref[...], 0.0).astype(compute_dtype)   # (128, TB)
    h = jnp.dot(w2_ref[...], h, preferred_element_type=jnp.float32)
    h = jnp.maximum(h + b2_ref[...], 0.0)                         # (64, TB) f32

    # final (64 -> 1) projection as VPU multiply + sublane reduce (no N=1 MXU)
    out = jnp.sum(h * w3_ref[...], axis=0, keepdims=True) + b3_ref[...]  # (1, TB)

    # packed lane-dense output slab: sublane 0 = prediction, 1 = attention w.
    out_ref[...] = jnp.concatenate([out, weights], axis=0)


# ---------------------------------------------------------------------------
# wrapper
# ---------------------------------------------------------------------------
def _prepare_kernel_params(p, compute_dtype):
    """Fold eval-mode BN into Linears, fuse QKV, transpose weights to (out, in)."""
    w_emb = p["w_emb"] * p["bn1_s"]
    b_emb = p["b_emb"] * p["bn1_s"] + p["bn1_t"]
    w1 = p["w1"] * p["bn2_s"]
    b1 = p["b1"] * p["bn2_s"] + p["bn2_t"]
    w2 = p["w2"] * p["bn3_s"]
    b2 = p["b2"] * p["bn3_s"] + p["bn3_t"]
    w_qkv = jnp.concatenate([p["wq"], p["wk"], p["wv"]], axis=1)   # (256, 192)
    b_qkv = jnp.concatenate([p["bq"], p["bk"], p["bv"]], axis=1)   # (1, 192)

    return [
        w_emb.T.astype(compute_dtype),   # (256, 32)   MXU operand
        b_emb.T.astype(jnp.float32),     # (256, 1)    VPU bias (f32)
        w_qkv.T.astype(compute_dtype),   # (192, 256)
        b_qkv.T.astype(jnp.float32),     # (192, 1)
        w1.T.astype(compute_dtype),      # (128, 64)
        b1.T.astype(jnp.float32),        # (128, 1)
        w2.T.astype(compute_dtype),      # (64, 128)
        b2.T.astype(jnp.float32),        # (64, 1)
        p["w3"].astype(jnp.float32),     # (64, 1)     VPU reduce, keep f32
        p["b3"].astype(jnp.float32),     # (1, 1)
    ]


def _choose_tile_b(batch, requested):
    """Pick a lane-aligned batch tile; keep >= 2 grid tiles for v7x's 2 TCs."""
    requested = max(128, (requested // 128) * 128)
    b128 = ((batch + 127) // 128) * 128          # minimal padded batch
    tile = min(requested, b128)
    if b128 >= 256:
        # cap at half the padded batch so ("parallel",) can feed both v7x cores
        tile = min(tile, (b128 // 2 // 128) * 128)
    return max(128, tile)


def dvmh_attention_forward(x, params, *, tile_b=512, use_bf16=True):
    """Fused DVMHAttentionModel forward (eval mode).

    Returns (output (B,), attention_weights (B,)).
    """
    if x.ndim == 1:
        x = x[None, :]
    B, in_dim = x.shape
    compute_dtype = jnp.bfloat16 if use_bf16 else jnp.float32

    tile_b = _choose_tile_b(B, tile_b)
    num_tiles = (B + tile_b - 1) // tile_b
    B_pad = num_tiles * tile_b
    if B_pad != B:
        x = jnp.pad(x, ((0, B_pad - B), (0, 0)))   # padded rows sliced off below

    kparams = _prepare_kernel_params(params, compute_dtype)

    def weight_spec(arr):
        # whole (small) grid-invariant weight resident every step
        # TODO(synk): pipeline_mode=pl.Buffered(1) would drop the pointless
        # double buffer on these invariant blocks; only matters for VMEM
        # headroom when tile_b is pushed to 2048 on v7x's 64 MiB part.
        return pl.BlockSpec(arr.shape, lambda i: (0, 0))

    in_specs = [pl.BlockSpec((tile_b, in_dim), lambda i: (i, 0))]   # natural x layout
    in_specs += [weight_spec(a) for a in kparams]

    out_specs = pl.BlockSpec((2, tile_b), lambda i: (0, i))         # packed outputs
    out_shape = jax.ShapeDtypeStruct((2, B_pad), jnp.float32)

    grid_spec = pltpu.PrefetchScalarGridSpec(
        num_scalar_prefetch=0,
        grid=(num_tiles,),
        in_specs=in_specs,
        out_specs=out_specs,
    )

    packed = pl.pallas_call(
        functools.partial(_dvmh_kernel, compute_dtype=compute_dtype),
        out_shape=out_shape,
        grid_spec=grid_spec,
        compiler_params=pltpu.CompilerParams(
            dimension_semantics=("parallel",),
        ),
    )(x, *kparams)

    return packed[0, :B], packed[1, :B]


# ---------------------------------------------------------------------------
# deterministic parameter construction (PyTorch-style init, eval-mode BN)
# ---------------------------------------------------------------------------
def _init_linear(key, in_dim, out_dim):
    k_w, k_b = jax.random.split(key)
    bound = in_dim ** -0.5
    w = jax.random.uniform(k_w, (in_dim, out_dim), jnp.float32, -bound, bound)
    b = jax.random.uniform(k_b, (1, out_dim), jnp.float32, -bound, bound)
    return w, b


def _init_bn_folded(dim):
    # PyTorch BatchNorm1d defaults: gamma=1, beta=0, running_mean=0, running_var=1.
    gamma = jnp.ones((1, dim), jnp.float32)
    beta = jnp.zeros((1, dim), jnp.float32)
    running_mean = jnp.zeros((1, dim), jnp.float32)
    running_var = jnp.ones((1, dim), jnp.float32)
    scale = gamma / jnp.sqrt(running_var + BN_EPS)
    shift = beta - running_mean * scale
    return scale, shift


def make_params(key):
    keys = jax.random.split(key, 8)
    p = {}
    p["w_emb"], p["b_emb"] = _init_linear(keys[0], INPUT_DIM, HIDDEN_DIMS[0])
    p["bn1_s"], p["bn1_t"] = _init_bn_folded(HIDDEN_DIMS[0])
    p["wq"], p["bq"] = _init_linear(keys[1], HIDDEN_DIMS[0], ATTENTION_DIM)
    p["wk"], p["bk"] = _init_linear(keys[2], HIDDEN_DIMS[0], ATTENTION_DIM)
    p["wv"], p["bv"] = _init_linear(keys[3], HIDDEN_DIMS[0], ATTENTION_DIM)
    p["w1"], p["b1"] = _init_linear(keys[4], ATTENTION_DIM, HIDDEN_DIMS[1])
    p["bn2_s"], p["bn2_t"] = _init_bn_folded(HIDDEN_DIMS[1])
    p["w2"], p["b2"] = _init_linear(keys[5], HIDDEN_DIMS[1], HIDDEN_DIMS[2])
    p["bn3_s"], p["bn3_t"] = _init_bn_folded(HIDDEN_DIMS[2])
    p["w3"], p["b3"] = _init_linear(keys[6], HIDDEN_DIMS[2], 1)
    return p


def reference_forward(x, p):
    """Pure-JAX reference mirroring the PyTorch forward (eval mode)."""
    emb = x @ p["w_emb"] + p["b_emb"]
    emb = jnp.maximum(emb * p["bn1_s"] + p["bn1_t"], 0.0)
    q = emb @ p["wq"] + p["bq"]
    k = emb @ p["wk"] + p["bk"]
    v = emb @ p["wv"] + p["bv"]
    w = jax.nn.sigmoid(jnp.sum(q * k, axis=1, keepdims=True))
    att = w * v
    h = jnp.maximum((att @ p["w1"] + p["b1"]) * p["bn2_s"] + p["bn2_t"], 0.0)
    h = jnp.maximum((h @ p["w2"] + p["b2"]) * p["bn3_s"] + p["bn3_t"], 0.0)
    out = h @ p["w3"] + p["b3"]
    return out[:, 0], w[:, 0]


if __name__ == "__main__":
    key = jax.random.PRNGKey(0)
    k_param, k_x = jax.random.split(key)

    params = make_params(k_param)
    # B = 1000: non-multiple of 128 (exercises padding); pads to 1024 and the
    # tile cap yields 2 grid tiles so both v7x TensorCores get work.
    B = 1000
    x = jax.random.normal(k_x, (B, INPUT_DIM), jnp.float32)

    out_ref, attn_ref = reference_forward(x, params)

    # f32-operand path: tight semantic check against the pure-JAX reference
    out32, attn32 = dvmh_attention_forward(x, params, use_bf16=False)
    out32, attn32 = jax.block_until_ready((out32, attn32))
    assert out32.shape == (B,) and attn32.shape == (B,)
    assert jnp.allclose(out32, out_ref, atol=1e-4, rtol=1e-4)
    assert jnp.allclose(attn32, attn_ref, atol=1e-4, rtol=1e-4)

    # default bf16-MXU path: loose tolerance (bf16 operands, f32 accumulation)
    out, attn = dvmh_attention_forward(x, params)
    out, attn = jax.block_until_ready((out, attn))
    assert out.shape == (B,) and attn.shape == (B,)
    assert jnp.allclose(out, out_ref, atol=1e-1, rtol=1e-1)
    assert jnp.allclose(attn, attn_ref, atol=1e-1, rtol=1e-1)

    # TODO(synk): Dropout / training-mode BatchNorm (batch statistics) not modeled;
    # kernel implements eval()-mode semantics (dropout=identity, BN=running stats).
    print("KERNEL_OK")
</pallas_src>

<mosaic_0001>
module attributes {stable_mosaic.version = 11 : i64} {
  func.func @_dvmh_kernel(%arg0: i32, %arg1: memref<512x32xf32, #tpu.memory_space<vmem>>, %arg2: memref<256x32xf32, #tpu.memory_space<vmem>>, %arg3: memref<256x1xf32, #tpu.memory_space<vmem>>, %arg4: memref<192x256xf32, #tpu.memory_space<vmem>>, %arg5: memref<192x1xf32, #tpu.memory_space<vmem>>, %arg6: memref<128x64xf32, #tpu.memory_space<vmem>>, %arg7: memref<128x1xf32, #tpu.memory_space<vmem>>, %arg8: memref<64x128xf32, #tpu.memory_space<vmem>>, %arg9: memref<64x1xf32, #tpu.memory_space<vmem>>, %arg10: memref<64x1xf32, #tpu.memory_space<vmem>>, %arg11: memref<1x1xf32, #tpu.memory_space<vmem>>, %arg12: memref<2x512xf32, #tpu.memory_space<vmem>>) attributes {dimension_semantics = [#tpu.dimension_semantics<parallel>], iteration_bounds = array<i64: 2>, scalar_prefetch = 0 : i64, scratch_operands = 0 : i64, tpu.core_type = #tpu.core_type<tc>, window_params = [{transform_indices = @transform_0, window_bounds = array<i64: 512, 32>}, {pipeline_mode = #tpu.pipeline_mode<synchronous>, transform_indices = @transform_1, window_bounds = array<i64: 256, 32>}, {pipeline_mode = #tpu.pipeline_mode<synchronous>, transform_indices = @transform_2, window_bounds = array<i64: 256, 1>}, {pipeline_mode = #tpu.pipeline_mode<synchronous>, transform_indices = @transform_3, window_bounds = array<i64: 192, 256>}, {pipeline_mode = #tpu.pipeline_mode<synchronous>, transform_indices = @transform_4, window_bounds = array<i64: 192, 1>}, {pipeline_mode = #tpu.pipeline_mode<synchronous>, transform_indices = @transform_5, window_bounds = array<i64: 128, 64>}, {pipeline_mode = #tpu.pipeline_mode<synchronous>, transform_indices = @transform_6, window_bounds = array<i64: 128, 1>}, {pipeline_mode = #tpu.pipeline_mode<synchronous>, transform_indices = @transform_7, window_bounds = array<i64: 64, 128>}, {pipeline_mode = #tpu.pipeline_mode<synchronous>, transform_indices = @transform_8, window_bounds = array<i64: 64, 1>}, {pipeline_mode = #tpu.pipeline_mode<synchronous>, transform_indices = @transform_9, window_bounds = array<i64: 64, 1>}, {pipeline_mode = #tpu.pipeline_mode<synchronous>, transform_indices = @transform_10, window_bounds = array<i64: 1, 1>}, {transform_indices = @transform_11, window_bounds = array<i64: 2, 512>}]} {
    %c0 = arith.constant 0 : index
    %c0_0 = arith.constant 0 : index
    %0 = vector.load %arg1[%c0, %c0_0] : memref<512x32xf32, #tpu.memory_space<vmem>>, vector<512x32xf32>
    %c0_1 = arith.constant 0 : index
    %c0_2 = arith.constant 0 : index
    %1 = vector.load %arg2[%c0_1, %c0_2] : memref<256x32xf32, #tpu.memory_space<vmem>>, vector<256x32xf32>
    %cst = arith.constant dense<0.000000e+00> : vector<256x512xf32>
    %2 = tpu.matmul %1, %0, %cst {dimension_numbers = #tpu.dot_dimension_numbers<[1], [1], [0], [0], [0, 0, 1, 0], [], []>} : vector<256x32xf32>, vector<512x32xf32>, vector<256x512xf32> -> vector<256x512xf32>
    %c0_3 = arith.constant 0 : index
    %c0_4 = arith.constant 0 : index
    %3 = vector.load %arg3[%c0_3, %c0_4] : memref<256x1xf32, #tpu.memory_space<vmem>>, vector<256x1xf32>
    %4 = vector.broadcast %3 : vector<256x1xf32> to vector<256x512xf32>
    %5 = arith.addf %2, %4 : vector<256x512xf32>
    %cst_5 = arith.constant 0.000000e+00 : f32
    %6 = vector.broadcast %cst_5 : f32 to vector<256x512xf32>
    %7 = arith.maximumf %5, %6 : vector<256x512xf32>
    %c0_6 = arith.constant 0 : index
    %c0_7 = arith.constant 0 : index
    %8 = vector.load %arg4[%c0_6, %c0_7] : memref<192x256xf32, #tpu.memory_space<vmem>>, vector<192x256xf32>
    %cst_8 = arith.constant dense<0.000000e+00> : vector<192x512xf32>
    %9 = tpu.matmul %8, %7, %cst_8 {dimension_numbers = #tpu.dot_dimension_numbers<[1], [0], [0], [1], [0, 0, 1, 1], [], []>} : vector<192x256xf32>, vector<256x512xf32>, vector<192x512xf32> -> vector<192x512xf32>
    %c0_9 = arith.constant 0 : index
    %c0_10 = arith.constant 0 : index
    %10 = vector.load %arg5[%c0_9, %c0_10] : memref<192x1xf32, #tpu.memory_space<vmem>>, vector<192x1xf32>
    %11 = vector.broadcast %10 : vector<192x1xf32> to vector<192x512xf32>
    %12 = arith.addf %9, %11 : vector<192x512xf32>
    %13 = vector.extract_strided_slice %12 {offsets = [0, 0], sizes = [64, 512], strides = [1, 1]} : vector<192x512xf32> to vector<64x512xf32>
    %14 = vector.extract_strided_slice %12 {offsets = [64, 0], sizes = [64, 512], strides = [1, 1]} : vector<192x512xf32> to vector<64x512xf32>
    %15 = vector.extract_strided_slice %12 {offsets = [128, 0], sizes = [64, 512], strides = [1, 1]} : vector<192x512xf32> to vector<64x512xf32>
    %16 = arith.mulf %13, %14 : vector<64x512xf32>
    %cst_11 = arith.constant dense<0.000000e+00> : vector<512xf32>
    %17 = vector.multi_reduction <add>, %16, %cst_11 [0] : vector<64x512xf32> to vector<512xf32>
    %18 = vector.shape_cast %17 : vector<512xf32> to vector<1x512xf32>
    %19 = arith.negf %18 : vector<1x512xf32>
    %20 = math.exp %19 : vector<1x512xf32>
    %cst_12 = arith.constant 1.000000e+00 : f32
    %21 = vector.broadcast %cst_12 : f32 to vector<1x512xf32>
    %22 = arith.addf %21, %20 : vector<1x512xf32>
    %23 = arith.divf %21, %22 : vector<1x512xf32>
    %24 = vector.broadcast %23 : vector<1x512xf32> to vector<64x512xf32>
    %25 = arith.mulf %24, %15 : vector<64x512xf32>
    %c0_13 = arith.constant 0 : index
    %c0_14 = arith.constant 0 : index
    %26 = vector.load %arg6[%c0_13, %c0_14] : memref<128x64xf32, #tpu.memory_space<vmem>>, vector<128x64xf32>
    %cst_15 = arith.constant dense<0.000000e+00> : vector<128x512xf32>
    %27 = tpu.matmul %26, %25, %cst_15 {dimension_numbers = #tpu.dot_dimension_numbers<[1], [0], [0], [1], [0, 0, 1, 1], [], []>} : vector<128x64xf32>, vector<64x512xf32>, vector<128x512xf32> -> vector<128x512xf32>
    %c0_16 = arith.constant 0 : index
    %c0_17 = arith.constant 0 : index
    %28 = vector.load %arg7[%c0_16, %c0_17] : memref<128x1xf32, #tpu.memory_space<vmem>>, vector<128x1xf32>
    %29 = vector.broadcast %28 : vector<128x1xf32> to vector<128x512xf32>
    %30 = arith.addf %27, %29 : vector<128x512xf32>
    %cst_18 = arith.constant 0.000000e+00 : f32
    %31 = vector.broadcast %cst_18 : f32 to vector<128x512xf32>
    %32 = arith.maximumf %30, %31 : vector<128x512xf32>
    %c0_19 = arith.constant 0 : index
    %c0_20 = arith.constant 0 : index
    %33 = vector.load %arg8[%c0_19, %c0_20] : memref<64x128xf32, #tpu.memory_space<vmem>>, vector<64x128xf32>
    %cst_21 = arith.constant dense<0.000000e+00> : vector<64x512xf32>
    %34 = tpu.matmul %33, %32, %cst_21 {dimension_numbers = #tpu.dot_dimension_numbers<[1], [0], [0], [1], [0, 0, 1, 1], [], []>} : vector<64x128xf32>, vector<128x512xf32>, vector<64x512xf32> -> vector<64x512xf32>
    %c0_22 = arith.constant 0 : index
    %c0_23 = arith.constant 0 : index
    %35 = vector.load %arg9[%c0_22, %c0_23] : memref<64x1xf32, #tpu.memory_space<vmem>>, vector<64x1xf32>
    %36 = vector.broadcast %35 : vector<64x1xf32> to vector<64x512xf32>
    %37 = arith.addf %34, %36 : vector<64x512xf32>
    %cst_24 = arith.constant 0.000000e+00 : f32
    %38 = vector.broadcast %cst_24 : f32 to vector<64x512xf32>
    %39 = arith.maximumf %37, %38 : vector<64x512xf32>
    %c0_25 = arith.constant 0 : index
    %c0_26 = arith.constant 0 : index
    %40 = vector.load %arg10[%c0_25, %c0_26] : memref<64x1xf32, #tpu.memory_space<vmem>>, vector<64x1xf32>
    %41 = vector.broadcast %40 : vector<64x1xf32> to vector<64x512xf32>
    %42 = arith.mulf %39, %41 : vector<64x512xf32>
    %cst_27 = arith.constant dense<0.000000e+00> : vector<512xf32>
    %43 = vector.multi_reduction <add>, %42, %cst_27 [0] : vector<64x512xf32> to vector<512xf32>
    %44 = vector.shape_cast %43 : vector<512xf32> to vector<1x512xf32>
    %c0_28 = arith.constant 0 : index
    %c0_29 = arith.constant 0 : index
    %45 = vector.load %arg11[%c0_28, %c0_29] : memref<1x1xf32, #tpu.memory_space<vmem>>, vector<1x1xf32>
    %46 = vector.broadcast %45 : vector<1x1xf32> to vector<1x512xf32>
    %47 = arith.addf %44, %46 : vector<1x512xf32>
    %48 = tpu.concatenate %47, %23 in 0 : vector<1x512xf32>, vector<1x512xf32> -> vector<2x512xf32>
    %c0_30 = arith.constant 0 : index
    %c0_31 = arith.constant 0 : index
    %49 = vector.load %arg12[%c0_30, %c0_31] : memref<2x512xf32, #tpu.memory_space<vmem>>, vector<2x512xf32>
    tpu.vector_store %arg12[%c0_30, %c0_31], %48 {strides = array<i32>} : memref<2x512xf32, #tpu.memory_space<vmem>>, vector<2x512xf32>,
    return
  }
  func.func @transform_0(%arg0: i32) -> (i32, i32) {
    %c0_i32 = arith.constant 0 : i32
    %c0_i32_0 = arith.constant 0 : i32
    return %arg0, %c0_i32 : i32, i32
  }
  func.func @transform_1(%arg0: i32) -> (i32, i32) {
    %c0_i32 = arith.constant 0 : i32
    %c0_i32_0 = arith.constant 0 : i32
    %c0_i32_1 = arith.constant 0 : i32
    return %c0_i32, %c0_i32_0 : i32, i32
  }
  func.func @transform_2(%arg0: i32) -> (i32, i32) {
    %c0_i32 = arith.constant 0 : i32
    %c0_i32_0 = arith.constant 0 : i32
    %c0_i32_1 = arith.constant 0 : i32
    return %c0_i32, %c0_i32_0 : i32, i32
  }
  func.func @transform_3(%arg0: i32) -> (i32, i32) {
    %c0_i32 = arith.constant 0 : i32
    %c0_i32_0 = arith.constant 0 : i32
    %c0_i32_1 = arith.constant 0 : i32
    return %c0_i32, %c0_i32_0 : i32, i32
  }
  func.func @transform_4(%arg0: i32) -> (i32, i32) {
    %c0_i32 = arith.constant 0 : i32
    %c0_i32_0 = arith.constant 0 : i32
    %c0_i32_1 = arith.constant 0 : i32
    return %c0_i32, %c0_i32_0 : i32, i32
  }
  func.func @transform_5(%arg0: i32) -> (i32, i32) {
    %c0_i32 = arith.constant 0 : i32
    %c0_i32_0 = arith.constant 0 : i32
    %c0_i32_1 = arith.constant 0 : i32
    return %c0_i32, %c0_i32_0 : i32, i32
  }
  func.func @transform_6(%arg0: i32) -> (i32, i32) {
    %c0_i32 = arith.constant 0 : i32
    %c0_i32_0 = arith.constant 0 : i32
    %c0_i32_1 = arith.constant 0 : i32
    return %c0_i32, %c0_i32_0 : i32, i32
  }
  func.func @transform_7(%arg0: i32) -> (i32, i32) {
    %c0_i32 = arith.constant 0 : i32
    %c0_i32_0 = arith.constant 0 : i32
    %c0_i32_1 = arith.constant 0 : i32
    return %c0_i32, %c0_i32_0 : i32, i32
  }
  func.func @transform_8(%arg0: i32) -> (i32, i32) {
    %c0_i32 = arith.constant 0 : i32
    %c0_i32_0 = arith.constant 0 : i32
    %c0_i32_1 = arith.constant 0 : i32
    return %c0_i32, %c0_i32_0 : i32, i32
  }
  func.func @transform_9(%arg0: i32) -> (i32, i32) {
    %c0_i32 = arith.constant 0 : i32
    %c0_i32_0 = arith.constant 0 : i32
    %c0_i32_1 = arith.constant 0 : i32
    return %c0_i32, %c0_i32_0 : i32, i32
  }
  func.func @transform_10(%arg0: i32) -> (i32, i32) {
    %c0_i32 = arith.constant 0 : i32
    %c0_i32_0 = arith.constant 0 : i32
    %c0_i32_1 = arith.constant 0 : i32
    return %c0_i32, %c0_i32_0 : i32, i32
  }
  func.func @transform_11(%arg0: i32) -> (i32, i32) {
    %c0_i32 = arith.constant 0 : i32
    %c0_i32_0 = arith.constant 0 : i32
    return %c0_i32, %arg0 : i32, i32
  }
}

</mosaic_0001>

<bundles_post_ra>
// kernel: tpu_custom_call.1
= control target key start
LH: loop header
LB: loop body
LE: loop exit
PB: predicated region body
PF: predicated region fallthrough
CT: control target
= control target key end

     0   :  { %s5710_s0 = inlined_call_operand.vmem [shape: f32[1024,32], index: 0, kind: input, shape index: {}]   ;;  %s5711_s1 = inlined_call_operand.vmem [shape: f32[256,32], index: 1, kind: input, shape index: {}]   ;;  %s5712_s2 = inlined_call_operand.vmem [shape: f32[256,1], index: 2, kind: input, shape index: {}]   ;;  %s5713_s3 = inlined_call_operand.vmem [shape: f32[192,256], index: 3, kind: input, shape index: {}]   ;;  %s5714_s4 = inlined_call_operand.vmem [shape: f32[192,1], index: 4, kind: input, shape index: {}]   ;;  %s5715_s5 = inlined_call_operand.vmem [shape: f32[128,64], index: 5, kind: input, shape index: {}]   ;;  %s5716_s6 = inlined_call_operand.vmem [shape: f32[128,1], index: 6, kind: input, shape index: {}]   ;;  %s5717_s7 = inlined_call_operand.vmem [shape: f32[64,128], index: 7, kind: input, shape index: {}]   ;;  %s5718_s8 = inlined_call_operand.vmem [shape: f32[64,1], index: 8, kind: input, shape index: {}]   ;;  %s5719_s9 = inlined_call_operand.vmem [shape: f32[64,1], index: 9, kind: input, shape index: {}]   ;;  %s5720_s10 = inlined_call_operand.<no memory space> [shape: f32[1,1], index: 10, kind: input, shape index: {}]   ;;  %s5721_s11 = inlined_call_operand.hbm [shape: f32[2,1024], index: 11, kind: output, shape index: {}]  }
   0x1   :  { %5729 = sst [smem:[#allocation48_spill]] %s5710_s0  ;;  %v16_v0 = vstv %s5720_s10 }
   0x2   :  { %17 = vst [vmem:[#allocation2] sm:$0x1] %v16_v0 }
   0x3   :  { %18 = vsyncpa [#allocation4], 0 }
   0x4   :  { %20 = vsyncpa [#allocation4 + $0x1], 0  ;;  %s4026_s19 = smov 0   ;;  %s4028_s20 = smov 0  }
   0x5   :  { %s4030_s21 = smov 0   ;;  %s4032_s22 = smov 0  }
   0x6 LB: > { %s4047_s10 = sadd.s32 4294967295, %s3957_s22   ;;  %s3468_s23 = sadd.s32 4294967294, %s3957_s22   ;;  %s3957_s22 = sphi %s4032_s22, %s5896_s22   ;;  %s3953_s21 = sphi %s4030_s21, %s5895_s21   ;;  %s3949_s20 = sphi %s4028_s20, %s5894_s20   ;;  %s3945_s19 = sphi %s4026_s19, %s5893_s19  }
   0x7   : > { %s4051_s24 = sadd.s32 1, %s3957_s22   ;;  %s269_s25 = sadd.s32 1, %s3953_s21 }
   0x8   : > { %s266_s26 = ssub.s32 %s3957_s22, %s4051_s24  ;;  %p279_p0 = scmp.ne.s32.totalorder %s3953_s21, %s3949_s20 }
   0x9   : > { %p267_p1 = scmp.eq.s32.totalorder %s266_s26, 0  ;;  %p280_p2 = scmp.eq.s32.totalorder %s4047_s10, 1 }
   0xa   : > { %p285_p3 = scmp.ne.s32.totalorder %s3949_s20, %s3945_s19  ;;  %p286_p4 = scmp.eq.s32.totalorder %s3468_s23, 1 }
   0xb   : > { %s4062_s27 = scalar_select %p267_p1, %s3953_s21, %s269_s25  }
   0xc   : > { %p4064_p5 = por %p280_p2, %p279_p0  ;;  %p4068_p6 = por %p286_p4, %p285_p3 }
   0xd   : > { %p3471_p7 = scmp.ge.s32.totalorder %s3957_s22, 1  ;;  %p343_p8 = scmp.lt.s32.totalorder %s3957_s22, 3 }
   0xf   : > { %p344_p9 = pnand %p3471_p7, %p343_p8 }
  0x11   : > { %347 = sbr.rel (%p344_p9) target bundleno = 1331 (0x533), region = 64 }
  0x16   : > { %s3473_s30 = sshll.u32 %s4047_s10, 6  ;;  %v501_v1 = vld [vmem:[%s5712_s2 + $0x78] sm:$0xff]  ;;  %v499_v2 = vld [vmem:[%s5712_s2 + $0x68] sm:$0xff]  ;;  %v3959_v3 = vmov 0   ;;  %vm678_vm0 = vcmask 261120   ;;  %v4084_v4 = vld [vmem:[%s5711_s1] sm:$0xff] }
  0x17   : > { %p384_p10 = scmp.lt.s32.totalorder %s3473_s30, 127  ;;  %3879 = vset.pattern.permute.xlu0 %v3959_v3  ;;  %3880 = vset.pattern.permute.xlu1 %v3959_v3  ;;  %v500_v5 = vld [vmem:[%s5712_s2 + $0x70] sm:$0xff]  ;;  %v498_v6 = vld [vmem:[%s5712_s2 + $0x60] sm:$0xff]  ;;  %s5732_s0 = sld [smem:[#allocation48_spill]]  ;;  %v497_v7 = vld [vmem:[%s5712_s2 + $0x58] sm:$0xff]  ;;  %vm2471_vm1 = vcmask 523264  }
  0x18   : > { %595 = vperm.xlu0 %3879, %v501_v1   ;;  %585 = vperm.xlu1 %3880, %v499_v2   ;;  %v496_v8 = vld [vmem:[%s5712_s2 + $0x50] sm:$0xff]  ;;  %v495_v19 = vld [vmem:[%s5712_s2 + $0x48] sm:$0xff]  ;;  %v494_v20 = vld [vmem:[%s5712_s2 + $0x40] sm:$0xff]  ;;  %vm3366_vm2 = vcmask 1040384   ;;  %s3962_s25 = smov [#allocation3]  }
  0x19   : > { %s5898_s30 = smov (!%p384_p10, %s3473_s30), 127  ;;  %3677 = vmatprep.mubr.msk.f32.mxu0 %vm678_vm0, %v4084_v4  ;;  %3773 = vmatprep.mubr.msk.f32.mxu1 %vm678_vm0, %v4084_v4  ;;  %v493_v25 = vld [vmem:[%s5712_s2 + $0x38] sm:$0xff]  ;;  %v492_v26 = vld [vmem:[%s5712_s2 + $0x30] sm:$0xff]  ;;  %v491_v31 = vld [vmem:[%s5712_s2 + $0x28] sm:$0xff] }
  0x1a   : > { %s3474_s12 = sshll.u32 %s5898_s30, 3  ;;  %v490_v32 = vld [vmem:[%s5712_s2 + $0x20] sm:$0xff]  ;;  %v489_v37 = vld [vmem:[%s5712_s2 + $0x18] sm:$0xff]  ;;  %v488_v38 = vld [vmem:[%s5712_s2 + $0x10] sm:$0xff] }
  0x1b   : > { %v487_v43 = vld [vmem:[%s5712_s2 + $0x8] sm:$0xff]  ;;  %v486_v44 = vld [vmem:[%s5712_s2] sm:$0xff]  ;;  %v517_v49 = vld [vmem:[%s5712_s2 + $0xf8] sm:$0xff] }
  0x1c   : > { %590 = vperm.xlu0 %3879, %v500_v5   ;;  %580 = vperm.xlu1 %3880, %v498_v6   ;;  %v516_v50 = vld [vmem:[%s5712_s2 + $0xf0] sm:$0xff]  ;;  %v515_v55 = vld [vmem:[%s5712_s2 + $0xe8] sm:$0xff]  ;;  %v514_v56 = vld [vmem:[%s5712_s2 + $0xe0] sm:$0xff] }
  0x1d   : > { %s4099_s15 = scalar_lea.vmem %s5732_s0, %s3474_s12  ;;  %v513_v61 = vld [vmem:[%s5712_s2 + $0xd8] sm:$0xff]  ;;  %v512_v62 = vld [vmem:[%s5712_s2 + $0xd0] sm:$0xff]  ;;  %v511_v3 = vld [vmem:[%s5712_s2 + $0xc8] sm:$0xff]  ;;  %s3644_s12 = sshll.u32 %s4047_s10, 7 }
  0x1e   : > { %v421_v9 = vld [vmem:[%s4099_s15 + $0xf8] sm:$0xff]  ;;  %v420_v13 = vld [vmem:[%s4099_s15 + $0xf0] sm:$0xff]  ;;  %v419_v17 = vld [vmem:[%s4099_s15 + $0xe8] sm:$0xff]  ;;  %s3407_s30 = scalar_lea.hbm %s5721_s11, %s3644_s12  ;;  %s3901_s10 = sshll.u32 %s3962_s25, 4  ;;  %s3902_s10 = int_to_ptr.vmem [resolvable:$false] %s3901_s10 }
  0x1f   : > { %v453_v10 = vld [vmem:[%s4099_s15 + $0x1f8] sm:$0xff]  ;;  %3645 = vmatprep.subr.msk.mxu0 %vm678_vm0, %v421_v9  ;;  %v452_v14 = vld [vmem:[%s4099_s15 + $0x1f0] sm:$0xff]  ;;  %v451_v18 = vld [vmem:[%s4099_s15 + $0x1e8] sm:$0xff] }
  0x20   : > { %v405_v11 = vld [vmem:[%s4099_s15 + $0x78] sm:$0xff]  ;;  %3741 = vmatprep.subr.msk.mxu1 %vm678_vm0, %v453_v10  ;;  %v404_v15 = vld [vmem:[%s4099_s15 + $0x70] sm:$0xff]  ;;  %575 = vperm.xlu0 %3879, %v497_v7   ;;  %v403_v21 = vld [vmem:[%s4099_s15 + $0x68] sm:$0xff] }
  0x21   : > { %v437_v12 = vld [vmem:[%s4099_s15 + $0x178] sm:$0xff]  ;;  %3646 = vmatpush3.xpose.msk.msra.mxu0 %vm678_vm0, %v405_v11  ;;  %v436_v16 = vld [vmem:[%s4099_s15 + $0x170] sm:$0xff]  ;;  %570 = vperm.xlu1 %3880, %v496_v8   ;;  %v435_v22 = vld [vmem:[%s4099_s15 + $0x168] sm:$0xff] }
  0x22   : > { %3742 = vmatpush3.xpose.msk.msra.mxu1 %vm678_vm0, %v437_v12  ;;  %3647 = vmatprep.subr.msk.mxu0 %vm678_vm0, %v420_v13  ;;  %v418_v23 = vld [vmem:[%s4099_s15 + $0xe0] sm:$0xff]  ;;  %v417_v29 = vld [vmem:[%s4099_s15 + $0xd8] sm:$0xff]  ;;  %v416_v35 = vld [vmem:[%s4099_s15 + $0xd0] sm:$0xff] }
  0x23   : > { %3743 = vmatprep.subr.msk.mxu1 %vm678_vm0, %v452_v14  ;;  %v450_v24 = vld [vmem:[%s4099_s15 + $0x1e0] sm:$0xff]  ;;  %v449_v30 = vld [vmem:[%s4099_s15 + $0x1d8] sm:$0xff]  ;;  %v448_v36 = vld [vmem:[%s4099_s15 + $0x1d0] sm:$0xff] }
  0x24   : > { %565 = vperm.xlu0 %3879, %v495_v19   ;;  %v402_v27 = vld [vmem:[%s4099_s15 + $0x60] sm:$0xff]  ;;  %v401_v33 = vld [vmem:[%s4099_s15 + $0x58] sm:$0xff]  ;;  %v400_v39 = vld [vmem:[%s4099_s15 + $0x50] sm:$0xff] }
  0x25   : > { %3648 = vmatpush3.xpose.msk.msra.mxu0 %vm678_vm0, %v404_v15  ;;  %560 = vperm.xlu1 %3880, %v494_v20   ;;  %v434_v28 = vld [vmem:[%s4099_s15 + $0x160] sm:$0xff]  ;;  %v433_v34 = vld [vmem:[%s4099_s15 + $0x158] sm:$0xff]  ;;  %v432_v40 = vld [vmem:[%s4099_s15 + $0x150] sm:$0xff] }
  0x26   : > { %3744 = vmatpush3.xpose.msk.msra.mxu1 %vm678_vm0, %v436_v16  ;;  %3649 = vmatprep.subr.msk.mxu0 %vm678_vm0, %v419_v17  ;;  %v415_v41 = vld [vmem:[%s4099_s15 + $0xc8] sm:$0xff]  ;;  %v414_v47 = vld [vmem:[%s4099_s15 + $0xc0] sm:$0xff]  ;;  %v413_v53 = vld [vmem:[%s4099_s15 + $0xb8] sm:$0xff] }
  0x27   : > { %3745 = vmatprep.subr.msk.mxu1 %vm678_vm0, %v451_v18  ;;  %v447_v42 = vld [vmem:[%s4099_s15 + $0x1c8] sm:$0xff]  ;;  %v446_v48 = vld [vmem:[%s4099_s15 + $0x1c0] sm:$0xff]  ;;  %v445_v54 = vld [vmem:[%s4099_s15 + $0x1b8] sm:$0xff] }
  0x28   : > { %555 = vperm.xlu0 %3879, %v493_v25   ;;  %v399_v45 = vld [vmem:[%s4099_s15 + $0x48] sm:$0xff]  ;;  %v398_v51 = vld [vmem:[%s4099_s15 + $0x40] sm:$0xff]  ;;  %v397_v57 = vld [vmem:[%s4099_s15 + $0x38] sm:$0xff] }
  0x29   : > { %3650 = vmatpush3.xpose.msk.msra.mxu0 %vm678_vm0, %v403_v21  ;;  %550 = vperm.xlu1 %3880, %v492_v26   ;;  %v431_v46 = vld [vmem:[%s4099_s15 + $0x148] sm:$0xff]  ;;  %v430_v52 = vld [vmem:[%s4099_s15 + $0x140] sm:$0xff]  ;;  %v429_v58 = vld [vmem:[%s4099_s15 + $0x138] sm:$0xff] }
  0x2a   : > { %3746 = vmatpush3.xpose.msk.msra.mxu1 %vm678_vm0, %v435_v22  ;;  %3651 = vmatprep.subr.msk.mxu0 %vm678_vm0, %v418_v23  ;;  %v412_v59 = vld [vmem:[%s4099_s15 + $0xb0] sm:$0xff]  ;;  %v411_v1 = vld [vmem:[%s4099_s15 + $0xa8] sm:$0xff]  ;;  %v510_v5 = vld [vmem:[%s5712_s2 + $0xc0] sm:$0xff] }
  0x2b   : > { %3747 = vmatprep.subr.msk.mxu1 %vm678_vm0, %v450_v24  ;;  %v444_v60 = vld [vmem:[%s4099_s15 + $0x1b0] sm:$0xff]  ;;  %v443_v2 = vld [vmem:[%s4099_s15 + $0x1a8] sm:$0xff]  ;;  %v410_v8 = vld [vmem:[%s4099_s15 + $0xa0] sm:$0xff] }
  0x2c   : > { %545 = vperm.xlu0 %3879, %v491_v31   ;;  %v396_v63 = vld [vmem:[%s4099_s15 + $0x30] sm:$0xff]  ;;  %v395_v6 = vld [vmem:[%s4099_s15 + $0x28] sm:$0xff]  ;;  %v442_v9 = vld [vmem:[%s4099_s15 + $0x1a0] sm:$0xff] }
  0x2d   : > { %3652 = vmatpush3.xpose.msk.msra.mxu0 %vm678_vm0, %v402_v27  ;;  %540 = vperm.xlu1 %3880, %v490_v32   ;;  %v428_v0 = vld [vmem:[%s4099_s15 + $0x130] sm:$0xff]  ;;  %v427_v7 = vld [vmem:[%s4099_s15 + $0x128] sm:$0xff]  ;;  %v509_v10 = vld [vmem:[%s5712_s2 + $0xb8] sm:$0xff] }
  0x2e   : > { %3748 = vmatpush3.xpose.msk.msra.mxu1 %vm678_vm0, %v434_v28  ;;  %3653 = vmatprep.subr.msk.mxu0 %vm678_vm0, %v417_v29  ;;  %v508_v11 = vld [vmem:[%s5712_s2 + $0xb0] sm:$0xff]  ;;  %v394_v12 = vld [vmem:[%s4099_s15 + $0x20] sm:$0xff]  ;;  %v409_v14 = vld [vmem:[%s4099_s15 + $0x98] sm:$0xff] }
  0x2f   : > { %3749 = vmatprep.subr.msk.mxu1 %vm678_vm0, %v449_v30  ;;  %v426_v13 = vld [vmem:[%s4099_s15 + $0x120] sm:$0xff]  ;;  %v441_v15 = vld [vmem:[%s4099_s15 + $0x198] sm:$0xff]  ;;  %v507_v16 = vld [vmem:[%s5712_s2 + $0xa8] sm:$0xff] }
  0x30   : > { %535 = vperm.xlu0 %3879, %v489_v37   ;;  %v506_v17 = vld [vmem:[%s5712_s2 + $0xa0] sm:$0xff]  ;;  %v393_v18 = vld [vmem:[%s4099_s15 + $0x18] sm:$0xff]  ;;  %v408_v20 = vld [vmem:[%s4099_s15 + $0x90] sm:$0xff] }
  0x31   : > { %3654 = vmatpush3.xpose.msk.msra.mxu0 %vm678_vm0, %v401_v33  ;;  %530 = vperm.xlu1 %3880, %v488_v38   ;;  %v425_v19 = vld [vmem:[%s4099_s15 + $0x118] sm:$0xff]  ;;  %v440_v21 = vld [vmem:[%s4099_s15 + $0x190] sm:$0xff]  ;;  %v407_v26 = vld [vmem:[%s4099_s15 + $0x88] sm:$0xff] }
  0x32   : > { %3750 = vmatpush3.xpose.msk.msra.mxu1 %vm678_vm0, %v433_v34  ;;  %3655 = vmatprep.subr.msk.mxu0 %vm678_vm0, %v416_v35  ;;  %v505_v22 = vld [vmem:[%s5712_s2 + $0x98] sm:$0xff]  ;;  %v504_v23 = vld [vmem:[%s5712_s2 + $0x90] sm:$0xff]  ;;  %v439_v27 = vld [vmem:[%s4099_s15 + $0x188] sm:$0xff] }
  0x33   : > { %3751 = vmatprep.subr.msk.mxu1 %vm678_vm0, %v448_v36  ;;  %v392_v24 = vld [vmem:[%s4099_s15 + $0x10] sm:$0xff]  ;;  %v503_v28 = vld [vmem:[%s5712_s2 + $0x88] sm:$0xff]  ;;  %v502_v29 = vld [vmem:[%s5712_s2 + $0x80] sm:$0xff] }
  0x34   : > { %525 = vperm.xlu0 %3879, %v487_v43   ;;  %v424_v25 = vld [vmem:[%s4099_s15 + $0x110] sm:$0xff]  ;;  %v391_v30 = vld [vmem:[%s4099_s15 + $0x8] sm:$0xff]  ;;  %v406_v32 = vld [vmem:[%s4099_s15 + $0x80] sm:$0xff] }
  0x35   : > { %3656 = vmatpush3.xpose.msk.msra.mxu0 %vm678_vm0, %v400_v39  ;;  %520 = vperm.xlu1 %3880, %v486_v44   ;;  %v423_v31 = vld [vmem:[%s4099_s15 + $0x108] sm:$0xff]  ;;  %v438_v33 = vld [vmem:[%s4099_s15 + $0x180] sm:$0xff]  ;;  %v456_v43 = vld [vmem:[%s5711_s1 + $0x10] sm:$0xff] }
  0x36   : > { %3752 = vmatpush3.xpose.msk.msra.mxu1 %vm678_vm0, %v432_v40  ;;  %3657 = vmatprep.subr.msk.mxu0 %vm678_vm0, %v415_v41  ;;  %v1657_v34 = vld [vmem:[%s5714_s4] sm:$0xff]  ;;  %v1658_v35 = vld [vmem:[%s5714_s4 + $0x8] sm:$0xff]  ;;  %v1659_v41 = vld [vmem:[%s5714_s4 + $0x10] sm:$0xff] }
  0x37   : > { %3753 = vmatprep.subr.msk.mxu1 %vm678_vm0, %v447_v42  ;;  %v390_v36 = vld [vmem:[%s4099_s15] sm:$0xff]  ;;  %v1666_v39 = vld [vmem:[%s5714_s4 + $0x48] sm:$0xff]  ;;  %v1667_v42 = vld [vmem:[%s5714_s4 + $0x50] sm:$0xff] }
  0x38   : > { %675 = vperm.xlu0 %3879, %v517_v49   ;;  %v422_v37 = vld [vmem:[%s4099_s15 + $0x100] sm:$0xff]  ;;  %v455_v40 = vld [vmem:[%s5711_s1 + $0x8] sm:$0xff]  ;;  %v1668_v44 = vld [vmem:[%s5714_s4 + $0x58] sm:$0xff]  ;;  %s380_s15 = sand.u32 1, %s3949_s20  }
  0x39   : > { %3658 = vmatpush3.xpose.msk.msra.mxu0 %vm678_vm0, %v399_v45  ;;  %670 = vperm.xlu1 %3880, %v516_v50   ;;  %v1665_v38 = vld [vmem:[%s5714_s4 + $0x40] sm:$0xff]  ;;  %v457_v45 = vld [vmem:[%s5711_s1 + $0x18] sm:$0xff]  ;;  %v1662_v49 = vld [vmem:[%s5714_s4 + $0x28] sm:$0xff]  ;;  %s3472_s26 = sshll.u32 %s380_s15, 3  ;;  %s3395_s18 = scalar_lea.sflag [#allocation4], %s380_s15 }
  0x3a   : > { %3754 = vmatpush3.xpose.msk.msra.mxu1 %vm678_vm0, %v431_v46  ;;  %3659 = vmatprep.subr.msk.mxu0 %vm678_vm0, %v414_v47  ;;  %v1661_v46 = vld [vmem:[%s5714_s4 + $0x20] sm:$0xff]  ;;  %v1670_v50 = vld [vmem:[%s5714_s4 + $0x68] sm:$0xff]  ;;  %s382_s13 = scalar_lea.vmem [#allocation3], %s3472_s26  ;;  %s3903_s26 = scalar_lea.vmem %s3902_s10, 256 }
  0x3b   : > { %3755 = vmatprep.subr.msk.mxu1 %vm678_vm0, %v446_v48  ;;  %v1669_v47 = vld [vmem:[%s5714_s4 + $0x60] sm:$0xff]  ;;  %s3409_s14 = sshll.u32 %s382_s13, 4  ;;  %s3410_s14 = int_to_ptr.vmem [resolvable:$true] %s3409_s14 }
  0x3c   : > { %665 = vperm.xlu0 %3879, %v515_v55   ;;  %v458_v48 = vld [vmem:[%s5711_s1 + $0x20] sm:$0xff]  ;;  %v1664_v55 = vld [vmem:[%s5714_s4 + $0x38] sm:$0xff]  ;;  %s3897_s23 = scalar_lea.vmem %s3410_s14, 128  ;;  %p3904_p0 = scmp.lt.s32.totalorder %s3410_s14, %s3902_s10 }
  0x3d   : > { %3660 = vmatpush3.xpose.msk.msra.mxu0 %vm678_vm0, %v398_v51  ;;  %660 = vperm.xlu1 %3880, %v514_v56   ;;  %v459_v51 = vld [vmem:[%s5711_s1 + $0x28] sm:$0xff]  ;;  %v1672_v56 = vld [vmem:[%s5714_s4 + $0x78] sm:$0xff]  ;;  %p3898_p11 = scmp.ne.s32.totalorder %s3410_s14, %s3897_s23  ;;  %p3905_p1 = scmp.lt.s32.totalorder %s3903_s26, %s3897_s23 }
  0x3e   : > { %3756 = vmatpush3.xpose.msk.msra.mxu1 %vm678_vm0, %v430_v52  ;;  %3661 = vmatprep.subr.msk.mxu0 %vm678_vm0, %v413_v53  ;;  %v1663_v52 = vld [vmem:[%s5714_s4 + $0x30] sm:$0xff] }
  0x3f   : > { %3757 = vmatprep.subr.msk.mxu1 %vm678_vm0, %v445_v54  ;;  %v1671_v53 = vld [vmem:[%s5714_s4 + $0x70] sm:$0xff]  ;;  %p3899_p12 = pnand %p3898_p11, %p4064_p5  ;;  %p3906_p2 = por %p3905_p1, %p3904_p0 }
  0x40   : > { %655 = vperm.xlu0 %3879, %v513_v61   ;;  %v460_v54 = vld [vmem:[%s5711_s1 + $0x30] sm:$0xff]  ;;  %v1678_v61 = vld [vmem:[%s5714_s4 + $0xa8] sm:$0xff] }
  0x41   : > { %3662 = vmatpush3.xpose.msk.msra.mxu0 %vm678_vm0, %v397_v57  ;;  %650 = vperm.xlu1 %3880, %v512_v62   ;;  %v461_v57 = vld [vmem:[%s5711_s1 + $0x38] sm:$0xff]  ;;  %v1677_v62 = vld [vmem:[%s5714_s4 + $0xa0] sm:$0xff]  ;;  %p3900_p13 = pneg %p3899_p12 }
  0x42   : > { %3758 = vmatpush3.xpose.msk.msra.mxu1 %vm678_vm0, %v429_v58  ;;  %3663 = vmatprep.subr.msk.mxu0 %vm678_vm0, %v412_v59  ;;  %v1680_v58 = vld [vmem:[%s5714_s4 + $0xb8] sm:$0xff]  ;;  %v1679_v59 = vld [vmem:[%s5714_s4 + $0xb0] sm:$0xff] }
  0x43   : > { %3759 = vmatprep.subr.msk.mxu1 %vm678_vm0, %v444_v60  ;;  %v462_v60 = vld [vmem:[%s5711_s1 + $0x40] sm:$0xff]  ;;  %p3907_p3 = pnand %p3906_p2, %p3900_p13 }
  0x44   : > { %645 = vperm.xlu0 %3879, %v511_v3   ;;  %v1674_v3 = vld [vmem:[%s5714_s4 + $0x88] sm:$0xff] }
  0x45   : > { %3664 = vmatpush3.xpose.msk.msra.mxu0 %vm678_vm0, %v396_v63  ;;  %640 = vperm.xlu1 %3880, %v510_v5   ;;  %v463_v63 = vld [vmem:[%s5711_s1 + $0x48] sm:$0xff]  ;;  %v1673_v5 = vld [vmem:[%s5714_s4 + $0x80] sm:$0xff] }
  0x46   : > { %3760 = vmatpush3.xpose.msk.msra.mxu1 %vm678_vm0, %v428_v0  ;;  %3665 = vmatprep.subr.msk.mxu0 %vm678_vm0, %v411_v1  ;;  %v1676_v0 = vld [vmem:[%s5714_s4 + $0x98] sm:$0xff]  ;;  %v1675_v1 = vld [vmem:[%s5714_s4 + $0x90] sm:$0xff] }
  0x47   : > { %3761 = vmatprep.subr.msk.mxu1 %vm678_vm0, %v443_v2  ;;  %v464_v2 = vld [vmem:[%s5711_s1 + $0x50] sm:$0xff] }
  0x48   : > { %635 = vperm.xlu0 %3879, %v509_v10   ;;  %v2388_v10 = vld [vmem:[%s5716_s6 + $0x68] sm:$0xff] }
  0x49   : > { %3666 = vmatpush3.xpose.msk.msra.mxu0 %vm678_vm0, %v395_v6  ;;  %630 = vperm.xlu1 %3880, %v508_v11   ;;  %v465_v6 = vld [vmem:[%s5711_s1 + $0x58] sm:$0xff]  ;;  %v2387_v11 = vld [vmem:[%s5716_s6 + $0x60] sm:$0xff] }
  0x4a   : > { %3762 = vmatpush3.xpose.msk.msra.mxu1 %vm678_vm0, %v427_v7  ;;  %3667 = vmatprep.subr.msk.mxu0 %vm678_vm0, %v410_v8  ;;  %v2390_v7 = vld [vmem:[%s5716_s6 + $0x78] sm:$0xff]  ;;  %v2389_v8 = vld [vmem:[%s5716_s6 + $0x70] sm:$0xff] }
  0x4b   : > { %3763 = vmatprep.subr.msk.mxu1 %vm678_vm0, %v442_v9  ;;  %v466_v9 = vld [vmem:[%s5711_s1 + $0x60] sm:$0xff] }
  0x4c   : > { %625 = vperm.xlu0 %3879, %v507_v16   ;;  %v2384_v16 = vld [vmem:[%s5716_s6 + $0x48] sm:$0xff] }
  0x4d   : > { %3668 = vmatpush3.xpose.msk.msra.mxu0 %vm678_vm0, %v394_v12  ;;  %620 = vperm.xlu1 %3880, %v506_v17   ;;  %v467_v12 = vld [vmem:[%s5711_s1 + $0x68] sm:$0xff]  ;;  %v2383_v17 = vld [vmem:[%s5716_s6 + $0x40] sm:$0xff] }
  0x4e   : > { %3764 = vmatpush3.xpose.msk.msra.mxu1 %vm678_vm0, %v426_v13  ;;  %3669 = vmatprep.subr.msk.mxu0 %vm678_vm0, %v409_v14  ;;  %v2386_v13 = vld [vmem:[%s5716_s6 + $0x58] sm:$0xff]  ;;  %v2385_v14 = vld [vmem:[%s5716_s6 + $0x50] sm:$0xff] }
  0x4f   : > { %3765 = vmatprep.subr.msk.mxu1 %vm678_vm0, %v441_v15  ;;  %v468_v15 = vld [vmem:[%s5711_s1 + $0x70] sm:$0xff] }
  0x50   : > { %615 = vperm.xlu0 %3879, %v505_v22   ;;  %v2380_v22 = vld [vmem:[%s5716_s6 + $0x28] sm:$0xff] }
  0x51   : > { %3670 = vmatpush3.xpose.msk.msra.mxu0 %vm678_vm0, %v393_v18  ;;  %610 = vperm.xlu1 %3880, %v504_v23   ;;  %v469_v18 = vld [vmem:[%s5711_s1 + $0x78] sm:$0xff]  ;;  %v2379_v23 = vld [vmem:[%s5716_s6 + $0x20] sm:$0xff] }
  0x52   : > { %3766 = vmatpush3.xpose.msk.msra.mxu1 %vm678_vm0, %v425_v19  ;;  %3671 = vmatprep.subr.msk.mxu0 %vm678_vm0, %v408_v20  ;;  %v2382_v19 = vld [vmem:[%s5716_s6 + $0x38] sm:$0xff]  ;;  %v2381_v20 = vld [vmem:[%s5716_s6 + $0x30] sm:$0xff] }
  0x53   : > { %3767 = vmatprep.subr.msk.mxu1 %vm678_vm0, %v440_v21  ;;  %v470_v21 = vld [vmem:[%s5711_s1 + $0x80] sm:$0xff] }
  0x54   : > { %605 = vperm.xlu0 %3879, %v503_v28   ;;  %v2376_v28 = vld [vmem:[%s5716_s6 + $0x8] sm:$0xff] }
  0x55   : > { %3672 = vmatpush3.xpose.msk.msra.mxu0 %vm678_vm0, %v392_v24  ;;  %600 = vperm.xlu1 %3880, %v502_v29   ;;  %v471_v24 = vld [vmem:[%s5711_s1 + $0x88] sm:$0xff]  ;;  %v2375_v29 = vld [vmem:[%s5716_s6] sm:$0xff] }
  0x56   : > { %3768 = vmatpush3.xpose.msk.msra.mxu1 %vm678_vm0, %v424_v25  ;;  %3673 = vmatprep.subr.msk.mxu0 %vm678_vm0, %v407_v26  ;;  %v2378_v25 = vld [vmem:[%s5716_s6 + $0x18] sm:$0xff]  ;;  %v2377_v26 = vld [vmem:[%s5716_s6 + $0x10] sm:$0xff] }
  0x57   : > { %3769 = vmatprep.subr.msk.mxu1 %vm678_vm0, %v439_v27  ;;  %v472_v27 = vld [vmem:[%s5711_s1 + $0x90] sm:$0xff] }
  0x58   : > { %1683 = vperm.xlu0 %3879, %v1657_v34   ;;  %v2916_v34 = vld [vmem:[%s5718_s8 + $0x10] sm:$0xff] }
  0x59   : > { %3674 = vmatpush3.xpose.msk.msra.mxu0 %vm678_vm0, %v391_v30  ;;  %1688 = vperm.xlu1 %3880, %v1658_v35   ;;  %v473_v30 = vld [vmem:[%s5711_s1 + $0x98] sm:$0xff] }
  0x5a   : > { %3770 = vmatpush3.xpose.msk.msra.mxu1 %vm678_vm0, %v423_v31  ;;  %3675 = vmatprep.subr.msk.mxu0 %vm678_vm0, %v406_v32  ;;  %v2914_v31 = vld [vmem:[%s5718_s8] sm:$0xff]  ;;  %v2915_v32 = vld [vmem:[%s5718_s8 + $0x8] sm:$0xff]  ;;  %v2917_v35 = vld [vmem:[%s5718_s8 + $0x18] sm:$0xff] }
  0x5b   : > { %3771 = vmatprep.subr.msk.mxu1 %vm678_vm0, %v438_v33  ;;  %v474_v33 = vld [vmem:[%s5711_s1 + $0xa0] sm:$0xff] }
  0x5c   : > { %1723 = vperm.xlu0 %3879, %v1665_v38   ;;  %v3221_v38 = vld [vmem:[%s5719_s9 + $0x8] sm:$0xff] }
  0x5d   : > { %3676 = vmatpush3.xpose.msk.msra.mxu0 %vm678_vm0, %v390_v36  ;;  %1728 = vperm.xlu1 %3880, %v1666_v39   ;;  %v475_v36 = vld [vmem:[%s5711_s1 + $0xa8] sm:$0xff]  ;;  %v476_v39 = vld [vmem:[%s5711_s1 + $0xb0] sm:$0xff] }
  0x5e   : > { %3772 = vmatpush3.xpose.msk.msra.mxu1 %vm678_vm0, %v422_v37  ;;  %v3220_v37 = vld [vmem:[%s5719_s9] sm:$0xff] }
  0x60   : > { %3678 = vmatmul.mubr.msk.f32.vlgmr.msra.gmra.mxu0 %vm678_vm0, %v4084_v4  ;;  %1693 = vperm.xlu0 %3879, %v1659_v41   ;;  %v3222_v41 = vld [vmem:[%s5719_s9 + $0x10] sm:$0xff] }
  0x61   : > { %3774 = vmatmul.mubr.msk.f32.vlgmr.msra.gmra.mxu1 %vm678_vm0, %v4084_v4  ;;  %3679 = vmatprep.mubr.msk.f32.mxu0 %vm678_vm0, %v455_v40  ;;  %v1660_v4 = vld [vmem:[%s5714_s4 + $0x18] sm:$0xff] }
  0x62   : > { %3775 = vmatprep.mubr.msk.f32.mxu1 %vm678_vm0, %v455_v40  ;;  %1733 = vperm.xlu1 %3880, %v1667_v42   ;;  %v477_v42 = vld [vmem:[%s5711_s1 + $0xb8] sm:$0xff] }
  0x64   : > { %3680 = vmatmul.mubr.msk.f32.gmra.mxu0 %vm678_vm0, %v455_v40  ;;  %1698 = vperm.xlu0 %3879, %v1660_v4   ;;  %v3223_v4 = vld [vmem:[%s5719_s9 + $0x18] sm:$0xff] }
  0x65   : > { %3776 = vmatmul.mubr.msk.f32.gmra.mxu1 %vm678_vm0, %v455_v40  ;;  %3681 = vmatprep.mubr.msk.f32.mxu0 %vm678_vm0, %v456_v43  ;;  %v2918_v40 = vld [vmem:[%s5718_s8 + $0x20] sm:$0xff] }
  0x66   : > { %3777 = vmatprep.mubr.msk.f32.mxu1 %vm678_vm0, %v456_v43  ;;  %1738 = vperm.xlu1 %3880, %v1668_v44   ;;  %v478_v44 = vld [vmem:[%s5711_s1 + $0xc0] sm:$0xff] }
  0x68   : > { %3682 = vmatmul.mubr.msk.f32.gmra.mxu0 %vm678_vm0, %v456_v43  ;;  %1703 = vperm.xlu0 %3879, %v1661_v46   ;;  %v3224_v46 = vld [vmem:[%s5719_s9 + $0x20] sm:$0xff] }
  0x69   : > { %3778 = vmatmul.mubr.msk.f32.gmra.mxu1 %vm678_vm0, %v456_v43  ;;  %3683 = vmatprep.mubr.msk.f32.mxu0 %vm678_vm0, %v457_v45  ;;  %v2919_v43 = vld [vmem:[%s5718_s8 + $0x28] sm:$0xff] }
  0x6a   : > { %3779 = vmatprep.mubr.msk.f32.mxu1 %vm678_vm0, %v457_v45  ;;  %1743 = vperm.xlu1 %3880, %v1669_v47   ;;  %v479_v47 = vld [vmem:[%s5711_s1 + $0xc8] sm:$0xff] }
  0x6c   : > { %3684 = vmatmul.mubr.msk.f32.gmra.mxu0 %vm678_vm0, %v457_v45  ;;  %1708 = vperm.xlu0 %3879, %v1662_v49   ;;  %v3225_v49 = vld [vmem:[%s5719_s9 + $0x28] sm:$0xff] }
  0x6d   : > { %3780 = vmatmul.mubr.msk.f32.gmra.mxu1 %vm678_vm0, %v457_v45  ;;  %3685 = vmatprep.mubr.msk.f32.mxu0 %vm678_vm0, %v458_v48  ;;  %v2920_v45 = vld [vmem:[%s5718_s8 + $0x30] sm:$0xff] }
  0x6e   : > { %3781 = vmatprep.mubr.msk.f32.mxu1 %vm678_vm0, %v458_v48  ;;  %1748 = vperm.xlu1 %3880, %v1670_v50   ;;  %v480_v50 = vld [vmem:[%s5711_s1 + $0xd0] sm:$0xff] }
  0x70   : > { %3686 = vmatmul.mubr.msk.f32.gmra.mxu0 %vm678_vm0, %v458_v48  ;;  %1713 = vperm.xlu0 %3879, %v1663_v52   ;;  %v3227_v52 = vld [vmem:[%s5719_s9 + $0x38] sm:$0xff] }
  0x71   : > { %3782 = vmatmul.mubr.msk.f32.gmra.mxu1 %vm678_vm0, %v458_v48  ;;  %3687 = vmatprep.mubr.msk.f32.mxu0 %vm678_vm0, %v459_v51  ;;  %v2921_v48 = vld [vmem:[%s5718_s8 + $0x38] sm:$0xff] }
  0x72   : > { %3783 = vmatprep.mubr.msk.f32.mxu1 %vm678_vm0, %v459_v51  ;;  %1753 = vperm.xlu1 %3880, %v1671_v53   ;;  %v481_v53 = vld [vmem:[%s5711_s1 + $0xd8] sm:$0xff] }
  0x74   : > { %3688 = vmatmul.mubr.msk.f32.gmra.mxu0 %vm678_vm0, %v459_v51  ;;  %1718 = vperm.xlu0 %3879, %v1664_v55   ;;  %v482_v55 = vld [vmem:[%s5711_s1 + $0xe0] sm:$0xff] }
  0x75   : > { %3784 = vmatmul.mubr.msk.f32.gmra.mxu1 %vm678_vm0, %v459_v51  ;;  %3689 = vmatprep.mubr.msk.f32.mxu0 %vm678_vm0, %v460_v54  ;;  %v3226_v51 = vld [vmem:[%s5719_s9 + $0x30] sm:$0xff] }
  0x76   : > { %3785 = vmatprep.mubr.msk.f32.mxu1 %vm678_vm0, %v460_v54  ;;  %1758 = vperm.xlu1 %3880, %v1672_v56   ;;  %v483_v56 = vld [vmem:[%s5711_s1 + $0xe8] sm:$0xff] }
  0x78   : > { %3690 = vmatmul.mubr.msk.f32.gmra.mxu0 %vm678_vm0, %v460_v54  ;;  %1798 = vperm.xlu0 %3879, %v1680_v58   ;;  %v485_v58 = vld [vmem:[%s5711_s1 + $0xf8] sm:$0xff] }
  0x79   : > { %3786 = vmatmul.mubr.msk.f32.gmra.mxu1 %vm678_vm0, %v460_v54  ;;  %3691 = vmatprep.mubr.msk.f32.mxu0 %vm678_vm0, %v461_v57  ;;  %v3352_v54 = vld [vmem:[#allocation2] sm:$0x1] }
  0x7a   : > { %3787 = vmatprep.mubr.msk.f32.mxu1 %vm678_vm0, %v461_v57  ;;  %1793 = vperm.xlu1 %3880, %v1679_v59  }
  0x7c   : > { %3692 = vmatmul.mubr.msk.f32.gmra.mxu0 %vm678_vm0, %v461_v57  ;;  %1788 = vperm.xlu0 %3879, %v1678_v61  }
  0x7d   : > { %3788 = vmatmul.mubr.msk.f32.gmra.mxu1 %vm678_vm0, %v461_v57  ;;  %3693 = vmatprep.mubr.msk.f32.mxu0 %vm678_vm0, %v462_v60  ;;  %v484_v57 = vld [vmem:[%s5711_s1 + $0xf0] sm:$0xff] }
  0x7e   : > { %3789 = vmatprep.mubr.msk.f32.mxu1 %vm678_vm0, %v462_v60  ;;  %1783 = vperm.xlu1 %3880, %v1677_v62  }
  0x80   : > { %3694 = vmatmul.mubr.msk.f32.gmra.mxu0 %vm678_vm0, %v462_v60  ;;  %1778 = vperm.xlu0 %3879, %v1676_v0  }
  0x81   : > { %3790 = vmatmul.mubr.msk.f32.gmra.mxu1 %vm678_vm0, %v462_v60  ;;  %3695 = vmatprep.mubr.msk.f32.mxu0 %vm678_vm0, %v463_v63 }
  0x82   : > { %3791 = vmatprep.mubr.msk.f32.mxu1 %vm678_vm0, %v463_v63  ;;  %1773 = vperm.xlu1 %3880, %v1675_v1  }
  0x84   : > { %3696 = vmatmul.mubr.msk.f32.gmra.mxu0 %vm678_vm0, %v463_v63  ;;  %1768 = vperm.xlu0 %3879, %v1674_v3  }
  0x85   : > { %3792 = vmatmul.mubr.msk.f32.gmra.mxu1 %vm678_vm0, %v463_v63  ;;  %3697 = vmatprep.mubr.msk.f32.mxu0 %vm678_vm0, %v464_v2 }
  0x86   : > { %3793 = vmatprep.mubr.msk.f32.mxu1 %vm678_vm0, %v464_v2  ;;  %1763 = vperm.xlu1 %3880, %v1673_v5  }
  0x88   : > { %3698 = vmatmul.mubr.msk.f32.gmra.mxu0 %vm678_vm0, %v464_v2  ;;  %2468 = vperm.xlu0 %3879, %v2390_v7  }
  0x89   : > { %3794 = vmatmul.mubr.msk.f32.gmra.mxu1 %vm678_vm0, %v464_v2  ;;  %3699 = vmatprep.mubr.msk.f32.mxu0 %vm678_vm0, %v465_v6 }
  0x8a   : > { %3795 = vmatprep.mubr.msk.f32.mxu1 %vm678_vm0, %v465_v6  ;;  %2463 = vperm.xlu1 %3880, %v2389_v8  }
  0x8c   : > { %3700 = vmatmul.mubr.msk.f32.gmra.mxu0 %vm678_vm0, %v465_v6  ;;  %2458 = vperm.xlu0 %3879, %v2388_v10  }
  0x8d   : > { %3796 = vmatmul.mubr.msk.f32.gmra.mxu1 %vm678_vm0, %v465_v6  ;;  %3701 = vmatprep.mubr.msk.f32.mxu0 %vm678_vm0, %v466_v9 }
  0x8e   : > { %3797 = vmatprep.mubr.msk.f32.mxu1 %vm678_vm0, %v466_v9  ;;  %2453 = vperm.xlu1 %3880, %v2387_v11  }
  0x90   : > { %3702 = vmatmul.mubr.msk.f32.gmra.mxu0 %vm678_vm0, %v466_v9  ;;  %2448 = vperm.xlu0 %3879, %v2386_v13  }
  0x91   : > { %3798 = vmatmul.mubr.msk.f32.gmra.mxu1 %vm678_vm0, %v466_v9  ;;  %3703 = vmatprep.mubr.msk.f32.mxu0 %vm678_vm0, %v467_v12 }
  0x92   : > { %3799 = vmatprep.mubr.msk.f32.mxu1 %vm678_vm0, %v467_v12  ;;  %2443 = vperm.xlu1 %3880, %v2385_v14  }
  0x94   : > { %3704 = vmatmul.mubr.msk.f32.gmra.mxu0 %vm678_vm0, %v467_v12  ;;  %2438 = vperm.xlu0 %3879, %v2384_v16  }
  0x95   : > { %3800 = vmatmul.mubr.msk.f32.gmra.mxu1 %vm678_vm0, %v467_v12  ;;  %3705 = vmatprep.mubr.msk.f32.mxu0 %vm678_vm0, %v468_v15 }
  0x96   : > { %3801 = vmatprep.mubr.msk.f32.mxu1 %vm678_vm0, %v468_v15  ;;  %2433 = vperm.xlu1 %3880, %v2383_v17  }
  0x98   : > { %3706 = vmatmul.mubr.msk.f32.gmra.mxu0 %vm678_vm0, %v468_v15  ;;  %2428 = vperm.xlu0 %3879, %v2382_v19  }
  0x99   : > { %3802 = vmatmul.mubr.msk.f32.gmra.mxu1 %vm678_vm0, %v468_v15  ;;  %3707 = vmatprep.mubr.msk.f32.mxu0 %vm678_vm0, %v469_v18 }
  0x9a   : > { %3803 = vmatprep.mubr.msk.f32.mxu1 %vm678_vm0, %v469_v18  ;;  %2423 = vperm.xlu1 %3880, %v2381_v20  }
  0x9c   : > { %3708 = vmatmul.mubr.msk.f32.gmra.mxu0 %vm678_vm0, %v469_v18  ;;  %2418 = vperm.xlu0 %3879, %v2380_v22  }
  0x9d   : > { %3804 = vmatmul.mubr.msk.f32.gmra.mxu1 %vm678_vm0, %v469_v18  ;;  %3709 = vmatprep.mubr.msk.f32.mxu0 %vm678_vm0, %v470_v21 }
  0x9e   : > { %3805 = vmatprep.mubr.msk.f32.mxu1 %vm678_vm0, %v470_v21  ;;  %2413 = vperm.xlu1 %3880, %v2379_v23  }
  0xa0   : > { %3710 = vmatmul.mubr.msk.f32.gmra.mxu0 %vm678_vm0, %v470_v21  ;;  %2408 = vperm.xlu0 %3879, %v2378_v25  }
  0xa1   : > { %3806 = vmatmul.mubr.msk.f32.gmra.mxu1 %vm678_vm0, %v470_v21  ;;  %3711 = vmatprep.mubr.msk.f32.mxu0 %vm678_vm0, %v471_v24 }
  0xa2   : > { %3807 = vmatprep.mubr.msk.f32.mxu1 %vm678_vm0, %v471_v24  ;;  %2403 = vperm.xlu1 %3880, %v2377_v26  }
  0xa4   : > { %3712 = vmatmul.mubr.msk.f32.gmra.mxu0 %vm678_vm0, %v471_v24  ;;  %2398 = vperm.xlu0 %3879, %v2376_v28  }
  0xa5   : > { %3808 = vmatmul.mubr.msk.f32.gmra.mxu1 %vm678_vm0, %v471_v24  ;;  %3713 = vmatprep.mubr.msk.f32.mxu0 %vm678_vm0, %v472_v27 }
  0xa6   : > { %3809 = vmatprep.mubr.msk.f32.mxu1 %vm678_vm0, %v472_v27  ;;  %2393 = vperm.xlu1 %3880, %v2375_v29  }
  0xa8   : > { %3714 = vmatmul.mubr.msk.f32.gmra.mxu0 %vm678_vm0, %v472_v27  ;;  %2924 = vperm.xlu0 %3879, %v2914_v31  }
  0xa9   : > { %3810 = vmatmul.mubr.msk.f32.gmra.mxu1 %vm678_vm0, %v472_v27  ;;  %3715 = vmatprep.mubr.msk.f32.mxu0 %vm678_vm0, %v473_v30 }
  0xaa   : > { %3811 = vmatprep.mubr.msk.f32.mxu1 %vm678_vm0, %v473_v30  ;;  %2929 = vperm.xlu1 %3880, %v2915_v32  }
  0xac   : > { %3716 = vmatmul.mubr.msk.f32.gmra.mxu0 %vm678_vm0, %v473_v30  ;;  %2934 = vperm.xlu0 %3879, %v2916_v34  }
  0xad   : > { %3812 = vmatmul.mubr.msk.f32.gmra.mxu1 %vm678_vm0, %v473_v30  ;;  %3717 = vmatprep.mubr.msk.f32.mxu0 %vm678_vm0, %v474_v33  ;;  %v1610_v30 = vld [vmem:[%s5713_s3 + $0x8] sm:$0xff] }
  0xae   : > { %3813 = vmatprep.mubr.msk.f32.mxu1 %vm678_vm0, %v474_v33  ;;  %2939 = vperm.xlu1 %3880, %v2917_v35  }
  0xb0   : > { %3718 = vmatmul.mubr.msk.f32.gmra.mxu0 %vm678_vm0, %v474_v33  ;;  %3230 = vperm.xlu0 %3879, %v3220_v37  }
  0xb1   : > { %3814 = vmatmul.mubr.msk.f32.gmra.mxu1 %vm678_vm0, %v474_v33  ;;  %3719 = vmatprep.mubr.msk.f32.mxu0 %vm678_vm0, %v475_v36 }
  0xb2   : > { %3815 = vmatprep.mubr.msk.f32.mxu1 %vm678_vm0, %v475_v36  ;;  %3235 = vperm.xlu1 %3880, %v3221_v38  }
  0xb4   : > { %3720 = vmatmul.mubr.msk.f32.gmra.mxu0 %vm678_vm0, %v475_v36  ;;  %2944 = vperm.xlu0 %3879, %v2918_v40  }
  0xb5   : > { %3816 = vmatmul.mubr.msk.f32.gmra.mxu1 %vm678_vm0, %v475_v36  ;;  %3721 = vmatprep.mubr.msk.f32.mxu0 %vm678_vm0, %v476_v39 }
  0xb6   : > { %3817 = vmatprep.mubr.msk.f32.mxu1 %vm678_vm0, %v476_v39  ;;  %3240 = vperm.xlu1 %3880, %v3222_v41  }
  0xb8   : > { %3722 = vmatmul.mubr.msk.f32.gmra.mxu0 %vm678_vm0, %v476_v39  ;;  %2949 = vperm.xlu0 %3879, %v2919_v43   ;;  %v596_v43 = vpop.permute.xlu0 %595 }
  0xb9   : > { %3818 = vmatmul.mubr.msk.f32.gmra.mxu1 %vm678_vm0, %v476_v39  ;;  %3723 = vmatprep.mubr.msk.f32.mxu0 %vm678_vm0, %v477_v42 }
  0xba   : > { %3819 = vmatprep.mubr.msk.f32.mxu1 %vm678_vm0, %v477_v42  ;;  %3245 = vperm.xlu1 %3880, %v3223_v4  }
  0xbc   : > { %3724 = vmatmul.mubr.msk.f32.gmra.mxu0 %vm678_vm0, %v477_v42  ;;  %2954 = vperm.xlu0 %3879, %v2920_v45   ;;  %v586_v45 = vpop.permute.xlu1 %585 }
  0xbd   : > { %3820 = vmatmul.mubr.msk.f32.gmra.mxu1 %vm678_vm0, %v477_v42  ;;  %3725 = vmatprep.mubr.msk.f32.mxu0 %vm678_vm0, %v478_v44 }
  0xbe   : > { %3821 = vmatprep.mubr.msk.f32.mxu1 %vm678_vm0, %v478_v44  ;;  %3250 = vperm.xlu1 %3880, %v3224_v46  }
  0xc0   : > { %3726 = vmatmul.mubr.msk.f32.gmra.mxu0 %vm678_vm0, %v478_v44  ;;  %2959 = vperm.xlu0 %3879, %v2921_v48  }
  0xc1   : > { %3822 = vmatmul.mubr.msk.f32.gmra.mxu1 %vm678_vm0, %v478_v44  ;;  %3727 = vmatprep.mubr.msk.f32.mxu0 %vm678_vm0, %v479_v47 }
  0xc2   : > { %3823 = vmatprep.mubr.msk.f32.mxu1 %vm678_vm0, %v479_v47  ;;  %3255 = vperm.xlu1 %3880, %v3225_v49  }
  0xc4   : > { %3728 = vmatmul.mubr.msk.f32.gmra.mxu0 %vm678_vm0, %v479_v47  ;;  %3260 = vperm.xlu0 %3879, %v3226_v51  }
  0xc5   : > { %3824 = vmatmul.mubr.msk.f32.gmra.mxu1 %vm678_vm0, %v479_v47  ;;  %3729 = vmatprep.mubr.msk.f32.mxu0 %vm678_vm0, %v480_v50 }
  0xc6   : > { %3825 = vmatprep.mubr.msk.f32.mxu1 %vm678_vm0, %v480_v50  ;;  %3265 = vperm.xlu1 %3880, %v3227_v52  }
  0xc8   : > { %3730 = vmatmul.mubr.msk.f32.gmra.mxu0 %vm678_vm0, %v480_v50  ;;  %3355 = vperm.xlu0 %3879, %v3352_v54  }
  0xc9   : > { %3826 = vmatmul.mubr.msk.f32.gmra.mxu1 %vm678_vm0, %v480_v50  ;;  %3731 = vmatprep.mubr.msk.f32.mxu0 %vm678_vm0, %v481_v53  ;;  %v591_v50 = vpop.permute.xlu0 %590 }
  0xca   : > { %3827 = vmatprep.mubr.msk.f32.mxu1 %vm678_vm0, %v481_v53 }
  0xcc   : > { %3732 = vmatmul.mubr.msk.f32.gmra.mxu0 %vm678_vm0, %v481_v53 }
  0xcd   : > { %3828 = vmatmul.mubr.msk.f32.gmra.mxu1 %vm678_vm0, %v481_v53  ;;  %3733 = vmatprep.mubr.msk.f32.mxu0 %vm678_vm0, %v482_v55  ;;  %v581_v53 = vpop.permute.xlu1 %580 }
  0xce   : > { %3829 = vmatprep.mubr.msk.f32.mxu1 %vm678_vm0, %v482_v55 }
  0xd0   : > { %3734 = vmatmul.mubr.msk.f32.gmra.mxu0 %vm678_vm0, %v482_v55 }
  0xd1   : > { %3830 = vmatmul.mubr.msk.f32.gmra.mxu1 %vm678_vm0, %v482_v55  ;;  %3735 = vmatprep.mubr.msk.f32.mxu0 %vm678_vm0, %v483_v56 }
  0xd2   : > { %3831 = vmatprep.mubr.msk.f32.mxu1 %vm678_vm0, %v483_v56 }
  0xd4   : > { %3736 = vmatmul.mubr.msk.f32.gmra.mxu0 %vm678_vm0, %v483_v56 }
  0xd5   : > { %3832 = vmatmul.mubr.msk.f32.gmra.mxu1 %vm678_vm0, %v483_v56  ;;  %3737 = vmatprep.mubr.msk.f32.mxu0 %vm678_vm0, %v484_v57 }
  0xd6   : > { %3833 = vmatprep.mubr.msk.f32.mxu1 %vm678_vm0, %v484_v57 }
  0xd8   : > { %3738 = vmatmul.mubr.msk.f32.gmra.mxu0 %vm678_vm0, %v484_v57 }
  0xd9   : > { %3834 = vmatmul.mubr.msk.f32.gmra.mxu1 %vm678_vm0, %v484_v57  ;;  %3739 = vmatprep.mubr.msk.f32.mxu0 %vm678_vm0, %v485_v58 }
  0xda   : > { %3835 = vmatprep.mubr.msk.f32.mxu1 %vm678_vm0, %v485_v58 }
  0xdc   : > { %3740 = vmatmul.mubr.msk.f32.gmra.mxu0 %vm678_vm0, %v485_v58 }
  0xdd   : > { %3836 = vmatmul.mubr.msk.f32.gmra.mxu1 %vm678_vm0, %v485_v58  ;;  %1865 = vmatprep.mubr.f32.mxu0 %v1610_v30  ;;  %v576_v58 = vpop.permute.xlu0 %575 }
  0xde   : > { %2074 = vmatprep.mubr.f32.mxu1 %v1610_v30 }
 0x120   : > { %v4702_v59 = vpop.f32.mrf.mxu0 }
 0x121   : > { %5733 = vst [vmem:[#allocation6_spill] sm:$0xff] %v4702_v59  ;;  %v4704_v60 = vpop.f32.mrf.mxu1  ;;  %v4797_v59 = vpop.permute.xlu1 %570 }
 0x122   : > { %5734 = vst [vmem:[#allocation7_spill] sm:$0xff] %v4704_v60  ;;  %v4706_v61 = vpop.f32.mrf.mxu0 }
 0x123   : > { %5735 = vst [vmem:[#allocation8_spill] sm:$0xff] %v4706_v61  ;;  %v4708_v62 = vpop.f32.mrf.mxu1 }
 0x124   : > { %5736 = vst [vmem:[#allocation9_spill] sm:$0xff] %v4708_v62  ;;  %v4710_v63 = vpop.f32.mrf.mxu0 }
 0x125   : > { %5737 = vst [vmem:[#allocation10_spill] sm:$0xff] %v4710_v63  ;;  %v4712_v0 = vpop.f32.mrf.mxu1 }
 0x126   : > { %5738 = vst [vmem:[#allocation11_spill] sm:$0xff] %v4712_v0  ;;  %v4714_v1 = vpop.f32.mrf.mxu0 }
 0x127   : > { %5739 = vst [vmem:[#allocation12_spill] sm:$0xff] %v4714_v1  ;;  %v4716_v2 = vpop.f32.mrf.mxu1 }
 0x128   : > { %5740 = vst [vmem:[#allocation13_spill] sm:$0xff] %v4716_v2  ;;  %v4718_v3 = vpop.f32.mrf.mxu0 }
 0x129   : > { %5741 = vst [vmem:[#allocation14_spill] sm:$0xff] %v4718_v3  ;;  %v4720_v5 = vpop.f32.mrf.mxu1 }
 0x12a   : > { %5742 = vst [vmem:[#allocation15_spill] sm:$0xff] %v4720_v5  ;;  %v4722_v6 = vpop.f32.mrf.mxu0  ;;  %v4799_v5 = vpop.permute.xlu0 %565 }
 0x12b   : > { %5743 = vst [vmem:[#allocation16_spill] sm:$0xff] %v4722_v6  ;;  %v4724_v7 = vpop.f32.mrf.mxu1 }
 0x12c   : > { %5744 = vst [vmem:[#allocation17_spill] sm:$0xff] %v4724_v7  ;;  %v4726_v8 = vpop.f32.mrf.mxu0 }
 0x12d   : > { %5745 = vst [vmem:[#allocation18_spill] sm:$0xff] %v4726_v8  ;;  %v4728_v9 = vpop.f32.mrf.mxu1 }
 0x12e   : > { %5746 = vst [vmem:[#allocation19_spill] sm:$0xff] %v4728_v9  ;;  %v4730_v10 = vpop.f32.mrf.mxu0 }
 0x12f   : > { %5747 = vst [vmem:[#allocation20_spill] sm:$0xff] %v4730_v10  ;;  %v4732_v11 = vpop.f32.mrf.mxu1 }
 0x130   : > { %5748 = vst [vmem:[#allocation21_spill] sm:$0xff] %v4732_v11  ;;  %v4734_v12 = vpop.f32.mrf.mxu0 }
 0x131   : > { %5749 = vst [vmem:[#allocation22_spill] sm:$0xff] %v4734_v12  ;;  %v4736_v13 = vpop.f32.mrf.mxu1  ;;  %v4805_v12 = vpop.permute.xlu1 %560 }
 0x132   : > { %5750 = vst [vmem:[#allocation23_spill] sm:$0xff] %v4736_v13  ;;  %v4738_v14 = vpop.f32.mrf.mxu0 }
 0x133   : > { %5751 = vst [vmem:[#allocation24_spill] sm:$0xff] %v4738_v14  ;;  %v4740_v15 = vpop.f32.mrf.mxu1 }
 0x134   : > { %5752 = vst [vmem:[#allocation25_spill] sm:$0xff] %v4740_v15  ;;  %v4742_v16 = vpop.f32.mrf.mxu0 }
 0x135   : > { %5753 = vst [vmem:[#allocation26_spill] sm:$0xff] %v4742_v16  ;;  %v4744_v17 = vpop.f32.mrf.mxu1 }
 0x136   : > { %5754 = vst [vmem:[#allocation27_spill] sm:$0xff] %v4744_v17  ;;  %v4746_v18 = vpop.f32.mrf.mxu0 }
 0x137   : > { %5755 = vst [vmem:[#allocation28_spill] sm:$0xff] %v4746_v18  ;;  %v4748_v19 = vpop.f32.mrf.mxu1 }
 0x138   : > { %5756 = vst [vmem:[#allocation29_spill] sm:$0xff] %v4748_v19  ;;  %v4750_v20 = vpop.f32.mrf.mxu0 }
 0x139   : > { %v4752_v21 = vpop.f32.mrf.mxu1 }
 0x13a   : > { %v4754_v22 = vpop.f32.mrf.mxu0 }
 0x13b   : > { %v4756_v23 = vpop.f32.mrf.mxu1 }
 0x13c   : > { %v4758_v24 = vpop.f32.mrf.mxu0 }
 0x13d   : > { %v4760_v25 = vpop.f32.mrf.mxu1 }
 0x13e   : > { %v4762_v26 = vpop.f32.mrf.mxu0 }
 0x13f   : > { %v4764_v27 = vpop.f32.mrf.mxu1 }
 0x140   : > { %v4766_v28 = vpop.f32.mrf.mxu0 }
 0x141   : > { %v4768_v29 = vpop.f32.mrf.mxu1 }
 0x142   : > { %v4773_v31 = vpop.f32.mrf.mxu0 }
 0x143   : > { %v4775_v32 = vpop.f32.mrf.mxu1 }
 0x144   : > { %v4777_v33 = vpop.f32.mrf.mxu0 }
 0x145   : > { %v4779_v34 = vpop.f32.mrf.mxu1 }
 0x146   : > { %v4781_v35 = vpop.f32.mrf.mxu0 }
 0x147   : > { %v4783_v36 = vpop.f32.mrf.mxu1 }
 0x148   : > { %v4785_v37 = vpop.f32.mrf.mxu0 }
 0x149   : > { %v4787_v38 = vpop.f32.mrf.mxu1 }
 0x14a   : > { %v4789_v39 = vpop.f32.mrf.mxu0 }
 0x14b   : > { %v4791_v40 = vpop.f32.mrf.mxu1 }
 0x14c   : > { %v4793_v41 = vpop.f32.mrf.mxu0 }
 0x14d   : > { %v4795_v42 = vpop.f32.mrf.mxu1 }
 0x14e   : > { %v1101_v4 = vpop.f32.mrf.mxu0 }
 0x14f   : > { %v1358_v44 = vpop.f32.mrf.mxu1 }
 0x150   : > { %v1105_v46 = vpop.f32.mrf.mxu0 }
 0x151   : > { %v1362_v47 = vpop.f32.mrf.mxu1 }
 0x152   : > { %v1107_v48 = vpop.f32.mrf.mxu0 }
 0x153   : > { %v1364_v49 = vpop.f32.mrf.mxu1 }
 0x154   : > { %v1111_v51 = vpop.f32.mrf.mxu0 }
 0x155   : > { %v1368_v52 = vpop.f32.mrf.mxu1  ;;  %v1112_v17 = vadd.f32 %v1111_v51, %v586_v45 }
 0x156   : > { %v1113_v54 = vpop.f32.mrf.mxu0  ;;  %v1369_v16 = vadd.f32 %v1368_v52, %v586_v45 }
 0x157   : > { %v1370_v55 = vpop.f32.mrf.mxu1  ;;  %v1114_v15 = vadd.f32 %v1113_v54, %v586_v45 }
 0x158   : > { %v1117_v56 = vpop.f32.mrf.mxu0  ;;  %v1371_v14 = vadd.f32 %v1370_v55, %v586_v45  ;;  %v1359_v45 = vadd.f32 %v1358_v44, %v576_v58 }
 0x159   : > { %v1374_v57 = vpop.f32.mrf.mxu1  ;;  %v1118_v8 = vadd.f32 %v1117_v56, %v591_v50  ;;  %v1106_v56 = vadd.f32 %v1105_v46, %v581_v53 }
 0x15a   : > { %v1119_v30 = vpop.f32.mrf.mxu0  ;;  %v1375_v11 = vadd.f32 %v1374_v57, %v591_v50  ;;  %v1363_v57 = vadd.f32 %v1362_v47, %v581_v53 }
 0x15b   : > { %v1376_v60 = vpop.f32.mrf.mxu1  ;;  %v1120_v3 = vadd.f32 %v1119_v30, %v591_v50  ;;  %v1537_v54 = vmax.f32 %v1118_v8, 0.0  ;;  %v1533_v8 = vmax.f32 %v1112_v17, 0.0  ;;  %v1351_v17 = vadd.f32 %v4787_v38, %v4797_v59 }
 0x15c   : > { %v1123_v62 = vpop.f32.mrf.mxu0  ;;  %v1377_v7 = vadd.f32 %v1376_v60, %v591_v50  ;;  %v1539_v55 = vmax.f32 %v1375_v11, 0.0  ;;  %v1535_v11 = vmax.f32 %v1369_v16, 0.0  ;;  %v1094_v16 = vadd.f32 %v4785_v37, %v4797_v59 }
 0x15d   : > { %v1380_v61 = vpop.f32.mrf.mxu1  ;;  %v1124_v0 = vadd.f32 %v1123_v62, %v596_v43  ;;  %v1345_v37 = vadd.f32 %v4779_v34, %v4799_v5  ;;  %v1339_v34 = vadd.f32 %v4768_v29, %v4805_v12 }
 0x15e   : > { %v1381_v63 = vadd.f32 %v1380_v61, %v596_v43  ;;  %v1125_v2 = vpop.f32.mrf.mxu0  ;;  %v1540_v50 = vmax.f32 %v1377_v7, 0.0  ;;  %v1357_v7 = vadd.f32 %v4795_v42, %v576_v58  ;;  %v1529_v42 = vmax.f32 %v1106_v56, 0.0 }
 0x15f   : > { %v1382_v1 = vpop.f32.mrf.mxu1  ;;  %v1126_v6 = vadd.f32 %v1125_v2, %v596_v43  ;;  %v1541_v19 = vmax.f32 %v1124_v0, 0.0  ;;  %v1365_v2 = vadd.f32 %v1364_v49, %v581_v53  ;;  %v1102_v0 = vadd.f32 %v1101_v4, %v576_v58 }
 0x160   : > { %v1383_v9 = vadd.f32 %v1382_v1, %v596_v43  ;;  %v4801_v10 = vpop.f32.mrf.mxu0  ;;  %v1543_v18 = vmax.f32 %v1381_v63, 0.0  ;;  %v1108_v1 = vadd.f32 %v1107_v48, %v581_v53  ;;  %v1538_v43 = vmax.f32 %v1120_v3, 0.0  ;;  %v4815_v63 = vpop.permute.xlu0 %555 }
 0x161   : > { %5757 = vst [vmem:[#allocation30_spill] sm:$0xff] %v4801_v10  ;;  %v4803_v13 = vpop.f32.mrf.mxu1  ;;  %v1542_v62 = vmax.f32 %v1126_v6, 0.0  ;;  %v1534_v48 = vmax.f32 %v1114_v15, 0.0  ;;  %v1536_v49 = vmax.f32 %v1371_v14, 0.0  ;;  %v1100_v3 = vadd.f32 %v4793_v41, %v576_v58 }
 0x162   : > { %5758 = vst [vmem:[#allocation31_spill] sm:$0xff] %v4803_v13  ;;  %v1544_v61 = vmax.f32 %v1383_v9, 0.0  ;;  %v4807_v30 = vpop.f32.mrf.mxu0  ;;  %v1096_v15 = vadd.f32 %v4789_v39, %v4797_v59  ;;  %v1353_v14 = vadd.f32 %v4791_v40, %v4797_v59  ;;  %v1532_v41 = vmax.f32 %v1365_v2, 0.0 }
 0x163   : > { %5759 = vst [vmem:[#allocation32_spill] sm:$0xff] %v4807_v30  ;;  %v4809_v60 = vpop.f32.mrf.mxu1  ;;  %1801 = vmatprep.subr.mxu0 %v1542_v62  ;;  %v1531_v4 = vmax.f32 %v1363_v57, 0.0  ;;  %v1090_v39 = vadd.f32 %v4781_v35, %v4799_v5  ;;  %v1347_v40 = vadd.f32 %v4783_v36, %v4799_v5  ;;  %v1526_v52 = vmax.f32 %v1102_v0, 0.0 }
 0x164   : > { %5760 = vst [vmem:[#allocation33_spill] sm:$0xff] %v4809_v60  ;;  %2010 = vmatprep.subr.mxu1 %v1544_v61  ;;  %v4811_v6 = vpop.f32.mrf.mxu0  ;;  %1802 = vmatpush1.msra.mxu0 %v1541_v19  ;;  %v1530_v19 = vmax.f32 %v1108_v1, 0.0  ;;  %v1528_v53 = vmax.f32 %v1359_v45, 0.0  ;;  %v1088_v59 = vadd.f32 %v4777_v33, %v4799_v5  ;;  %v1525_v38 = vmax.f32 %v1100_v3, 0.0  ;;  %v546_v35 = vpop.permute.xlu0 %545 }
 0x165   : > { %5761 = vst [vmem:[#allocation34_spill] sm:$0xff] %v4811_v6  ;;  %v4813_v9 = vpop.f32.mrf.mxu1  ;;  %2011 = vmatpush1.msra.mxu1 %v1543_v18  ;;  %1803 = vmatprep.subr.mxu0 %v1538_v43  ;;  %v4823_v18 = vpop.permute.xlu1 %550  ;;  %v1527_v58 = vmax.f32 %v1357_v7, 0.0  ;;  %v1084_v36 = vadd.f32 %v4773_v31, %v4805_v12  ;;  %v1341_v1 = vadd.f32 %v4775_v32, %v4805_v12  ;;  %v1522_v2 = vmax.f32 %v1096_v15, 0.0 }
 0x166   : > { %5762 = vst [vmem:[#allocation35_spill] sm:$0xff] %v4813_v9  ;;  %2012 = vmatprep.subr.mxu1 %v1540_v50  ;;  %v4819_v46 = vpop.f32.mrf.mxu0  ;;  %1804 = vmatpush1.msra.mxu0 %v1537_v54  ;;  %v1524_v33 = vmax.f32 %v1353_v14, 0.0  ;;  %v1082_v5 = vadd.f32 %v4766_v28, %v4805_v12  ;;  %v1521_v43 = vmax.f32 %v1094_v16, 0.0  ;;  %v1523_v50 = vmax.f32 %v1351_v17, 0.0 }
 0x167   : > { %5763 = vst [vmem:[#allocation36_spill] sm:$0xff] %v4819_v46  ;;  %v4821_v47 = vpop.f32.mrf.mxu1  ;;  %2013 = vmatpush1.msra.mxu1 %v1539_v55  ;;  %1805 = vmatprep.subr.mxu0 %v1534_v48  ;;  %v1078_v32 = vadd.f32 %v4762_v26, %v4815_v63  ;;  %v1335_v54 = vadd.f32 %v4764_v27, %v4815_v63  ;;  %v1518_v55 = vmax.f32 %v1090_v39, 0.0  ;;  %v1520_v28 = vmax.f32 %v1347_v40, 0.0 }
 0x168   : > { %5764 = vst [vmem:[#allocation37_spill] sm:$0xff] %v4821_v47  ;;  %2014 = vmatprep.subr.mxu1 %v1536_v49  ;;  %v4833_v44 = vpop.f32.mrf.mxu0  ;;  %1806 = vmatpush1.msra.mxu0 %v1533_v8  ;;  %v1076_v12 = vadd.f32 %v4758_v24, %v4815_v63  ;;  %v1333_v29 = vadd.f32 %v4760_v25, %v4815_v63  ;;  %v1517_v0 = vmax.f32 %v1088_v59, 0.0  ;;  %v1519_v45 = vmax.f32 %v1345_v37, 0.0  ;;  %v5781_v59 = vld [vmem:[#allocation24_spill] sm:$0xff] }
 0x169   : > { %5765 = vst [vmem:[#allocation38_spill] sm:$0xff] %v4833_v44  ;;  %v4835_v51 = vpop.f32.mrf.mxu1  ;;  %2015 = vmatpush1.msra.mxu1 %v1535_v11  ;;  %1807 = vmatprep.subr.mxu0 %v1530_v19  ;;  %v541_v31 = vpop.permute.xlu1 %540  ;;  %v1072_v26 = vadd.f32 %v4754_v22, %v4823_v18  ;;  %v1329_v27 = vadd.f32 %v4756_v23, %v4823_v18  ;;  %v1514_v3 = vmax.f32 %v1084_v36, 0.0  ;;  %v1516_v7 = vmax.f32 %v1341_v1, 0.0  ;;  %v5775_v23 = vld [vmem:[#allocation28_spill] sm:$0xff]  ;;  %v5776_v19 = vld [vmem:[#allocation29_spill] sm:$0xff] }
 0x16a   : > { %5766 = vst [vmem:[#allocation39_spill] sm:$0xff] %v4835_v51  ;;  %2016 = vmatprep.subr.mxu1 %v1532_v41  ;;  %v4845_v62 = vpop.f32.mrf.mxu0  ;;  %1808 = vmatpush1.msra.mxu0 %v1529_v42  ;;  %v1070_v24 = vadd.f32 %v4750_v20, %v4823_v18  ;;  %v1327_v25 = vadd.f32 %v4752_v21, %v4823_v18  ;;  %v1513_v63 = vmax.f32 %v1082_v5, 0.0  ;;  %v1515_v8 = vmax.f32 %v1339_v34, 0.0  ;;  %v536_v22 = vpop.permute.xlu0 %535  ;;  %v5777_v20 = vld [vmem:[#allocation26_spill] sm:$0xff]  ;;  %v5778_v21 = vld [vmem:[#allocation27_spill] sm:$0xff] }
 0x16b   : > { %5767 = vst [vmem:[#allocation40_spill] sm:$0xff] %v4845_v62  ;;  %v4847_v61 = vpop.f32.mrf.mxu1  ;;  %2017 = vmatpush1.msra.mxu1 %v1531_v4  ;;  %1809 = vmatprep.subr.mxu0 %v1526_v52  ;;  %v1066_v14 = vadd.f32 %v5775_v23, %v546_v35  ;;  %v1323_v41 = vadd.f32 %v5776_v19, %v546_v35  ;;  %v1510_v16 = vmax.f32 %v1078_v32, 0.0  ;;  %v1512_v17 = vmax.f32 %v1335_v54, 0.0  ;;  %v5787_v54 = vld [vmem:[#allocation20_spill] sm:$0xff]  ;;  %v5794_v19 = vld [vmem:[#allocation17_spill] sm:$0xff] }
 0x16c   : > { %5768 = vst [vmem:[#allocation41_spill] sm:$0xff] %v4847_v61  ;;  %2018 = vmatprep.subr.mxu1 %v1528_v53  ;;  %v4857_v56 = vpop.f32.mrf.mxu0  ;;  %1810 = vmatpush1.msra.mxu0 %v1525_v38  ;;  %v1064_v42 = vadd.f32 %v5777_v20, %v546_v35  ;;  %v1321_v18 = vadd.f32 %v5778_v21, %v546_v35  ;;  %v1509_v4 = vmax.f32 %v1076_v12, 0.0  ;;  %v1511_v39 = vmax.f32 %v1333_v29, 0.0  ;;  %v5782_v38 = vld [vmem:[#allocation25_spill] sm:$0xff]  ;;  %v5784_v35 = vld [vmem:[#allocation23_spill] sm:$0xff] }
 0x16d   : > { %5769 = vst [vmem:[#allocation42_spill] sm:$0xff] %v4857_v56  ;;  %v4859_v57 = vpop.f32.mrf.mxu1  ;;  %2019 = vmatpush1.msra.mxu1 %v1527_v58  ;;  %1811 = vmatprep.subr.mxu0 %v1522_v2  ;;  %v531_v53 = vpop.permute.xlu1 %530  ;;  %v1060_v37 = vadd.f32 %v5781_v59, %v541_v31  ;;  %v1317_v58 = vadd.f32 %v5782_v38, %v541_v31  ;;  %v1506_v36 = vmax.f32 %v1072_v26, 0.0  ;;  %v1508_v1 = vmax.f32 %v1329_v27, 0.0  ;;  %v5783_v2 = vld [vmem:[#allocation22_spill] sm:$0xff]  ;;  %v5790_v27 = vld [vmem:[#allocation19_spill] sm:$0xff]  ;;  %v5798_v38 = vld [vmem:[#allocation12_spill] sm:$0xff] }
 0x16e   : > { %5770 = vst [vmem:[#allocation43_spill] sm:$0xff] %v4859_v57  ;;  %2020 = vmatprep.subr.mxu1 %v1524_v33  ;;  %v4869_v48 = vpop.f32.mrf.mxu0  ;;  %1812 = vmatpush1.msra.mxu0 %v1521_v43  ;;  %v1058_v33 = vadd.f32 %v5783_v2, %v541_v31  ;;  %v1315_v5 = vadd.f32 %v5784_v35, %v541_v31  ;;  %v1505_v34 = vmax.f32 %v1070_v24, 0.0  ;;  %v1507_v43 = vmax.f32 %v1327_v25, 0.0  ;;  %v5800_v35 = vld [vmem:[#allocation10_spill] sm:$0xff] }
 0x16f   : > { %5771 = vst [vmem:[#allocation44_spill] sm:$0xff] %v4869_v48  ;;  %v4871_v49 = vpop.f32.mrf.mxu1  ;;  %2021 = vmatpush1.msra.mxu1 %v1523_v50  ;;  %1813 = vmatprep.subr.mxu0 %v1518_v55  ;;  %v1054_v55 = vadd.f32 %v5787_v54, %v536_v22  ;;  %v1502_v29 = vmax.f32 %v1066_v14, 0.0  ;;  %v1309_v31 = vadd.f32 %v5790_v27, %v536_v22 }
 0x170   : > { %5772 = vst [vmem:[#allocation45_spill] sm:$0xff] %v4871_v49  ;;  %2022 = vmatprep.subr.mxu1 %v1520_v28  ;;  %v4881_v11 = vpop.f32.mrf.mxu0  ;;  %1814 = vmatpush1.msra.mxu0 %v1517_v0  ;;  %v5788_v28 = vld [vmem:[#allocation21_spill] sm:$0xff]  ;;  %v1504_v0 = vmax.f32 %v1323_v41, 0.0  ;;  %v1305_v14 = vadd.f32 %v5794_v19, %v531_v53  ;;  %v1498_v41 = vmax.f32 %v1060_v37, 0.0  ;;  %v1497_v21 = vmax.f32 %v1058_v33, 0.0 }
 0x171   : > { %5773 = vst [vmem:[#allocation46_spill] sm:$0xff] %v4881_v11  ;;  %v4883_v15 = vpop.f32.mrf.mxu1  ;;  %2023 = vmatpush1.msra.mxu1 %v1519_v45  ;;  %1815 = vmatprep.subr.mxu0 %v1514_v3  ;;  %v1311_v12 = vadd.f32 %v5788_v28, %v536_v22  ;;  %v5789_v45 = vld [vmem:[#allocation18_spill] sm:$0xff]  ;;  %v1501_v3 = vmax.f32 %v1064_v42, 0.0  ;;  %v521_v59 = vpop.permute.xlu1 %520 }
 0x172   : > { %5774 = vst [vmem:[#allocation47_spill] sm:$0xff] %v4883_v15  ;;  %2024 = vmatprep.subr.mxu1 %v1516_v7  ;;  %v4889_v40 = vpop.f32.mrf.mxu0  ;;  %1816 = vmatpush1.msra.mxu0 %v1513_v63  ;;  %v1052_v26 = vadd.f32 %v5789_v45, %v536_v22  ;;  %v1503_v7 = vmax.f32 %v1321_v18, 0.0  ;;  %v526_v63 = vpop.permute.xlu0 %525  ;;  %v5796_v22 = vld [vmem:[#allocation15_spill] sm:$0xff]  ;;  %v1499_v18 = vmax.f32 %v1315_v5, 0.0  ;;  %v5803_v45 = vld [vmem:[#allocation9_spill] sm:$0xff] }
 0x173   : > { %5779 = vst [vmem:[#allocation28_spill] sm:$0xff] %v4889_v40  ;;  %v4891_v52 = vpop.f32.mrf.mxu1  ;;  %2025 = vmatpush1.msra.mxu1 %v1515_v8  ;;  %1817 = vmatprep.subr.mxu0 %v1510_v16  ;;  %v5793_v8 = vld [vmem:[#allocation16_spill] sm:$0xff]  ;;  %v1500_v16 = vmax.f32 %v1317_v58, 0.0  ;;  %v1303_v42 = vadd.f32 %v5796_v22, %v531_v53  ;;  %v1494_v58 = vmax.f32 %v1054_v55, 0.0  ;;  %v1496_v2 = vmax.f32 %v1311_v12, 0.0 }
 0x174   : > { %5780 = vst [vmem:[#allocation29_spill] sm:$0xff] %v4891_v52  ;;  %2026 = vmatprep.subr.mxu1 %v1512_v17  ;;  %v4897_v50 = vpop.f32.mrf.mxu0  ;;  %1818 = vmatpush1.msra.mxu0 %v1509_v4  ;;  %v1048_v23 = vadd.f32 %v5793_v8, %v531_v53  ;;  %v5795_v17 = vld [vmem:[#allocation14_spill] sm:$0xff]  ;;  %v1493_v5 = vmax.f32 %v1052_v26, 0.0  ;;  %v1293_v27 = vadd.f32 %v5803_v45, %v521_v59  ;;  %v1492_v12 = vmax.f32 %v1305_v14, 0.0  ;;  %v5805_v8 = vld [vmem:[#allocation7_spill] sm:$0xff] }
 0x175   : > { %5785 = vst [vmem:[#allocation26_spill] sm:$0xff] %v4897_v50  ;;  %v4899_v32 = vpop.f32.mrf.mxu1  ;;  %2027 = vmatpush1.msra.mxu1 %v1511_v39  ;;  %1819 = vmatprep.subr.mxu0 %v1506_v36  ;;  %v1046_v20 = vadd.f32 %v5795_v17, %v531_v53  ;;  %v1042_v36 = vadd.f32 %v5798_v38, %v526_v63  ;;  %v5801_v53 = vld [vmem:[#allocation11_spill] sm:$0xff] }
 0x176   : > { %5786 = vst [vmem:[#allocation27_spill] sm:$0xff] %v4899_v32  ;;  %2028 = vmatprep.subr.mxu1 %v1508_v1  ;;  %v4905_v24 = vpop.f32.mrf.mxu0  ;;  %1820 = vmatpush1.msra.mxu0 %v1505_v34  ;;  %v5799_v1 = vld [vmem:[#allocation13_spill] sm:$0xff]  ;;  %v1040_v34 = vadd.f32 %v5800_v35, %v526_v63  ;;  %v1297_v33 = vadd.f32 %v5801_v53, %v526_v63  ;;  %v1490_v55 = vmax.f32 %v1048_v23, 0.0  ;;  %v676_v45 = vpop.permute.xlu0 %675 }
 0x177   : > { %5791 = vst [vmem:[#allocation24_spill] sm:$0xff] %v4905_v24  ;;  %v4907_v25 = vpop.f32.mrf.mxu1  ;;  %2029 = vmatpush1.msra.mxu1 %v1507_v43  ;;  %1821 = vmatprep.subr.mxu0 %v1502_v29  ;;  %v1299_v37 = vadd.f32 %v5799_v1, %v526_v63  ;;  %v1495_v43 = vmax.f32 %v1309_v31, 0.0  ;;  %v5802_v29 = vld [vmem:[#allocation8_spill] sm:$0xff]  ;;  %v1291_v63 = vadd.f32 %v5805_v8, %v521_v59  ;;  %v1489_v26 = vmax.f32 %v1046_v20, 0.0 }
 0x178   : > { %5792 = vst [vmem:[#allocation25_spill] sm:$0xff] %v4907_v25  ;;  %2030 = vmatprep.subr.mxu1 %v1504_v0  ;;  %v4913_v4 = vpop.f32.mrf.mxu0  ;;  %1822 = vmatpush1.msra.mxu0 %v1501_v3  ;;  %v1036_v0 = vadd.f32 %v5802_v29, %v521_v59  ;;  %v5804_v3 = vld [vmem:[#allocation6_spill] sm:$0xff]  ;;  %v1491_v31 = vmax.f32 %v1303_v42, 0.0  ;;  %v1485_v23 = vmax.f32 %v1040_v34, 0.0  ;;  %v1487_v14 = vmax.f32 %v1297_v33, 0.0 }
 0x179   : > { %v4915_v39 = vpop.f32.mrf.mxu1  ;;  %2031 = vmatpush1.msra.mxu1 %v1503_v7  ;;  %1823 = vmatprep.subr.mxu0 %v1498_v41  ;;  %v1034_v7 = vadd.f32 %v5804_v3, %v521_v59  ;;  %v1488_v17 = vmax.f32 %v1299_v37, 0.0  ;;  %v1484_v42 = vmax.f32 %v1293_v27, 0.0  ;;  %v1483_v59 = vmax.f32 %v1291_v63, 0.0 }
 0x17a   : > { %5797 = vst [vmem:[#allocation22_spill] sm:$0xff] %v4915_v39  ;;  %2032 = vmatprep.subr.mxu1 %v1500_v16  ;;  %v4921_v54 = vpop.f32.mrf.mxu0  ;;  %1824 = vmatpush1.msra.mxu0 %v1497_v21  ;;  %v1486_v16 = vmax.f32 %v1042_v36, 0.0  ;;  %v1482_v20 = vmax.f32 %v1036_v0, 0.0 }
 0x17b   : > { %v4923_v28 = vpop.f32.mrf.mxu1  ;;  %2033 = vmatpush1.msra.mxu1 %v1499_v18  ;;  %1825 = vmatprep.subr.mxu0 %v1494_v58  ;;  %v1481_v18 = vmax.f32 %v1034_v7, 0.0 }
 0x17c   : > { %2034 = vmatprep.subr.mxu1 %v1496_v2  ;;  %v4929_v19 = vpop.f32.mrf.mxu0  ;;  %1826 = vmatpush1.msra.mxu0 %v1493_v5 }
 0x17d   : > { %v4931_v41 = vpop.f32.mrf.mxu1  ;;  %2035 = vmatpush1.msra.mxu1 %v1495_v43  ;;  %1827 = vmatprep.subr.mxu0 %v1490_v55 }
 0x17e   : > { %2036 = vmatprep.subr.mxu1 %v1492_v12  ;;  %v4933_v22 = vpop.f32.mrf.mxu0  ;;  %1828 = vmatpush1.msra.mxu0 %v1489_v26  ;;  %v671_v12 = vpop.permute.xlu1 %670 }
 0x17f   : > { %v4935_v21 = vpop.f32.mrf.mxu1  ;;  %2037 = vmatpush1.msra.mxu1 %v1491_v31  ;;  %1829 = vmatprep.subr.mxu0 %v1486_v16  ;;  %v666_v26 = vpop.permute.xlu0 %665 }
 0x180   : > { %2038 = vmatprep.subr.mxu1 %v1488_v17  ;;  %v4937_v38 = vpop.f32.mrf.mxu0  ;;  %1830 = vmatpush1.msra.mxu0 %v1485_v23 }
 0x181   : > { %v4939_v36 = vpop.f32.mrf.mxu1  ;;  %2039 = vmatpush1.msra.mxu1 %v1487_v14  ;;  %1831 = vmatprep.subr.mxu0 %v1482_v20 }
 0x182   : > { %2040 = vmatprep.subr.mxu1 %v1484_v42  ;;  %v4941_v1 = vpop.f32.mrf.mxu0  ;;  %1832 = vmatpush1.msra.mxu0 %v1481_v18  ;;  %v661_v17 = vpop.permute.xlu1 %660 }
 0x183   : > { %v4943_v37 = vpop.f32.mrf.mxu1  ;;  %2041 = vmatpush1.msra.mxu1 %v1483_v59  ;;  %v656_v18 = vpop.permute.xlu0 %655 }
 0x184   : > { %v4945_v58 = vpop.f32.mrf.mxu0 }
 0x185   : > { %v4947_v2 = vpop.f32.mrf.mxu1 }
 0x186   : > { %v4949_v35 = vpop.f32.mrf.mxu0  ;;  %v651_v10 = vpop.permute.xlu1 %650 }
 0x187   : > { %v4951_v34 = vpop.f32.mrf.mxu1  ;;  %v646_v57 = vpop.permute.xlu0 %645 }
 0x188   : > { %v4953_v53 = vpop.f32.mrf.mxu0 }
 0x189   : > { %v4955_v33 = vpop.f32.mrf.mxu1 }
 0x18a   : > { %v4957_v5 = vpop.f32.mrf.mxu0  ;;  %v4965_v40 = vpop.permute.xlu1 %640 }
 0x18b   : > { %v4959_v43 = vpop.f32.mrf.mxu1 }
 0x18c   : > { %v4961_v29 = vpop.f32.mrf.mxu0 }
 0x18d   : > { %v4963_v0 = vpop.f32.mrf.mxu1 }
 0x18e   : > { %v1197_v27 = vpop.f32.mrf.mxu0 }
 0x18f   : > { %v1454_v55 = vpop.f32.mrf.mxu1 }
 0x190   : > { %v1201_v3 = vpop.f32.mrf.mxu0 }
 0x191   : > { %v1458_v7 = vpop.f32.mrf.mxu1 }
 0x192   : > { %v1203_v8 = vpop.f32.mrf.mxu0 }
 0x193   : > { %v1460_v63 = vpop.f32.mrf.mxu1 }
 0x194   : > { %v1207_v31 = vpop.f32.mrf.mxu0  ;;  %v1461_v24 = vadd.f32 %v1460_v63, %v661_v17 }
 0x195   : > { %v1464_v16 = vpop.f32.mrf.mxu1  ;;  %v1208_v32 = vadd.f32 %v1207_v31, %v666_v26 }
 0x196   : > { %v1209_v23 = vpop.f32.mrf.mxu0  ;;  %v1465_v50 = vadd.f32 %v1464_v16, %v666_v26 }
 0x197   : > { %v1466_v14 = vpop.f32.mrf.mxu1  ;;  %v1210_v48 = vadd.f32 %v1209_v23, %v666_v26 }
 0x198   : > { %v1213_v20 = vpop.f32.mrf.mxu0  ;;  %v1467_v15 = vadd.f32 %v1466_v14, %v666_v26 }
 0x199   : > { %v1470_v42 = vpop.f32.mrf.mxu1  ;;  %v1214_v56 = vadd.f32 %v1213_v20, %v671_v12  ;;  %v5806_v20 = vld [vmem:[#allocation22_spill] sm:$0xff] }
 0x19a   : > { %v1215_v59 = vpop.f32.mrf.mxu0  ;;  %v1471_v49 = vadd.f32 %v1470_v42, %v671_v12  ;;  %v1600_v23 = vmax.f32 %v1467_v15, 0.0  ;;  %v1190_v15 = vadd.f32 %v4953_v53, %v651_v10 }
 0x19b   : > { %v1472_v13 = vpop.f32.mrf.mxu1  ;;  %v1216_v51 = vadd.f32 %v1215_v59, %v671_v12 }
 0x19c   : > { %v1219_v60 = vpop.f32.mrf.mxu0  ;;  %v1473_v44 = vadd.f32 %v1472_v13, %v671_v12  ;;  %v1202_v13 = vadd.f32 %v1201_v3, %v661_v17  ;;  %v1598_v12 = vmax.f32 %v1210_v48, 0.0  ;;  %v631_v48 = vpop.permute.xlu1 %630 }
 0x19d   : > { %v1476_v30 = vpop.f32.mrf.mxu1  ;;  %v1220_v9 = vadd.f32 %v1219_v60, %v676_v45  ;;  %v1602_v39 = vmax.f32 %v1216_v51, 0.0  ;;  %v1453_v51 = vadd.f32 %v4963_v0, %v656_v18  ;;  %v1423_v42 = vadd.f32 %v5806_v20, %v631_v48  ;;  %v5826_v20 = vld [vmem:[#allocation35_spill] sm:$0xff] }
 0x19e   : > { %v1477_v6 = vadd.f32 %v1476_v30, %v676_v45  ;;  %v1221_v47 = vpop.f32.mrf.mxu0  ;;  %v1204_v30 = vadd.f32 %v1203_v8, %v661_v17  ;;  %v1604_v59 = vmax.f32 %v1473_v44, 0.0  ;;  %v1597_v44 = vmax.f32 %v1208_v32, 0.0 }
 0x19f   : > { %v1478_v46 = vpop.f32.mrf.mxu1  ;;  %v1222_v61 = vadd.f32 %v1221_v47, %v676_v45  ;;  %v1605_v25 = vmax.f32 %v1220_v9, 0.0  ;;  %v1601_v47 = vmax.f32 %v1214_v56, 0.0  ;;  %v636_v9 = vpop.permute.xlu0 %635  ;;  %v1192_v56 = vadd.f32 %v4957_v5, %v651_v10 }
 0x1a0   : > { %v1479_v62 = vadd.f32 %v1478_v46, %v676_v45  ;;  %v1607_v60 = vmax.f32 %v1477_v6, 0.0  ;;  %v1459_v46 = vadd.f32 %v1458_v7, %v661_v17  ;;  %v1603_v45 = vmax.f32 %v1471_v49, 0.0  ;;  %v621_v26 = vpop.permute.xlu1 %620 }
 0x1a1   : > { %v1606_v11 = vmax.f32 %v1222_v61, 0.0  ;;  %v1198_v61 = vadd.f32 %v1197_v27, %v656_v18  ;;  %v1196_v6 = vadd.f32 %v4961_v29, %v656_v18  ;;  %v1449_v49 = vadd.f32 %v4959_v43, %v651_v10 }
 0x1a2   : > { %v1608_v52 = vmax.f32 %v1479_v62, 0.0  ;;  %v1455_v62 = vadd.f32 %v1454_v55, %v656_v18  ;;  %v1593_v29 = vmax.f32 %v1202_v13, 0.0  ;;  %v1595_v27 = vmax.f32 %v1459_v46, 0.0  ;;  %v5809_v46 = vld [vmem:[#allocation26_spill] sm:$0xff] }
 0x1a3   : > { %1833 = vmatprep.subr.mxu0 %v1606_v11  ;;  %v1599_v11 = vmax.f32 %v1465_v50, 0.0  ;;  %v1186_v50 = vadd.f32 %v4949_v35, %v646_v57  ;;  %v1443_v32 = vadd.f32 %v4951_v34, %v646_v57  ;;  %v1590_v5 = vmax.f32 %v1198_v61, 0.0  ;;  %v626_v3 = vpop.permute.xlu0 %625 }
 0x1a4   : > { %2042 = vmatprep.subr.mxu1 %v1608_v52  ;;  %1834 = vmatpush2.msra.mxu0 %v1605_v25  ;;  %v1594_v52 = vmax.f32 %v1204_v30, 0.0  ;;  %v1596_v25 = vmax.f32 %v1461_v24, 0.0  ;;  %v1592_v0 = vmax.f32 %v1455_v62, 0.0  ;;  %v1184_v24 = vadd.f32 %v4945_v58, %v646_v57  ;;  %v5808_v30 = vld [vmem:[#allocation25_spill] sm:$0xff] }
 0x1a5   : > { %2043 = vmatpush2.msra.mxu1 %v1607_v60  ;;  %1835 = vmatprep.subr.mxu0 %v1602_v39  ;;  %v1447_v39 = vadd.f32 %v4955_v33, %v651_v10  ;;  %v1441_v43 = vadd.f32 %v4947_v2, %v646_v57  ;;  %v1589_v55 = vmax.f32 %v1196_v6, 0.0  ;;  %v1591_v53 = vmax.f32 %v1453_v51, 0.0 }
 0x1a6   : > { %2044 = vmatprep.subr.mxu1 %v1604_v59  ;;  %1836 = vmatpush2.msra.mxu0 %v1601_v47  ;;  %v1180_v10 = vadd.f32 %v4941_v1, %v4965_v40  ;;  %v1437_v35 = vadd.f32 %v4943_v37, %v4965_v40  ;;  %v1586_v33 = vmax.f32 %v1192_v56, 0.0  ;;  %v1588_v34 = vmax.f32 %v1449_v49, 0.0  ;;  %v5813_v56 = vld [vmem:[#allocation46_spill] sm:$0xff] }
 0x1a7   : > { %2045 = vmatpush2.msra.mxu1 %v1603_v45  ;;  %1837 = vmatprep.subr.mxu0 %v1598_v12  ;;  %v1178_v58 = vadd.f32 %v4937_v38, %v4965_v40  ;;  %v1435_v57 = vadd.f32 %v4939_v36, %v4965_v40  ;;  %v1585_v2 = vmax.f32 %v1190_v15, 0.0  ;;  %v1587_v7 = vmax.f32 %v1447_v39, 0.0  ;;  %v5810_v45 = vld [vmem:[#allocation27_spill] sm:$0xff]  ;;  %v5811_v12 = vld [vmem:[#allocation28_spill] sm:$0xff] }
 0x1a8   : > { %2046 = vmatprep.subr.mxu1 %v1600_v23  ;;  %1838 = vmatpush2.msra.mxu0 %v1597_v44  ;;  %v1174_v1 = vadd.f32 %v4933_v22, %v636_v9  ;;  %v1431_v8 = vadd.f32 %v4935_v21, %v636_v9  ;;  %v1582_v37 = vmax.f32 %v1186_v50, 0.0  ;;  %v1584_v63 = vmax.f32 %v1443_v32, 0.0  ;;  %v5815_v39 = vld [vmem:[#allocation44_spill] sm:$0xff] }
 0x1a9   : > { %2047 = vmatpush2.msra.mxu1 %v1599_v11  ;;  %1839 = vmatprep.subr.mxu0 %v1594_v52  ;;  %v1172_v31 = vadd.f32 %v4929_v19, %v636_v9  ;;  %v1429_v38 = vadd.f32 %v4931_v41, %v636_v9  ;;  %v1581_v16 = vmax.f32 %v1184_v24, 0.0  ;;  %v1583_v17 = vmax.f32 %v1441_v43, 0.0  ;;  %v5807_v41 = vld [vmem:[#allocation24_spill] sm:$0xff]  ;;  %v5812_v9 = vld [vmem:[#allocation29_spill] sm:$0xff]  ;;  %v611_v11 = vpop.permute.xlu1 %610  ;;  %v5814_v52 = vld [vmem:[#allocation47_spill] sm:$0xff] }
 0x1aa   : > { %2048 = vmatprep.subr.mxu1 %v1596_v25  ;;  %1840 = vmatpush2.msra.mxu0 %v1593_v29  ;;  %v1168_v40 = vadd.f32 %v4921_v54, %v631_v48  ;;  %v1425_v36 = vadd.f32 %v4923_v28, %v631_v48  ;;  %v1578_v22 = vmax.f32 %v1180_v10, 0.0  ;;  %v1580_v14 = vmax.f32 %v1437_v35, 0.0  ;;  %v616_v28 = vpop.permute.xlu0 %615  ;;  %v5818_v43 = vld [vmem:[#allocation43_spill] sm:$0xff]  ;;  %v5819_v35 = vld [vmem:[#allocation40_spill] sm:$0xff] }
 0x1ab   : > { %2049 = vmatpush2.msra.mxu1 %v1595_v27  ;;  %1841 = vmatprep.subr.mxu0 %v1590_v5  ;;  %v1166_v21 = vadd.f32 %v4913_v4, %v631_v48  ;;  %v1577_v18 = vmax.f32 %v1178_v58, 0.0  ;;  %v1579_v19 = vmax.f32 %v1435_v57, 0.0  ;;  %v1162_v60 = vadd.f32 %v5807_v41, %v626_v3  ;;  %v5816_v27 = vld [vmem:[#allocation45_spill] sm:$0xff]  ;;  %v5827_v41 = vld [vmem:[#allocation32_spill] sm:$0xff] }
 0x1ac   : > { %2050 = vmatprep.subr.mxu1 %v1592_v0  ;;  %1842 = vmatpush2.msra.mxu0 %v1589_v55  ;;  %v1419_v59 = vadd.f32 %v5808_v30, %v626_v3  ;;  %v1574_v13 = vmax.f32 %v1174_v1, 0.0  ;;  %v1576_v54 = vmax.f32 %v1431_v8, 0.0  ;;  %v1160_v47 = vadd.f32 %v5809_v46, %v626_v3  ;;  %v5817_v0 = vld [vmem:[#allocation42_spill] sm:$0xff]  ;;  %v5822_v8 = vld [vmem:[#allocation39_spill] sm:$0xff]  ;;  %v5828_v30 = vld [vmem:[#allocation33_spill] sm:$0xff] }
 0x1ad   : > { %2051 = vmatpush2.msra.mxu1 %v1591_v53  ;;  %1843 = vmatprep.subr.mxu0 %v1586_v33  ;;  %v1417_v61 = vadd.f32 %v5810_v45, %v626_v3  ;;  %v1573_v4 = vmax.f32 %v1172_v31, 0.0  ;;  %v1575_v62 = vmax.f32 %v1429_v38, 0.0  ;;  %v1156_v23 = vadd.f32 %v5811_v12, %v621_v26  ;;  %v5823_v31 = vld [vmem:[#allocation36_spill] sm:$0xff] }
 0x1ae   : > { %2052 = vmatprep.subr.mxu1 %v1588_v34  ;;  %1844 = vmatpush2.msra.mxu0 %v1585_v2  ;;  %v1413_v6 = vadd.f32 %v5812_v9, %v621_v26  ;;  %v1570_v51 = vmax.f32 %v1168_v40, 0.0  ;;  %v1572_v44 = vmax.f32 %v1425_v36, 0.0  ;;  %v1154_v49 = vadd.f32 %v5813_v56, %v621_v26  ;;  %v5820_v34 = vld [vmem:[#allocation41_spill] sm:$0xff]  ;;  %v606_v2 = vpop.permute.xlu0 %605  ;;  %v1609_v56 = vld [vmem:[%s5713_s3] sm:$0xff] }
 0x1af   : > { %2053 = vmatpush2.msra.mxu1 %v1587_v7  ;;  %1845 = vmatprep.subr.mxu0 %v1582_v37  ;;  %v1411_v25 = vadd.f32 %v5814_v52, %v621_v26  ;;  %v1569_v48 = vmax.f32 %v1166_v21, 0.0  ;;  %v1571_v15 = vmax.f32 %v1423_v42, 0.0  ;;  %v1150_v29 = vadd.f32 %v5815_v39, %v616_v28  ;;  %v5821_v7 = vld [vmem:[#allocation38_spill] sm:$0xff] }
 0x1b0   : > { %2054 = vmatprep.subr.mxu1 %v1584_v63  ;;  %1846 = vmatpush2.msra.mxu0 %v1581_v16  ;;  %v1407_v50 = vadd.f32 %v5816_v27, %v616_v28  ;;  %v1566_v32 = vmax.f32 %v1162_v60, 0.0  ;;  %v1568_v5 = vmax.f32 %v1419_v59, 0.0  ;;  %v1148_v24 = vadd.f32 %v5817_v0, %v616_v28  ;;  %v5824_v16 = vld [vmem:[#allocation37_spill] sm:$0xff]  ;;  %v1617_v27 = vld [vmem:[%s5713_s3 + $0x40] sm:$0xff] }
 0x1b1   : > { %2055 = vmatpush2.msra.mxu1 %v1583_v17  ;;  %1847 = vmatprep.subr.mxu0 %v1578_v22  ;;  %v1405_v55 = vadd.f32 %v5818_v43, %v616_v28  ;;  %v1565_v53 = vmax.f32 %v1160_v47, 0.0  ;;  %v1567_v10 = vmax.f32 %v1417_v61, 0.0  ;;  %v1144_v33 = vadd.f32 %v5819_v35, %v611_v11  ;;  %v601_v22 = vpop.permute.xlu1 %600  ;;  %v5829_v28 = vld [vmem:[#allocation30_spill] sm:$0xff]  ;;  %v5830_v47 = vld [vmem:[#allocation31_spill] sm:$0xff] }
 0x1b2   : > { %2056 = vmatprep.subr.mxu1 %v1580_v14  ;;  %1848 = vmatpush2.msra.mxu0 %v1577_v18  ;;  %v1401_v3 = vadd.f32 %v5820_v34, %v611_v11  ;;  %v1562_v58 = vmax.f32 %v1156_v23, 0.0  ;;  %v1564_v57 = vmax.f32 %v1413_v6, 0.0  ;;  %v1142_v1 = vadd.f32 %v5821_v7, %v611_v11  ;;  %v5825_v14 = vld [vmem:[#allocation34_spill] sm:$0xff]  ;;  %v1621_v0 = vld [vmem:[%s5713_s3 + $0x60] sm:$0xff] }
 0x1b3   : > { %2057 = vmatpush2.msra.mxu1 %v1579_v19  ;;  %1849 = vmatprep.subr.mxu0 %v1574_v13  ;;  %v1399_v37 = vadd.f32 %v5822_v8, %v611_v11  ;;  %v1561_v63 = vmax.f32 %v1154_v49, 0.0  ;;  %v1563_v26 = vmax.f32 %v1411_v25, 0.0  ;;  %v1138_v38 = vadd.f32 %v5823_v31, %v606_v2  ;;  %v1612_v49 = vld [vmem:[%s5713_s3 + $0x18] sm:$0xff]  ;;  %v1611_v52 = vld [vmem:[%s5713_s3 + $0x10] sm:$0xff]  ;;  %v1614_v25 = vld [vmem:[%s5713_s3 + $0x28] sm:$0xff] }
 0x1b4   : > { %2058 = vmatprep.subr.mxu1 %v1576_v54  ;;  %1850 = vmatpush2.msra.mxu0 %v1573_v4  ;;  %v1395_v17 = vadd.f32 %v5824_v16, %v606_v2  ;;  %v1558_v40 = vmax.f32 %v1150_v29, 0.0  ;;  %v1560_v36 = vmax.f32 %v1407_v50, 0.0  ;;  %v1136_v21 = vadd.f32 %v5825_v14, %v606_v2  ;;  %v1615_v39 = vld [vmem:[%s5713_s3 + $0x30] sm:$0xff]  ;;  %v1618_v29 = vld [vmem:[%s5713_s3 + $0x48] sm:$0xff]  ;;  %v1620_v50 = vld [vmem:[%s5713_s3 + $0x58] sm:$0xff] }
 0x1b5   : > { %2059 = vmatpush2.msra.mxu1 %v1575_v62  ;;  %1851 = vmatprep.subr.mxu0 %v1570_v51  ;;  %v1393_v42 = vadd.f32 %v5826_v20, %v606_v2  ;;  %v1557_v18 = vmax.f32 %v1148_v24, 0.0  ;;  %v1559_v19 = vmax.f32 %v1405_v55, 0.0  ;;  %v1132_v60 = vadd.f32 %v5827_v41, %v601_v22  ;;  %v1624_v24 = vld [vmem:[%s5713_s3 + $0x78] sm:$0xff]  ;;  %v1623_v43 = vld [vmem:[%s5713_s3 + $0x70] sm:$0xff]  ;;  %v1626_v55 = vld [vmem:[%s5713_s3 + $0x88] sm:$0xff] }
 0x1b6   : > { %2060 = vmatprep.subr.mxu1 %v1572_v44  ;;  %1852 = vmatpush2.msra.mxu0 %v1569_v48  ;;  %v1389_v59 = vadd.f32 %v5828_v30, %v601_v22  ;;  %v1554_v13 = vmax.f32 %v1144_v33, 0.0  ;;  %v1556_v54 = vmax.f32 %v1401_v3, 0.0  ;;  %v1130_v46 = vadd.f32 %v5829_v28, %v601_v22  ;;  %v1613_v48 = vld [vmem:[%s5713_s3 + $0x20] sm:$0xff]  ;;  %v1627_v35 = vld [vmem:[%s5713_s3 + $0x90] sm:$0xff]  ;;  %v1630_v33 = vld [vmem:[%s5713_s3 + $0xa8] sm:$0xff] }
 0x1b7   : > { %2061 = vmatpush2.msra.mxu1 %v1571_v15  ;;  %1853 = vmatprep.subr.mxu0 %v1566_v32  ;;  %v1387_v45 = vadd.f32 %v5830_v47, %v601_v22  ;;  %v1553_v61 = vmax.f32 %v1142_v1, 0.0  ;;  %v1555_v4 = vmax.f32 %v1399_v37, 0.0  ;;  %v1550_v62 = vmax.f32 %v1138_v38, 0.0  ;;  %v1616_v15 = vld [vmem:[%s5713_s3 + $0x38] sm:$0xff]  ;;  %v1619_v32 = vld [vmem:[%s5713_s3 + $0x50] sm:$0xff]  ;;  %v1629_v34 = vld [vmem:[%s5713_s3 + $0xa0] sm:$0xff] }
 0x1b8   : > { %2062 = vmatprep.subr.mxu1 %v1568_v5  ;;  %1854 = vmatpush2.msra.mxu0 %v1565_v53  ;;  %v1552_v12 = vmax.f32 %v1395_v17, 0.0  ;;  %v1549_v23 = vmax.f32 %v1136_v21, 0.0  ;;  %v1551_v9 = vmax.f32 %v1393_v42, 0.0  ;;  %v1546_v6 = vmax.f32 %v1132_v60, 0.0  ;;  %v1622_v5 = vld [vmem:[%s5713_s3 + $0x68] sm:$0xff]  ;;  %v1625_v53 = vld [vmem:[%s5713_s3 + $0x80] sm:$0xff] }
 0x1b9   : > { %2063 = vmatpush2.msra.mxu1 %v1567_v10  ;;  %1855 = vmatprep.subr.mxu0 %v1562_v58  ;;  %v1548_v51 = vmax.f32 %v1389_v59, 0.0  ;;  %v1545_v44 = vmax.f32 %v1130_v46, 0.0  ;;  %v1547_v11 = vmax.f32 %v1387_v45, 0.0  ;;  %v1628_v10 = vld [vmem:[%s5713_s3 + $0x98] sm:$0xff]  ;;  %v1631_v58 = vld [vmem:[%s5713_s3 + $0xb0] sm:$0xff]  ;;  %v1633_v2 = vld [vmem:[%s5713_s3 + $0xc0] sm:$0xff]  ;;  %v1684_v46 = vpop.permute.xlu0 %1683 }
 0x1ba   : > { %2064 = vmatprep.subr.mxu1 %v1564_v57  ;;  %1856 = vmatpush2.msra.mxu0 %v1561_v63  ;;  %v1632_v3 = vld [vmem:[%s5713_s3 + $0xb8] sm:$0xff]  ;;  %v1634_v57 = vld [vmem:[%s5713_s3 + $0xc8] sm:$0xff]  ;;  %v1635_v1 = vld [vmem:[%s5713_s3 + $0xd0] sm:$0xff] }
 0x1bb   : > { %2065 = vmatpush2.msra.mxu1 %v1563_v26  ;;  %1857 = vmatprep.subr.mxu0 %v1558_v40  ;;  %v1636_v7 = vld [vmem:[%s5713_s3 + $0xd8] sm:$0xff]  ;;  %v1638_v8 = vld [vmem:[%s5713_s3 + $0xe8] sm:$0xff]  ;;  %v1637_v37 = vld [vmem:[%s5713_s3 + $0xe0] sm:$0xff] }
 0x1bc   : > { %2066 = vmatprep.subr.mxu1 %v1560_v36  ;;  %1858 = vmatpush2.msra.mxu0 %v1557_v18  ;;  %v1640_v63 = vld [vmem:[%s5713_s3 + $0xf8] sm:$0xff]  ;;  %v1639_v26 = vld [vmem:[%s5713_s3 + $0xf0] sm:$0xff]  ;;  %v1642_v31 = vld [vmem:[%s5713_s3 + $0x108] sm:$0xff] }
 0x1bd   : > { %2067 = vmatpush2.msra.mxu1 %v1559_v19  ;;  %1859 = vmatprep.subr.mxu0 %v1554_v13  ;;  %v1641_v38 = vld [vmem:[%s5713_s3 + $0x100] sm:$0xff]  ;;  %v1644_v16 = vld [vmem:[%s5713_s3 + $0x118] sm:$0xff]  ;;  %v1643_v17 = vld [vmem:[%s5713_s3 + $0x110] sm:$0xff] }
 0x1be   : > { %2068 = vmatprep.subr.mxu1 %v1556_v54  ;;  %1860 = vmatpush2.msra.mxu0 %v1553_v61  ;;  %v1646_v40 = vld [vmem:[%s5713_s3 + $0x128] sm:$0xff]  ;;  %v1645_v36 = vld [vmem:[%s5713_s3 + $0x120] sm:$0xff]  ;;  %v1648_v22 = vld [vmem:[%s5713_s3 + $0x138] sm:$0xff] }
 0x1bf   : > { %2069 = vmatpush2.msra.mxu1 %v1555_v4  ;;  %1861 = vmatprep.subr.mxu0 %v1550_v62  ;;  %v1647_v14 = vld [vmem:[%s5713_s3 + $0x130] sm:$0xff]  ;;  %v1650_v21 = vld [vmem:[%s5713_s3 + $0x148] sm:$0xff]  ;;  %v1649_v20 = vld [vmem:[%s5713_s3 + $0x140] sm:$0xff] }
 0x1c0   : > { %2070 = vmatprep.subr.mxu1 %v1552_v12  ;;  %1862 = vmatpush2.msra.mxu0 %v1549_v23  ;;  %v1652_v42 = vld [vmem:[%s5713_s3 + $0x158] sm:$0xff]  ;;  %v1651_v18 = vld [vmem:[%s5713_s3 + $0x150] sm:$0xff]  ;;  %v1654_v19 = vld [vmem:[%s5713_s3 + $0x168] sm:$0xff]  ;;  %v5722_v23 = vmov 0.0  }
 0x1c1   : > { %2071 = vmatpush2.msra.mxu1 %v1551_v9  ;;  %1863 = vmatprep.subr.mxu0 %v1546_v6  ;;  %v1653_v41 = vld [vmem:[%s5713_s3 + $0x160] sm:$0xff]  ;;  %v1656_v60 = vld [vmem:[%s5713_s3 + $0x178] sm:$0xff]  ;;  %v1655_v30 = vld [vmem:[%s5713_s3 + $0x170] sm:$0xff]  ;;  %v5160_v9 = vpop.permute.xlu0 %1723 }
 0x1c2   : > { %2072 = vmatprep.subr.mxu1 %v1548_v51  ;;  %1864 = vmatpush2.msra.mxu0 %v1545_v44 }
 0x1c3   : > { %2073 = vmatpush2.msra.mxu1 %v1547_v11  ;;  %1866 = vmatmul.mubr.f32.vlgmr.msra.gmra.mxu0 %v1609_v56 }
 0x1c4   : > { %2075 = vmatmul.mubr.f32.vlgmr.msra.gmra.mxu1 %v1609_v56  ;;  %1871 = vmatprep.mubr.f32.mxu0 %v1612_v49 }
 0x1c5   : > { %2080 = vmatprep.mubr.f32.mxu1 %v1612_v49 }
 0x1c7   : > { %1872 = vmatmul.mubr.f32.gmra.mxu0 %v1611_v52 }
 0x1c8   : > { %2081 = vmatmul.mubr.f32.gmra.mxu1 %v1611_v52  ;;  %1877 = vmatprep.mubr.f32.mxu0 %v1614_v25  ;;  %v1694_v52 = vpop.permute.xlu0 %1693 }
 0x1c9   : > { %2086 = vmatprep.mubr.f32.mxu1 %v1614_v25 }
 0x1cb   : > { %1878 = vmatmul.mubr.f32.gmra.mxu0 %v1613_v48 }
 0x1cc   : > { %2087 = vmatmul.mubr.f32.gmra.mxu1 %v1613_v48  ;;  %1883 = vmatprep.mubr.f32.mxu0 %v1616_v15 }
 0x1cd   : > { %2092 = vmatprep.mubr.f32.mxu1 %v1616_v15  ;;  %v1689_v15 = vpop.permute.xlu1 %1688 }
 0x1cf   : > { %1884 = vmatmul.mubr.f32.gmra.mxu0 %v1615_v39 }
 0x1d0   : > { %2093 = vmatmul.mubr.f32.gmra.mxu1 %v1615_v39  ;;  %1889 = vmatprep.mubr.f32.mxu0 %v1618_v29 }
 0x1d1   : > { %2098 = vmatprep.mubr.f32.mxu1 %v1618_v29 }
 0x1d3   : > { %1890 = vmatmul.mubr.f32.gmra.mxu0 %v1617_v27 }
 0x1d4   : > { %2099 = vmatmul.mubr.f32.gmra.mxu1 %v1617_v27  ;;  %1895 = vmatprep.mubr.f32.mxu0 %v1620_v50 }
 0x1d5   : > { %2104 = vmatprep.mubr.f32.mxu1 %v1620_v50 }
 0x1d7   : > { %1896 = vmatmul.mubr.f32.gmra.mxu0 %v1619_v32 }
 0x1d8   : > { %2105 = vmatmul.mubr.f32.gmra.mxu1 %v1619_v32  ;;  %1901 = vmatprep.mubr.f32.mxu0 %v1622_v5  ;;  %v1699_v32 = vpop.permute.xlu0 %1698 }
 0x1d9   : > { %2110 = vmatprep.mubr.f32.mxu1 %v1622_v5 }
 0x1db   : > { %1902 = vmatmul.mubr.f32.gmra.mxu0 %v1621_v0 }
 0x1dc   : > { %2111 = vmatmul.mubr.f32.gmra.mxu1 %v1621_v0  ;;  %1907 = vmatprep.mubr.f32.mxu0 %v1624_v24 }
 0x1dd   : > { %2116 = vmatprep.mubr.f32.mxu1 %v1624_v24  ;;  %v1729_v24 = vpop.permute.xlu1 %1728 }
 0x1df   : > { %1908 = vmatmul.mubr.f32.gmra.mxu0 %v1623_v43 }
 0x1e0   : > { %2117 = vmatmul.mubr.f32.gmra.mxu1 %v1623_v43  ;;  %1913 = vmatprep.mubr.f32.mxu0 %v1626_v55 }
 0x1e1   : > { %2122 = vmatprep.mubr.f32.mxu1 %v1626_v55 }
 0x1e3   : > { %1914 = vmatmul.mubr.f32.gmra.mxu0 %v1625_v53 }
 0x1e4   : > { %2123 = vmatmul.mubr.f32.gmra.mxu1 %v1625_v53  ;;  %1919 = vmatprep.mubr.f32.mxu0 %v1628_v10 }
 0x1e5   : > { %2128 = vmatprep.mubr.f32.mxu1 %v1628_v10 }
 0x1e7   : > { %1920 = vmatmul.mubr.f32.gmra.mxu0 %v1627_v35 }
 0x1e8   : > { %2129 = vmatmul.mubr.f32.gmra.mxu1 %v1627_v35  ;;  %1925 = vmatprep.mubr.f32.mxu0 %v1630_v33  ;;  %v1704_v35 = vpop.permute.xlu0 %1703 }
 0x1e9   : > { %2134 = vmatprep.mubr.f32.mxu1 %v1630_v33 }
 0x1eb   : > { %1926 = vmatmul.mubr.f32.gmra.mxu0 %v1629_v34 }
 0x1ec   : > { %2135 = vmatmul.mubr.f32.gmra.mxu1 %v1629_v34  ;;  %1931 = vmatprep.mubr.f32.mxu0 %v1632_v3 }
 0x1ed   : > { %2140 = vmatprep.mubr.f32.mxu1 %v1632_v3  ;;  %v1734_v3 = vpop.permute.xlu1 %1733 }
 0x1ef   : > { %1932 = vmatmul.mubr.f32.gmra.mxu0 %v1631_v58 }
 0x1f0   : > { %2141 = vmatmul.mubr.f32.gmra.mxu1 %v1631_v58  ;;  %1937 = vmatprep.mubr.f32.mxu0 %v1634_v57 }
 0x1f1   : > { %2146 = vmatprep.mubr.f32.mxu1 %v1634_v57 }
 0x1f3   : > { %1938 = vmatmul.mubr.f32.gmra.mxu0 %v1633_v2 }
 0x1f4   : > { %2147 = vmatmul.mubr.f32.gmra.mxu1 %v1633_v2  ;;  %1943 = vmatprep.mubr.f32.mxu0 %v1636_v7 }
 0x1f5   : > { %2152 = vmatprep.mubr.f32.mxu1 %v1636_v7 }
 0x1f7   : > { %1944 = vmatmul.mubr.f32.gmra.mxu0 %v1635_v1 }
 0x1f8   : > { %2153 = vmatmul.mubr.f32.gmra.mxu1 %v1635_v1  ;;  %1949 = vmatprep.mubr.f32.mxu0 %v1638_v8  ;;  %v1709_v1 = vpop.permute.xlu0 %1708 }
 0x1f9   : > { %2158 = vmatprep.mubr.f32.mxu1 %v1638_v8 }
 0x1fb   : > { %1950 = vmatmul.mubr.f32.gmra.mxu0 %v1637_v37 }
 0x1fc   : > { %2159 = vmatmul.mubr.f32.gmra.mxu1 %v1637_v37  ;;  %1955 = vmatprep.mubr.f32.mxu0 %v1640_v63 }
 0x1fd   : > { %2164 = vmatprep.mubr.f32.mxu1 %v1640_v63  ;;  %v5170_v63 = vpop.permute.xlu1 %1738 }
 0x1ff   : > { %1956 = vmatmul.mubr.f32.gmra.mxu0 %v1639_v26 }
 0x200   : > { %2165 = vmatmul.mubr.f32.gmra.mxu1 %v1639_v26  ;;  %1961 = vmatprep.mubr.f32.mxu0 %v1642_v31 }
 0x201   : > { %2170 = vmatprep.mubr.f32.mxu1 %v1642_v31 }
 0x203   : > { %1962 = vmatmul.mubr.f32.gmra.mxu0 %v1641_v38 }
 0x204   : > { %2171 = vmatmul.mubr.f32.gmra.mxu1 %v1641_v38  ;;  %1967 = vmatprep.mubr.f32.mxu0 %v1644_v16 }
 0x205   : > { %2176 = vmatprep.mubr.f32.mxu1 %v1644_v16 }
 0x207   : > { %1968 = vmatmul.mubr.f32.gmra.mxu0 %v1643_v17 }
 0x208   : > { %2177 = vmatmul.mubr.f32.gmra.mxu1 %v1643_v17  ;;  %1973 = vmatprep.mubr.f32.mxu0 %v1646_v40 }
 0x209   : > { %2182 = vmatprep.mubr.f32.mxu1 %v1646_v40 }
 0x20b   : > { %1974 = vmatmul.mubr.f32.gmra.mxu0 %v1645_v36 }
 0x20c   : > { %2183 = vmatmul.mubr.f32.gmra.mxu1 %v1645_v36  ;;  %1979 = vmatprep.mubr.f32.mxu0 %v1648_v22 }
 0x20d   : > { %2188 = vmatprep.mubr.f32.mxu1 %v1648_v22 }
 0x20f   : > { %1980 = vmatmul.mubr.f32.gmra.mxu0 %v1647_v14 }
 0x210   : > { %2189 = vmatmul.mubr.f32.gmra.mxu1 %v1647_v14  ;;  %1985 = vmatprep.mubr.f32.mxu0 %v1650_v21 }
 0x211   : > { %2194 = vmatprep.mubr.f32.mxu1 %v1650_v21 }
 0x213   : > { %1986 = vmatmul.mubr.f32.gmra.mxu0 %v1649_v20 }
 0x214   : > { %2195 = vmatmul.mubr.f32.gmra.mxu1 %v1649_v20  ;;  %1991 = vmatprep.mubr.f32.mxu0 %v1652_v42 }
 0x215   : > { %2200 = vmatprep.mubr.f32.mxu1 %v1652_v42 }
 0x217   : > { %1992 = vmatmul.mubr.f32.gmra.mxu0 %v1651_v18 }
 0x218   : > { %2201 = vmatmul.mubr.f32.gmra.mxu1 %v1651_v18  ;;  %1997 = vmatprep.mubr.f32.mxu0 %v1654_v19 }
 0x219   : > { %2206 = vmatprep.mubr.f32.mxu1 %v1654_v19 }
 0x21b   : > { %1998 = vmatmul.mubr.f32.gmra.mxu0 %v1653_v41 }
 0x21c   : > { %2207 = vmatmul.mubr.f32.gmra.mxu1 %v1653_v41  ;;  %2003 = vmatprep.mubr.f32.mxu0 %v1656_v60 }
 0x21d   : > { %2212 = vmatprep.mubr.f32.mxu1 %v1656_v60 }
 0x21f   : > { %2004 = vmatmul.mubr.f32.gmra.mxu0 %v1655_v30 }
 0x220   : > { %2213 = vmatmul.mubr.f32.gmra.mxu1 %v1655_v30  ;;  %2584 = vmatprep.mubr.f32.mxu0 %v5722_v23 }
 0x221   : > { %2745 = vmatprep.mubr.f32.mxu1 %v5722_v23 }
 0x283   : > { %v1867_v59 = vpop.f32.mrf.mxu0 }
 0x284   : > { %v2076_v13 = vpop.f32.mrf.mxu1  ;;  %v1868_v26 = vadd.f32 %v1867_v59, %v1684_v46 }
 0x285   : > { %v1869_v54 = vpop.f32.mrf.mxu0  ;;  %v2077_v31 = vadd.f32 %v2076_v13, %v1684_v46 }
 0x286   : > { %v2078_v28 = vpop.f32.mrf.mxu1  ;;  %v1870_v38 = vadd.f32 %v1869_v54, %v1684_v46  ;;  %v1714_v54 = vpop.permute.xlu0 %1713 }
 0x287   : > { %v1873_v47 = vpop.f32.mrf.mxu0  ;;  %v2079_v16 = vadd.f32 %v2078_v28, %v1684_v46 }
 0x288   : > { %v2082_v45 = vpop.f32.mrf.mxu1  ;;  %v1874_v17 = vadd.f32 %v1873_v47, %v1689_v15 }
 0x289   : > { %v1875_v61 = vpop.f32.mrf.mxu0  ;;  %v2083_v40 = vadd.f32 %v2082_v45, %v1689_v15 }
 0x28a   : > { %v2084_v4 = vpop.f32.mrf.mxu1  ;;  %v1876_v36 = vadd.f32 %v1875_v61, %v1689_v15 }
 0x28b   : > { %v1879_v62 = vpop.f32.mrf.mxu0  ;;  %v2085_v22 = vadd.f32 %v2084_v4, %v1689_v15 }
 0x28c   : > { %v2088_v12 = vpop.f32.mrf.mxu1  ;;  %v1880_v20 = vadd.f32 %v1879_v62, %v1694_v52 }
 0x28d   : > { %v1881_v6 = vpop.f32.mrf.mxu0  ;;  %v2089_v42 = vadd.f32 %v2088_v12, %v1694_v52 }
 0x28e   : > { %v2090_v51 = vpop.f32.mrf.mxu1  ;;  %v1882_v18 = vadd.f32 %v1881_v6, %v1694_v52 }
 0x28f   : > { %v1885_v44 = vpop.f32.mrf.mxu0  ;;  %v2091_v19 = vadd.f32 %v2090_v51, %v1694_v52 }
 0x290   : > { %v2094_v11 = vpop.f32.mrf.mxu1  ;;  %v1886_v41 = vadd.f32 %v1885_v44, %v1699_v32  ;;  %v1744_v44 = vpop.permute.xlu1 %1743 }
 0x291   : > { %v1887_v56 = vpop.f32.mrf.mxu0  ;;  %v2095_v60 = vadd.f32 %v2094_v11, %v1699_v32 }
 0x292   : > { %v2096_v49 = vpop.f32.mrf.mxu1  ;;  %v5172_v30 = vadd.f32 %v1887_v56, %v1699_v32 }
 0x293   : > { %v1891_v25 = vpop.f32.mrf.mxu0  ;;  %v5174_v23 = vadd.f32 %v2096_v49, %v1699_v32 }
 0x294   : > { %v2100_v48 = vpop.f32.mrf.mxu1  ;;  %v5176_v28 = vadd.f32 %v1891_v25, %v1704_v35 }
 0x295   : > { %v1893_v39 = vpop.f32.mrf.mxu0  ;;  %v5178_v46 = vadd.f32 %v2100_v48, %v1704_v35 }
 0x296   : > { %v2102_v29 = vpop.f32.mrf.mxu1  ;;  %v5180_v47 = vadd.f32 %v1893_v39, %v1704_v35 }
 0x297   : > { %v1897_v27 = vpop.f32.mrf.mxu0  ;;  %v5182_v45 = vadd.f32 %v2102_v29, %v1704_v35 }
 0x298   : > { %v2106_v50 = vpop.f32.mrf.mxu1  ;;  %v5184_v61 = vadd.f32 %v1897_v27, %v1709_v1 }
 0x299   : > { %v1899_v5 = vpop.f32.mrf.mxu0  ;;  %v5186_v4 = vadd.f32 %v2106_v50, %v1709_v1 }
 0x29a   : > { %v2108_v0 = vpop.f32.mrf.mxu1  ;;  %v5188_v11 = vadd.f32 %v1899_v5, %v1709_v1 }
 0x29b   : > { %v1903_v43 = vpop.f32.mrf.mxu0  ;;  %v5190_v56 = vadd.f32 %v2108_v0, %v1709_v1 }
 0x29c   : > { %v2112_v55 = vpop.f32.mrf.mxu1  ;;  %v5192_v49 = vadd.f32 %v1903_v43, %v1714_v54 }
 0x29d   : > { %v1905_v53 = vpop.f32.mrf.mxu0  ;;  %v5194_v52 = vadd.f32 %v2112_v55, %v1714_v54 }
 0x29e   : > { %v2114_v10 = vpop.f32.mrf.mxu1  ;;  %v5200_v0 = vadd.f32 %v1905_v53, %v1714_v54  ;;  %v1749_v53 = vpop.permute.xlu1 %1748 }
 0x29f   : > { %v5162_v33 = vpop.f32.mrf.mxu0  ;;  %5831 = vst [vmem:[#allocation23_spill] sm:$0xff] %v5194_v52  ;;  %v5202_v43 = vadd.f32 %v2114_v10, %v1714_v54 }
 0x2a0   : > { %v5164_v34 = vpop.f32.mrf.mxu1 }
 0x2a1   : > { %v5166_v58 = vpop.f32.mrf.mxu0 }
 0x2a2   : > { %v5168_v57 = vpop.f32.mrf.mxu1 }
 0x2a3   : > { %v1915_v2 = vpop.f32.mrf.mxu0 }
 0x2a4   : > { %v2124_v7 = vpop.f32.mrf.mxu1  ;;  %v1916_v25 = vadd.f32 %v1915_v2, %v5160_v9 }
 0x2a5   : > { %v1917_v8 = vpop.f32.mrf.mxu0  ;;  %v2125_v48 = vadd.f32 %v2124_v7, %v5160_v9 }
 0x2a6   : > { %v2126_v37 = vpop.f32.mrf.mxu1  ;;  %v1918_v50 = vadd.f32 %v1917_v8, %v5160_v9 }
 0x2a7   : > { %v1921_v14 = vpop.f32.mrf.mxu0  ;;  %v2127_v32 = vadd.f32 %v2126_v37, %v5160_v9  ;;  %v2221_v8 = vmul.f32 %v2125_v48, %v2077_v31 }
 0x2a8   : > { %v2130_v21 = vpop.f32.mrf.mxu1  ;;  %v1922_v62 = vadd.f32 %v1921_v14, %v1729_v24 }
 0x2a9   : > { %v1923_v59 = vpop.f32.mrf.mxu0  ;;  %v2131_v12 = vadd.f32 %v2130_v21, %v1729_v24  ;;  %v2222_v10 = vmul.f32 %v2127_v32, %v2079_v16 }
 0x2aa   : > { %v2132_v13 = vpop.f32.mrf.mxu1  ;;  %v1924_v15 = vadd.f32 %v1923_v59, %v1729_v24  ;;  %v2223_v55 = vmul.f32 %v1922_v62, %v1874_v17 }
 0x2ab   : > { %v1927_v6 = vpop.f32.mrf.mxu0  ;;  %v2133_v39 = vadd.f32 %v2132_v13, %v1729_v24  ;;  %v2225_v1 = vmul.f32 %v2131_v12, %v2083_v40  ;;  %v2219_v13 = vmul.f32 %v1916_v25, %v1868_v26 }
 0x2ac   : > { %v2136_v51 = vpop.f32.mrf.mxu1  ;;  %v1928_v5 = vadd.f32 %v1927_v6, %v1734_v3  ;;  %v2224_v52 = vmul.f32 %v1924_v15, %v1876_v36 }
 0x2ad   : > { %v1929_v29 = vpop.f32.mrf.mxu0  ;;  %v2137_v35 = vadd.f32 %v2136_v51, %v1734_v3  ;;  %v2226_v9 = vmul.f32 %v2133_v39, %v2085_v22  ;;  %v2220_v51 = vmul.f32 %v1918_v50, %v1870_v38  ;;  %v2251_v40 = vadd.f32 %v2223_v55, %v2219_v13 }
 0x2ae   : > { %v2138_v27 = vpop.f32.mrf.mxu1  ;;  %v1930_v21 = vadd.f32 %v1929_v29, %v1734_v3  ;;  %v2227_v54 = vmul.f32 %v1928_v5, %v1880_v20  ;;  %v2277_v62 = vadd.f32 %v2225_v1, %v2221_v8  ;;  %v1719_v20 = vpop.permute.xlu0 %1718 }
 0x2af   : > { %v1933_v14 = vpop.f32.mrf.mxu0  ;;  %v2139_v7 = vadd.f32 %v2138_v27, %v1734_v3  ;;  %v2229_v17 = vmul.f32 %v2137_v35, %v2089_v42  ;;  %v2264_v22 = vadd.f32 %v2224_v52, %v2220_v51  ;;  %v2290_v25 = vadd.f32 %v2226_v9, %v2222_v10  ;;  %v1754_v52 = vpop.permute.xlu1 %1753 }
 0x2b0   : > { %v2142_v2 = vpop.f32.mrf.mxu1  ;;  %v1934_v24 = vadd.f32 %v1933_v14, %v5170_v63  ;;  %v2228_v14 = vmul.f32 %v1930_v21, %v1882_v18  ;;  %v2252_v42 = vadd.f32 %v2251_v40, %v2227_v54  ;;  %v1910_v5 = vadd.f32 %v5162_v33, %v1719_v20 }
 0x2b1   : > { %v2143_v59 = vadd.f32 %v2142_v2, %v5170_v63  ;;  %v1935_v37 = vpop.f32.mrf.mxu0  ;;  %v2230_v26 = vmul.f32 %v2139_v7, %v2091_v19  ;;  %v2278_v39 = vadd.f32 %v2277_v62, %v2229_v17 }
 0x2b2   : > { %v2144_v6 = vpop.f32.mrf.mxu1  ;;  %v1936_v12 = vadd.f32 %v1935_v37, %v5170_v63  ;;  %v2231_v31 = vmul.f32 %v1934_v24, %v1886_v41  ;;  %v2265_v35 = vadd.f32 %v2264_v22, %v2228_v14 }
 0x2b3   : > { %v2145_v3 = vadd.f32 %v2144_v6, %v5170_v63  ;;  %v1939_v29 = vpop.f32.mrf.mxu0  ;;  %v2233_v36 = vmul.f32 %v2143_v59, %v2095_v60  ;;  %v2119_v63 = vadd.f32 %v5164_v34, %v1719_v20  ;;  %v2291_v55 = vadd.f32 %v2290_v25, %v2230_v26 }
 0x2b4   : > { %v2148_v27 = vpop.f32.mrf.mxu1  ;;  %v1940_v48 = vadd.f32 %v1939_v29, %v1744_v44  ;;  %v2232_v18 = vmul.f32 %v1936_v12, %v5172_v30  ;;  %v2253_v1 = vadd.f32 %v2252_v42, %v2231_v31 }
 0x2b5   : > { %v2149_v15 = vadd.f32 %v2148_v27, %v1744_v44  ;;  %v1941_v38 = vpop.f32.mrf.mxu0  ;;  %v2234_v19 = vmul.f32 %v2145_v3, %v5174_v23  ;;  %v2279_v2 = vadd.f32 %v2278_v39, %v2233_v36  ;;  %v1759_v3 = vpop.permute.xlu1 %1758  ;;  %v5832_v27 = vld [vmem:[#allocation23_spill] sm:$0xff] }
 0x2b6   : > { %v2150_v16 = vpop.f32.mrf.mxu1  ;;  %v1942_v50 = vadd.f32 %v1941_v38, %v1744_v44  ;;  %v2235_v21 = vmul.f32 %v1940_v48, %v5176_v28  ;;  %v2266_v8 = vadd.f32 %v2265_v35, %v2232_v18 }
 0x2b7   : > { %v2151_v32 = vadd.f32 %v2150_v16, %v1744_v44  ;;  %v1945_v41 = vpop.f32.mrf.mxu0  ;;  %v2237_v7 = vmul.f32 %v2149_v15, %v5178_v46  ;;  %v2292_v9 = vadd.f32 %v2291_v55, %v2234_v19 }
 0x2b8   : > { %v2154_v60 = vpop.f32.mrf.mxu1  ;;  %v1946_v44 = vadd.f32 %v1945_v41, %v1749_v53  ;;  %v2236_v34 = vmul.f32 %v1942_v50, %v5180_v47  ;;  %v1912_v47 = vadd.f32 %v5166_v58, %v1719_v20  ;;  %v2254_v40 = vadd.f32 %v2253_v1, %v2235_v21 }
 0x2b9   : > { %v2155_v24 = vadd.f32 %v2154_v60, %v1749_v53  ;;  %v1947_v33 = vpop.f32.mrf.mxu0  ;;  %v2238_v30 = vmul.f32 %v2151_v32, %v5182_v45  ;;  %v2121_v45 = vadd.f32 %v5168_v57, %v1719_v20 }
 0x2ba   : > { %v2156_v59 = vpop.f32.mrf.mxu1  ;;  %v1948_v23 = vadd.f32 %v1947_v33, %v1749_v53  ;;  %v2239_v37 = vmul.f32 %v1946_v44, %v5184_v61  ;;  %v2267_v61 = vadd.f32 %v2266_v8, %v2236_v34 }
 0x2bb   : > { %v2157_v13 = vadd.f32 %v2156_v59, %v1749_v53  ;;  %v2241_v6 = vmul.f32 %v2155_v24, %v5186_v4  ;;  %v1951_v51 = vpop.f32.mrf.mxu0  ;;  %v2280_v53 = vadd.f32 %v2279_v2, %v2237_v7  ;;  %v2293_v29 = vadd.f32 %v2292_v9, %v2238_v30 }
 0x2bc   : > { %v2160_v28 = vpop.f32.mrf.mxu1  ;;  %v2240_v46 = vmul.f32 %v1948_v23, %v5188_v11  ;;  %v1952_v54 = vadd.f32 %v1951_v51, %v1754_v52  ;;  %v2255_v11 = vadd.f32 %v2254_v40, %v2239_v37 }
 0x2bd   : > { %v2242_v10 = vmul.f32 %v2157_v13, %v5190_v56  ;;  %v2161_v17 = vadd.f32 %v2160_v28, %v1754_v52  ;;  %v1953_v62 = vpop.f32.mrf.mxu0  ;;  %v2281_v26 = vadd.f32 %v2280_v53, %v2241_v6 }
 0x2be   : > { %v2162_v12 = vpop.f32.mrf.mxu1  ;;  %v2243_v4 = vmul.f32 %v1952_v54, %v5192_v49  ;;  %v1954_v56 = vadd.f32 %v1953_v62, %v1754_v52  ;;  %v2268_v58 = vadd.f32 %v2267_v61, %v2240_v46 }
 0x2bf   : > { %v2245_v14 = vmul.f32 %v2161_v17, %v5832_v27  ;;  %v2163_v31 = vadd.f32 %v2162_v12, %v1754_v52  ;;  %v1957_v36 = vpop.f32.mrf.mxu0  ;;  %v2294_v25 = vadd.f32 %v2293_v29, %v2242_v10 }
 0x2c0   : > { %v2166_v22 = vpop.f32.mrf.mxu1  ;;  %v1958_v57 = vadd.f32 %v1957_v36, %v1759_v3  ;;  %v2256_v15 = vadd.f32 %v2255_v11, %v2243_v4  ;;  %v2244_v16 = vmul.f32 %v1954_v56, %v5200_v0 }
 0x2c1   : > { %v2167_v48 = vadd.f32 %v2166_v22, %v1759_v3  ;;  %v2282_v38 = vadd.f32 %v2281_v26, %v2245_v14  ;;  %v2246_v20 = vmul.f32 %v2163_v31, %v5202_v43  ;;  %v1959_v42 = vpop.f32.mrf.mxu0 }
 0x2c2   : > { %v2168_v49 = vpop.f32.mrf.mxu1  ;;  %v2247_v39 = vmul.f32 %v1958_v57, %v1910_v5  ;;  %v1960_v32 = vadd.f32 %v1959_v42, %v1759_v3  ;;  %v2269_v19 = vadd.f32 %v2268_v58, %v2244_v16 }
 0x2c3   : > { %v2249_v50 = vmul.f32 %v2167_v48, %v2119_v63  ;;  %v2169_v18 = vadd.f32 %v2168_v49, %v1759_v3  ;;  %v2295_v41 = vadd.f32 %v2294_v25, %v2246_v20  ;;  %v5226_v60 = vpop.f32.mrf.mxu0  ;;  %v1799_v49 = vpop.permute.xlu0 %1798 }
 0x2c4   : > { %v5228_v52 = vpop.f32.mrf.mxu1  ;;  %v2257_v35 = vadd.f32 %v2256_v15, %v2247_v39  ;;  %v2248_v1 = vmul.f32 %v1960_v32, %v1912_v47  ;;  %v1794_v39 = vpop.permute.xlu1 %1793 }
 0x2c5   : > { %v2283_v55 = vadd.f32 %v2282_v38, %v2249_v50  ;;  %v2250_v2 = vmul.f32 %v2169_v18, %v2121_v45  ;;  %v5230_v21 = vpop.f32.mrf.mxu0 }
 0x2c6   : > { %v5232_v0 = vpop.f32.mrf.mxu1  ;;  %v2258_v43 = vrot.slane %v2257_v35, 4  ;;  %v2270_v5 = vadd.f32 %v2269_v19, %v2248_v1 }
 0x2c7   : > { %v2284_v7 = vrot.slane %v2283_v55, 4  ;;  %v2296_v63 = vadd.f32 %v2295_v41, %v2250_v2  ;;  %v5234_v44 = vpop.f32.mrf.mxu0 }
 0x2c8   : > { %v5236_v24 = vpop.f32.mrf.mxu1  ;;  %v2259_v33 = vadd.f32 %v2258_v43, %v2257_v35  ;;  %v2271_v34 = vrot.slane %v2270_v5, 4  ;;  %v1789_v43 = vpop.permute.xlu0 %1788 }
 0x2c9   : > { %v2285_v59 = vadd.f32 %v2284_v7, %v2283_v55  ;;  %v2297_v30 = vrot.slane %v2296_v63, 4  ;;  %v5238_v23 = vpop.f32.mrf.mxu0  ;;  %v1784_v7 = vpop.permute.xlu1 %1783 }
 0x2ca   : > { %v5240_v13 = vpop.f32.mrf.mxu1  ;;  %v2260_v8 = vrot.slane %v2259_v33, 2  ;;  %v2272_v37 = vadd.f32 %v2271_v34, %v2270_v5 }
 0x2cb   : > { %v2286_v9 = vrot.slane %v2285_v59, 2  ;;  %v2298_v6 = vadd.f32 %v2297_v30, %v2296_v63  ;;  %v5242_v51 = vpop.f32.mrf.mxu0 }
 0x2cc   : > { %v5244_v28 = vpop.f32.mrf.mxu1  ;;  %v2261_v46 = vadd.f32 %v2260_v8, %v2259_v33  ;;  %v2273_v54 = vrot.slane %v2272_v37, 2  ;;  %v1779_v34 = vpop.permute.xlu0 %1778 }
 0x2cd   : > { %v2287_v10 = vadd.f32 %v2286_v9, %v2285_v59  ;;  %v2299_v17 = vrot.slane %v2298_v6, 2  ;;  %v5246_v47 = vpop.f32.mrf.mxu0  ;;  %v5260_v30 = vpop.permute.xlu1 %1773 }
 0x2ce   : > { %v5248_v45 = vpop.f32.mrf.mxu1  ;;  %v2262_v40 = vrot.slane %v2261_v46, 1  ;;  %v2274_v62 = vadd.f32 %v2273_v54, %v2272_v37 }
 0x2cf   : > { %v2288_v53 = vrot.slane %v2287_v10, 1  ;;  %v2300_v12 = vadd.f32 %v2299_v17, %v2298_v6  ;;  %v1981_v27 = vpop.f32.mrf.mxu0 }
 0x2d0   : > { %v2263_v3 = vadd.f32 %v2262_v40, %v2261_v46  ;;  %v2275_v29 = vrot.slane %v2274_v62, 1  ;;  %v5250_v14 = vpop.f32.mrf.mxu1  ;;  %v5262_v37 = vpop.permute.xlu0 %1768 }
 0x2d1   : > { %v2289_v61 = vadd.f32 %v2288_v53, %v2287_v10  ;;  %v2301_v4 = vrot.slane %v2300_v12, 1  ;;  %v1983_v58 = vpop.f32.mrf.mxu0  ;;  %v5264_v6 = vpop.permute.xlu1 %1763 }
 0x2d2   : > { %v3603_v11 = vmul.f32 -1.442695, %v2263_v3  ;;  %v2276_v56 = vadd.f32 %v2275_v29, %v2274_v62  ;;  %v5252_v25 = vpop.f32.mrf.mxu1  ;;  %v5272_v40 = vadd.f32 %v5226_v60, %v5264_v6  ;;  %v5276_v53 = vadd.f32 %v5230_v21, %v5264_v6 }
 0x2d3   : > { %v3605_v26 = vmul.f32 -1.442695, %v2289_v61  ;;  %v2302_v31 = vadd.f32 %v2301_v4, %v2300_v12  ;;  %v1987_v57 = vpop.f32.mrf.mxu0  ;;  %v5280_v62 = vadd.f32 %v5234_v44, %v5262_v37  ;;  %v5284_v12 = vadd.f32 %v5238_v23, %v5262_v37 }
 0x2d4   : > { %3881 = vpow2.f32 %v3603_v11  ;;  %v3604_v36 = vmul.f32 -1.442695, %v2276_v56  ;;  %v5254_v48 = vpop.f32.mrf.mxu1  ;;  %v5290_v61 = vadd.f32 %v5242_v51, %v5260_v30  ;;  %v1978_v60 = vadd.f32 %v5246_v47, %v5260_v30 }
 0x2d5   : > { %v3606_v22 = vmul.f32 -1.442695, %v2302_v31  ;;  %3883 = vpow2.f32 %v3605_v26  ;;  %v1989_v15 = vpop.f32.mrf.mxu0  ;;  %v1982_v29 = vadd.f32 %v1981_v27, %v1779_v34  ;;  %v1984_v21 = vadd.f32 %v1983_v58, %v1779_v34 }
 0x2d6   : > { %3885 = vpow2.f32 %v3604_v36  ;;  %v5256_v38 = vpop.f32.mrf.mxu1  ;;  %v1988_v11 = vadd.f32 %v1987_v57, %v1784_v7  ;;  %v1990_v44 = vadd.f32 %v1989_v15, %v1784_v7 }
 0x2d7   : > { %3887 = vpow2.f32 %v3606_v22  ;;  %v1993_v16 = vpop.f32.mrf.mxu0 }
 0x2d8   : > { %v5258_v20 = vpop.f32.mrf.mxu1  ;;  %v1994_v31 = vadd.f32 %v1993_v16, %v1789_v43 }
 0x2d9   : > { %v1995_v35 = vpop.f32.mrf.mxu0 }
 0x2da   : > { %v2204_v55 = vpop.f32.mrf.mxu1  ;;  %v1996_v23 = vadd.f32 %v1995_v35, %v1789_v43 }
 0x2db   : > { %v1999_v5 = vpop.f32.mrf.mxu0  ;;  %v2205_v57 = vadd.f32 %v2204_v55, %v1789_v43 }
 0x2dc   : > { %v2208_v63 = vpop.f32.mrf.mxu1 }
 0x2dd   : > { %v2001_v33 = vpop.f32.mrf.mxu0  ;;  %v2209_v47 = vadd.f32 %v2208_v63, %v1794_v39  ;;  %v2191_v63 = vadd.f32 %v5250_v14, %v1779_v34 }
 0x2de   : > { %v2210_v59 = vpop.f32.mrf.mxu1 }
 0x2df   : > { %v2005_v8 = vpop.f32.mrf.mxu0 }
 0x2e0   : > { %v2214_v9 = vpop.f32.mrf.mxu1  ;;  %v2006_v36 = vadd.f32 %v2005_v8, %v1799_v49  ;;  %v2185_v8 = vadd.f32 %v5244_v28, %v5260_v30 }
 0x2e1   : > { %v3882_v42 = vpop.eup %3881  ;;  %v2007_v10 = vpop.f32.mrf.mxu0  ;;  %v2215_v22 = vadd.f32 %v2214_v9, %v1799_v49  ;;  %v2181_v9 = vadd.f32 %v5240_v13, %v5262_v37 }
 0x2e2   : > { %v3884_v50 = vpop.eup %3883  ;;  %v2315_v18 = vadd.f32 1.0, %v3882_v42  ;;  %v2216_v54 = vpop.f32.mrf.mxu1  ;;  %v2008_v26 = vadd.f32 %v2007_v10, %v1799_v49  ;;  %v2002_v42 = vadd.f32 %v2001_v33, %v1794_v39 }
 0x2e3   : > { %v3886_v32 = vpop.eup %3885  ;;  %v2317_v2 = vadd.f32 1.0, %v3884_v50  ;;  %v2217_v56 = vadd.f32 %v2216_v54, %v1799_v49  ;;  %v2211_v50 = vadd.f32 %v2210_v59, %v1794_v39  ;;  %v2203_v49 = vadd.f32 %v5258_v20, %v1789_v43 }
 0x2e4   : > { %v3888_v19 = vpop.eup %3887  ;;  %v2316_v41 = vadd.f32 1.0, %v3886_v32  ;;  %3889 = vrcp.f32 %v2315_v18  ;;  %v2000_v18 = vadd.f32 %v1999_v5, %v1794_v39  ;;  %v2199_v39 = vadd.f32 %v5256_v38, %v1784_v7 }
 0x2e5   : > { %v2318_v1 = vadd.f32 1.0, %v3888_v19  ;;  %v2193_v43 = vadd.f32 %v5252_v25, %v1779_v34  ;;  %v2179_v54 = vadd.f32 %v5236_v24, %v5262_v37  ;;  %v2173_v24 = vadd.f32 %v5228_v52, %v5264_v6  ;;  %v2359_v52 = vld [vmem:[%s5715_s5] sm:$0xff] }
 0x2e6   : > { %3891 = vrcp.f32 %v2316_v41 }
 0x2e7   : > { %3893 = vrcp.f32 %v2318_v1  ;;  %v2197_v1 = vadd.f32 %v5254_v48, %v1784_v7  ;;  %v2187_v7 = vadd.f32 %v5248_v45, %v5260_v30 }
 0x2e8   : > { %3895 = vrcp.f32 %v2317_v2 }
 0x2f1   : > { %v5266_v46 = vpop.eup %3889 }
 0x2f2   : > { %5833 = vst [vmem:[#allocation20_spill] sm:$0xff] %v5266_v46  ;;  %v2355_v27 = vmul.f32 %v5266_v46, %v2006_v36  ;;  %v2351_v19 = vmul.f32 %v5266_v46, %v2000_v18  ;;  %v2347_v2 = vmul.f32 %v5266_v46, %v1994_v31  ;;  %v2343_v33 = vmul.f32 %v5266_v46, %v1988_v11  ;;  %v2366_v31 = vld [vmem:[%s5715_s5 + $0x38] sm:$0xff]  ;;  %v2368_v36 = vld [vmem:[%s5715_s5 + $0x48] sm:$0xff] }
 0x2f3   : > { %v5268_v17 = vpop.eup %3891  ;;  %v2339_v14 = vmul.f32 %v5266_v46, %v1982_v29  ;;  %v2335_v28 = vmul.f32 %v5266_v46, %v5290_v61  ;;  %v2175_v29 = vadd.f32 %v5232_v0, %v5264_v6  ;;  %v2331_v37 = vmul.f32 %v5266_v46, %v5280_v62  ;;  %v2362_v62 = vld [vmem:[%s5715_s5 + $0x18] sm:$0xff] }
 0x2f4   : > { %5834 = vst [vmem:[#allocation21_spill] sm:$0xff] %v5268_v17  ;;  %v5286_v3 = vpop.eup %3893  ;;  %v2356_v51 = vmul.f32 %v5268_v17, %v2008_v26  ;;  %v2352_v15 = vmul.f32 %v5268_v17, %v2002_v42  ;;  %v2348_v35 = vmul.f32 %v5268_v17, %v1996_v23  ;;  %v2344_v5 = vmul.f32 %v5268_v17, %v1990_v44  ;;  %v2363_v44 = vld [vmem:[%s5715_s5 + $0x20] sm:$0xff]  ;;  %v2364_v26 = vld [vmem:[%s5715_s5 + $0x28] sm:$0xff]  ;;  %v2370_v42 = vld [vmem:[%s5715_s5 + $0x58] sm:$0xff] }
 0x2f5   : > { %5835 = vst [vmem:[#allocation18_spill] sm:$0xff] %v5286_v3  ;;  %v5294_v4 = vpop.eup %3895  ;;  %v2358_v32 = vmul.f32 %v5286_v3, %v2217_v56  ;;  %v2354_v16 = vmul.f32 %v5286_v3, %v2211_v50  ;;  %v2350_v55 = vmul.f32 %v5286_v3, %v2205_v57  ;;  %v2346_v38 = vmul.f32 %v5286_v3, %v2199_v39  ;;  %v2365_v56 = vld [vmem:[%s5715_s5 + $0x30] sm:$0xff]  ;;  %v2367_v23 = vld [vmem:[%s5715_s5 + $0x40] sm:$0xff]  ;;  %v2374_v18 = vld [vmem:[%s5715_s5 + $0x78] sm:$0xff] }
 0x2f6   : > { %5836 = vst [vmem:[#allocation19_spill] sm:$0xff] %v5294_v4  ;;  %v2357_v58 = vmul.f32 %v5294_v4, %v2215_v22  ;;  %2536 = vmatprep.subr.mxu0 %v2356_v51  ;;  %v2353_v41 = vmul.f32 %v5294_v4, %v2209_v47  ;;  %v2349_v20 = vmul.f32 %v5294_v4, %v2203_v49  ;;  %v5837_v6 = vmov 0.0   ;;  %v2369_v22 = vld [vmem:[%s5715_s5 + $0x50] sm:$0xff]  ;;  %v2371_v50 = vld [vmem:[%s5715_s5 + $0x60] sm:$0xff]  ;;  %v2372_v51 = vld [vmem:[%s5715_s5 + $0x68] sm:$0xff] }
 0x2f7   : > { %2697 = vmatprep.subr.mxu1 %v2358_v32  ;;  %2537 = vmatpush1.msra.mxu0 %v2355_v27  ;;  %v2345_v48 = vmul.f32 %v5294_v4, %v2197_v1  ;;  %v2340_v59 = vmul.f32 %v5268_v17, %v1984_v21  ;;  %v2342_v25 = vmul.f32 %v5286_v3, %v2193_v43  ;;  %v2373_v32 = vld [vmem:[%s5715_s5 + $0x70] sm:$0xff] }
 0x2f8   : > { %2698 = vmatpush1.msra.mxu1 %v2357_v58  ;;  %2538 = vmatprep.subr.mxu0 %v2352_v15  ;;  %v2341_v34 = vmul.f32 %v5294_v4, %v2191_v63  ;;  %v2336_v45 = vmul.f32 %v5268_v17, %v1978_v60  ;;  %v2338_v10 = vmul.f32 %v5286_v3, %v2187_v7 }
 0x2f9   : > { %2699 = vmatprep.subr.mxu1 %v2354_v16  ;;  %2539 = vmatpush1.msra.mxu0 %v2351_v19  ;;  %v2337_v30 = vmul.f32 %v5294_v4, %v2185_v8  ;;  %v2332_v13 = vmul.f32 %v5268_v17, %v5284_v12  ;;  %v2334_v60 = vmul.f32 %v5286_v3, %v2181_v9 }
 0x2fa   : > { %2700 = vmatpush1.msra.mxu1 %v2353_v41  ;;  %2540 = vmatprep.subr.mxu0 %v2348_v35  ;;  %v2333_v61 = vmul.f32 %v5294_v4, %v2179_v54  ;;  %v2328_v0 = vmul.f32 %v5268_v17, %v5276_v53  ;;  %v2330_v21 = vmul.f32 %v5286_v3, %v2175_v29  ;;  %v2361_v53 = vld [vmem:[%s5715_s5 + $0x10] sm:$0xff] }
 0x2fb   : > { %2701 = vmatprep.subr.mxu1 %v2350_v55  ;;  %2541 = vmatpush1.msra.mxu0 %v2347_v2  ;;  %v2327_v12 = vmul.f32 %v5266_v46, %v5272_v40  ;;  %v2329_v11 = vmul.f32 %v5294_v4, %v2173_v24  ;;  %v2360_v40 = vld [vmem:[%s5715_s5 + $0x8] sm:$0xff] }
 0x2fc   : > { %2702 = vmatpush1.msra.mxu1 %v2349_v20  ;;  %2542 = vmatprep.subr.mxu0 %v2344_v5 }
 0x2fd   : > { %2703 = vmatprep.subr.mxu1 %v2346_v38  ;;  %2543 = vmatpush1.msra.mxu0 %v2343_v33 }
 0x2fe   : > { %2704 = vmatpush1.msra.mxu1 %v2345_v48  ;;  %2544 = vmatprep.subr.mxu0 %v2340_v59 }
 0x2ff   : > { %2705 = vmatprep.subr.mxu1 %v2342_v25  ;;  %2545 = vmatpush1.msra.mxu0 %v2339_v14 }
 0x300   : > { %2706 = vmatpush1.msra.mxu1 %v2341_v34  ;;  %2546 = vmatprep.subr.mxu0 %v2336_v45 }
 0x301   : > { %2707 = vmatprep.subr.mxu1 %v2338_v10  ;;  %2547 = vmatpush1.msra.mxu0 %v2335_v28 }
 0x302   : > { %2708 = vmatpush1.msra.mxu1 %v2337_v30  ;;  %2548 = vmatprep.subr.mxu0 %v2332_v13 }
 0x303   : > { %2709 = vmatprep.subr.mxu1 %v2334_v60  ;;  %2549 = vmatpush1.msra.mxu0 %v2331_v37 }
 0x304   : > { %2710 = vmatpush1.msra.mxu1 %v2333_v61  ;;  %2550 = vmatprep.subr.mxu0 %v2328_v0 }
 0x305   : > { %2711 = vmatprep.subr.mxu1 %v2330_v21  ;;  %2551 = vmatpush1.msra.mxu0 %v2327_v12 }
 0x306   : > { %2712 = vmatpush1.msra.mxu1 %v2329_v11  ;;  %3607 = vmatmul.mubr.msk.f32.vlgmr.msra.gmra.mxu0 %vm2471_vm1, %v2359_v52 }
 0x307   : > { %3623 = vmatmul.mubr.msk.f32.vlgmr.msra.gmra.mxu1 %vm2471_vm1, %v2359_v52  ;;  %2590 = vmatprep.mubr.f32.mxu0 %v5837_v6 }
 0x308   : > { %2751 = vmatprep.mubr.f32.mxu1 %v5837_v6 }
 0x30a   : > { %3608 = vmatmul.mubr.msk.f32.gmra.mxu0 %vm2471_vm1, %v2360_v40 }
 0x30b   : > { %3624 = vmatmul.mubr.msk.f32.gmra.mxu1 %vm2471_vm1, %v2360_v40  ;;  %2596 = vmatprep.mubr.f32.mxu0 %v5837_v6 }
 0x30c   : > { %2757 = vmatprep.mubr.f32.mxu1 %v5837_v6 }
 0x30e   : > { %3609 = vmatmul.mubr.msk.f32.gmra.mxu0 %vm2471_vm1, %v2361_v53 }
 0x30f   : > { %3625 = vmatmul.mubr.msk.f32.gmra.mxu1 %vm2471_vm1, %v2361_v53  ;;  %2602 = vmatprep.mubr.f32.mxu0 %v5837_v6 }
 0x310   : > { %2763 = vmatprep.mubr.f32.mxu1 %v5837_v6 }
 0x312   : > { %3610 = vmatmul.mubr.msk.f32.gmra.mxu0 %vm2471_vm1, %v2362_v62 }
 0x313   : > { %3626 = vmatmul.mubr.msk.f32.gmra.mxu1 %vm2471_vm1, %v2362_v62  ;;  %2608 = vmatprep.mubr.f32.mxu0 %v5837_v6  ;;  %v2469_v62 = vpop.permute.xlu0 %2468 }
 0x314   : > { %2769 = vmatprep.mubr.f32.mxu1 %v5837_v6 }
 0x316   : > { %3611 = vmatmul.mubr.msk.f32.gmra.mxu0 %vm2471_vm1, %v2363_v44 }
 0x317   : > { %3627 = vmatmul.mubr.msk.f32.gmra.mxu1 %vm2471_vm1, %v2363_v44  ;;  %2614 = vmatprep.mubr.f32.mxu0 %v5837_v6 }
 0x318   : > { %2775 = vmatprep.mubr.f32.mxu1 %v5837_v6 }
 0x31a   : > { %3612 = vmatmul.mubr.msk.f32.gmra.mxu0 %vm2471_vm1, %v2364_v26 }
 0x31b   : > { %3628 = vmatmul.mubr.msk.f32.gmra.mxu1 %vm2471_vm1, %v2364_v26  ;;  %2620 = vmatprep.mubr.f32.mxu0 %v5837_v6 }
 0x31c   : > { %2781 = vmatprep.mubr.f32.mxu1 %v5837_v6 }
 0x31e   : > { %3613 = vmatmul.mubr.msk.f32.gmra.mxu0 %vm2471_vm1, %v2365_v56 }
 0x31f   : > { %3629 = vmatmul.mubr.msk.f32.gmra.mxu1 %vm2471_vm1, %v2365_v56  ;;  %2626 = vmatprep.mubr.f32.mxu0 %v5837_v6  ;;  %v2464_v56 = vpop.permute.xlu1 %2463 }
 0x320   : > { %2787 = vmatprep.mubr.f32.mxu1 %v5837_v6 }
 0x322   : > { %3614 = vmatmul.mubr.msk.f32.gmra.mxu0 %vm2471_vm1, %v2366_v31 }
 0x323   : > { %3630 = vmatmul.mubr.msk.f32.gmra.mxu1 %vm2471_vm1, %v2366_v31  ;;  %2632 = vmatprep.mubr.f32.mxu0 %v5837_v6 }
 0x324   : > { %2793 = vmatprep.mubr.f32.mxu1 %v5837_v6 }
 0x326   : > { %3615 = vmatmul.mubr.msk.f32.gmra.mxu0 %vm2471_vm1, %v2367_v23 }
 0x327   : > { %3631 = vmatmul.mubr.msk.f32.gmra.mxu1 %vm2471_vm1, %v2367_v23  ;;  %2638 = vmatprep.mubr.f32.mxu0 %v5837_v6 }
 0x328   : > { %2799 = vmatprep.mubr.f32.mxu1 %v5837_v6 }
 0x32a   : > { %3616 = vmatmul.mubr.msk.f32.gmra.mxu0 %vm2471_vm1, %v2368_v36 }
 0x32b   : > { %3632 = vmatmul.mubr.msk.f32.gmra.mxu1 %vm2471_vm1, %v2368_v36  ;;  %2644 = vmatprep.mubr.f32.mxu0 %v5837_v6 }
 0x32c   : > { %2805 = vmatprep.mubr.f32.mxu1 %v5837_v6 }
 0x32e   : > { %3617 = vmatmul.mubr.msk.f32.gmra.mxu0 %vm2471_vm1, %v2369_v22 }
 0x32f   : > { %3633 = vmatmul.mubr.msk.f32.gmra.mxu1 %vm2471_vm1, %v2369_v22  ;;  %2650 = vmatprep.mubr.f32.mxu0 %v5837_v6 }
 0x330   : > { %2811 = vmatprep.mubr.f32.mxu1 %v5837_v6 }
 0x332   : > { %3618 = vmatmul.mubr.msk.f32.gmra.mxu0 %vm2471_vm1, %v2370_v42 }
 0x333   : > { %3634 = vmatmul.mubr.msk.f32.gmra.mxu1 %vm2471_vm1, %v2370_v42  ;;  %2656 = vmatprep.mubr.f32.mxu0 %v5837_v6  ;;  %v2459_v42 = vpop.permute.xlu0 %2458 }
 0x334   : > { %2817 = vmatprep.mubr.f32.mxu1 %v5837_v6 }
 0x336   : > { %3619 = vmatmul.mubr.msk.f32.gmra.mxu0 %vm2471_vm1, %v2371_v50 }
 0x337   : > { %3635 = vmatmul.mubr.msk.f32.gmra.mxu1 %vm2471_vm1, %v2371_v50  ;;  %2662 = vmatprep.mubr.f32.mxu0 %v5837_v6  ;;  %v2449_v46 = vpop.permute.xlu0 %2448 }
 0x338   : > { %2823 = vmatprep.mubr.f32.mxu1 %v5837_v6 }
 0x33a   : > { %3620 = vmatmul.mubr.msk.f32.gmra.mxu0 %vm2471_vm1, %v2372_v51 }
 0x33b   : > { %3636 = vmatmul.mubr.msk.f32.gmra.mxu1 %vm2471_vm1, %v2372_v51  ;;  %2668 = vmatprep.mubr.f32.mxu0 %v5837_v6 }
 0x33c   : > { %2829 = vmatprep.mubr.f32.mxu1 %v5837_v6 }
 0x33e   : > { %3621 = vmatmul.mubr.msk.f32.gmra.mxu0 %vm2471_vm1, %v2373_v32 }
 0x33f   : > { %3637 = vmatmul.mubr.msk.f32.gmra.mxu1 %vm2471_vm1, %v2373_v32  ;;  %2674 = vmatprep.mubr.f32.mxu0 %v5837_v6  ;;  %v2454_v32 = vpop.permute.xlu1 %2453 }
 0x340   : > { %2835 = vmatprep.mubr.f32.mxu1 %v5837_v6 }
 0x342   : > { %3622 = vmatmul.mubr.msk.f32.gmra.mxu0 %vm2471_vm1, %v2374_v18 }
 0x343   : > { %3638 = vmatmul.mubr.msk.f32.gmra.mxu1 %vm2471_vm1, %v2374_v18  ;;  %3026 = vmatprep.mubr.f32.mxu0 %v5837_v6 }
 0x344   : > { %3139 = vmatprep.mubr.f32.mxu1 %v5837_v6 }
 0x3c6   : > { %v5462_v47 = vpop.f32.mrf.mxu0 }
 0x3c7   : > { %5838 = vst [vmem:[#allocation16_spill] sm:$0xff] %v5462_v47  ;;  %v5464_v27 = vpop.f32.mrf.mxu1  ;;  %v2444_v47 = vpop.permute.xlu1 %2443 }
 0x3c8   : > { %5839 = vst [vmem:[#allocation17_spill] sm:$0xff] %v5464_v27  ;;  %v5466_v58 = vpop.f32.mrf.mxu0 }
 0x3c9   : > { %5840 = vst [vmem:[#allocation14_spill] sm:$0xff] %v5466_v58  ;;  %v5468_v57 = vpop.f32.mrf.mxu1 }
 0x3ca   : > { %5841 = vst [vmem:[#allocation15_spill] sm:$0xff] %v5468_v57  ;;  %v5470_v15 = vpop.f32.mrf.mxu0 }
 0x3cb   : > { %5842 = vst [vmem:[#allocation12_spill] sm:$0xff] %v5470_v15  ;;  %v5472_v16 = vpop.f32.mrf.mxu1 }
 0x3cc   : > { %5843 = vst [vmem:[#allocation13_spill] sm:$0xff] %v5472_v16  ;;  %v5474_v49 = vpop.f32.mrf.mxu0 }
 0x3cd   : > { %5844 = vst [vmem:[#allocation10_spill] sm:$0xff] %v5474_v49  ;;  %v5476_v19 = vpop.f32.mrf.mxu1 }
 0x3ce   : > { %5845 = vst [vmem:[#allocation11_spill] sm:$0xff] %v5476_v19  ;;  %v5478_v41 = vpop.f32.mrf.mxu0 }
 0x3cf   : > { %5846 = vst [vmem:[#allocation8_spill] sm:$0xff] %v5478_v41  ;;  %v5480_v39 = vpop.f32.mrf.mxu1 }
 0x3d0   : > { %5847 = vst [vmem:[#allocation9_spill] sm:$0xff] %v5480_v39  ;;  %v5482_v35 = vpop.f32.mrf.mxu0 }
 0x3d1   : > { %5848 = vst [vmem:[#allocation6_spill] sm:$0xff] %v5482_v35  ;;  %v5484_v55 = vpop.f32.mrf.mxu1 }
 0x3d2   : > { %5849 = vst [vmem:[#allocation7_spill] sm:$0xff] %v5484_v55  ;;  %v5486_v1 = vpop.f32.mrf.mxu0 }
 0x3d3   : > { %5850 = vst [vmem:[#allocation22_spill] sm:$0xff] %v5486_v1  ;;  %v5488_v2 = vpop.f32.mrf.mxu1 }
 0x3d4   : > { %5851 = vst [vmem:[#allocation24_spill] sm:$0xff] %v5488_v2  ;;  %v5490_v20 = vpop.f32.mrf.mxu0  ;;  %v2439_v2 = vpop.permute.xlu0 %2438 }
 0x3d5   : > { %5852 = vst [vmem:[#allocation25_spill] sm:$0xff] %v5490_v20  ;;  %v5492_v43 = vpop.f32.mrf.mxu1 }
 0x3d6   : > { %5853 = vst [vmem:[#allocation26_spill] sm:$0xff] %v5492_v43  ;;  %v5494_v5 = vpop.f32.mrf.mxu0 }
 0x3d7   : > { %5854 = vst [vmem:[#allocation27_spill] sm:$0xff] %v5494_v5  ;;  %v5496_v38 = vpop.f32.mrf.mxu1 }
 0x3d8   : > { %5855 = vst [vmem:[#allocation28_spill] sm:$0xff] %v5496_v38  ;;  %v5498_v63 = vpop.f32.mrf.mxu0 }
 0x3d9   : > { %5856 = vst [vmem:[#allocation29_spill] sm:$0xff] %v5498_v63  ;;  %v5500_v33 = vpop.f32.mrf.mxu1  ;;  %v5554_v63 = vpop.permute.xlu1 %2433 }
 0x3da   : > { %5857 = vst [vmem:[#allocation46_spill] sm:$0xff] %v5500_v33  ;;  %v5502_v48 = vpop.f32.mrf.mxu0 }
 0x3db   : > { %5858 = vst [vmem:[#allocation47_spill] sm:$0xff] %v5502_v48  ;;  %v5504_v7 = vpop.f32.mrf.mxu1 }
 0x3dc   : > { %5859 = vst [vmem:[#allocation44_spill] sm:$0xff] %v5504_v7  ;;  %v5506_v59 = vpop.f32.mrf.mxu0 }
 0x3dd   : > { %5860 = vst [vmem:[#allocation45_spill] sm:$0xff] %v5506_v59  ;;  %v5508_v25 = vpop.f32.mrf.mxu1 }
 0x3de   : > { %5861 = vst [vmem:[#allocation42_spill] sm:$0xff] %v5508_v25  ;;  %v5510_v8 = vpop.f32.mrf.mxu0 }
 0x3df   : > { %v5512_v14 = vpop.f32.mrf.mxu1 }
 0x3e0   : > { %5862 = vst [vmem:[#allocation43_spill] sm:$0xff] %v5512_v14  ;;  %v5514_v34 = vpop.f32.mrf.mxu0 }
 0x3e1   : > { %v5516_v9 = vpop.f32.mrf.mxu1 }
 0x3e2   : > { %v5518_v45 = vpop.f32.mrf.mxu0 }
 0x3e3   : > { %v5520_v10 = vpop.f32.mrf.mxu1 }
 0x3e4   : > { %v5522_v54 = vpop.f32.mrf.mxu0 }
 0x3e5   : > { %v5524_v28 = vpop.f32.mrf.mxu1 }
 0x3e6   : > { %v5526_v30 = vpop.f32.mrf.mxu0 }
 0x3e7   : > { %v5528_v29 = vpop.f32.mrf.mxu1 }
 0x3e8   : > { %v5530_v13 = vpop.f32.mrf.mxu0 }
 0x3e9   : > { %v5532_v60 = vpop.f32.mrf.mxu1 }
 0x3ea   : > { %v5534_v24 = vpop.f32.mrf.mxu0 }
 0x3eb   : > { %v5536_v37 = vpop.f32.mrf.mxu1 }
 0x3ec   : > { %v5538_v61 = vpop.f32.mrf.mxu0 }
 0x3ed   : > { %v5540_v0 = vpop.f32.mrf.mxu1 }
 0x3ee   : > { %v5542_v21 = vpop.f32.mrf.mxu0 }
 0x3ef   : > { %v5544_v12 = vpop.f32.mrf.mxu1 }
 0x3f0   : > { %v5546_v11 = vpop.f32.mrf.mxu0 }
 0x3f1   : > { %v5548_v52 = vpop.f32.mrf.mxu1 }
 0x3f2   : > { %v5550_v40 = vpop.f32.mrf.mxu0 }
 0x3f3   : > { %v5552_v53 = vpop.f32.mrf.mxu1 }
 0x3f4   : > { %v2654_v44 = vpop.f32.mrf.mxu0 }
 0x3f5   : > { %v2815_v26 = vpop.f32.mrf.mxu1 }
 0x3f6   : > { %v2658_v31 = vpop.f32.mrf.mxu0 }
 0x3f7   : > { %v2819_v23 = vpop.f32.mrf.mxu1 }
 0x3f8   : > { %v2660_v36 = vpop.f32.mrf.mxu0 }
 0x3f9   : > { %v2821_v22 = vpop.f32.mrf.mxu1 }
 0x3fa   : > { %v2664_v50 = vpop.f32.mrf.mxu0  ;;  %v2822_v59 = vadd.f32 %v2821_v22, %v2454_v32 }
 0x3fb   : > { %v2825_v51 = vpop.f32.mrf.mxu1  ;;  %v2665_v7 = vadd.f32 %v2664_v50, %v2459_v42 }
 0x3fc   : > { %v2666_v18 = vpop.f32.mrf.mxu0  ;;  %v2826_v48 = vadd.f32 %v2825_v51, %v2459_v42  ;;  %v5863_v51 = vld [vmem:[#allocation43_spill] sm:$0xff] }
 0x3fd   : > { %v2827_v3 = vpop.f32.mrf.mxu1  ;;  %v2667_v20 = vadd.f32 %v2666_v18, %v2459_v42 }
 0x3fe   : > { %v2670_v4 = vpop.f32.mrf.mxu0  ;;  %v2828_v38 = vadd.f32 %v2827_v3, %v2459_v42  ;;  %v2655_v3 = vadd.f32 %v2654_v44, %v2449_v46 }
 0x3ff   : > { %v2831_v17 = vpop.f32.mrf.mxu1  ;;  %v2671_v1 = vadd.f32 %v2670_v4, %v2464_v56 }
 0x400   : > { %v2672_v6 = vpop.f32.mrf.mxu0  ;;  %v2832_v43 = vadd.f32 %v2831_v17, %v2464_v56 }
 0x401   : > { %v2833_v27 = vpop.f32.mrf.mxu1  ;;  %v2673_v39 = vadd.f32 %v2672_v6, %v2464_v56  ;;  %v2898_v4 = vmax.f32 %v2671_v1, 0.0  ;;  %v2649_v1 = vadd.f32 %v5546_v11, %v2444_v47 }
 0x402   : > { %v2676_v57 = vpop.f32.mrf.mxu0  ;;  %v2834_v41 = vadd.f32 %v2833_v27, %v2464_v56  ;;  %v2659_v27 = vadd.f32 %v2658_v31, %v2454_v32  ;;  %v2900_v17 = vmax.f32 %v2832_v43, 0.0  ;;  %v2810_v43 = vadd.f32 %v5548_v52, %v2444_v47 }
 0x403   : > { %v2837_v58 = vpop.f32.mrf.mxu1  ;;  %v2677_v16 = vadd.f32 %v2676_v57, %v2469_v62  ;;  %v2899_v14 = vmax.f32 %v2673_v39, 0.0  ;;  %v2814_v39 = vadd.f32 %v5552_v53, %v2449_v46  ;;  %v2802_v52 = vadd.f32 %v5536_v37, %v2439_v2 }
 0x404   : > { %v2838_v15 = vadd.f32 %v2837_v58, %v2469_v62  ;;  %v2678_v19 = vpop.f32.mrf.mxu0  ;;  %v2661_v58 = vadd.f32 %v2660_v36, %v2454_v32  ;;  %v2901_v6 = vmax.f32 %v2834_v41, 0.0  ;;  %v2894_v41 = vmax.f32 %v2665_v7, 0.0 }
 0x405   : > { %v2839_v49 = vpop.f32.mrf.mxu1  ;;  %v2679_v55 = vadd.f32 %v2678_v19, %v2469_v62  ;;  %v2902_v25 = vmax.f32 %v2677_v16, 0.0  ;;  %v2816_v19 = vadd.f32 %v2815_v26, %v2449_v46  ;;  %v2429_v16 = vpop.permute.xlu0 %2428  ;;  %v2887_v7 = vmax.f32 %v2655_v3, 0.0 }
 0x406   : > { %v2840_v35 = vadd.f32 %v2839_v49, %v2469_v62  ;;  %v2904_v57 = vmax.f32 %v2838_v15, 0.0  ;;  %v2820_v49 = vadd.f32 %v2819_v23, %v2454_v32  ;;  %v2653_v15 = vadd.f32 %v5550_v40, %v2449_v46 }
 0x407   : > { %v2903_v5 = vmax.f32 %v2679_v55, 0.0  ;;  %v2897_v55 = vmax.f32 %v2828_v38, 0.0  ;;  %v2647_v38 = vadd.f32 %v5542_v21, %v2444_v47  ;;  %v2890_v40 = vmax.f32 %v2659_v27, 0.0 }
 0x408   : > { %v2905_v33 = vmax.f32 %v2840_v35, 0.0  ;;  %v2895_v35 = vmax.f32 %v2667_v20, 0.0  ;;  %v2424_v20 = vpop.permute.xlu1 %2423  ;;  %v2892_v62 = vmax.f32 %v2820_v49, 0.0  ;;  %v2643_v46 = vadd.f32 %v5538_v61, %v2439_v2  ;;  %v5866_v49 = vld [vmem:[#allocation47_spill] sm:$0xff] }
 0x409   : > { %2962 = vmatprep.subr.mxu0 %v2903_v5  ;;  %v2896_v5 = vmax.f32 %v2826_v48, 0.0  ;;  %v2804_v48 = vadd.f32 %v5540_v0, %v2439_v2  ;;  %v2889_v11 = vmax.f32 %v2816_v19, 0.0  ;;  %v2886_v53 = vmax.f32 %v2653_v15, 0.0  ;;  %v2419_v44 = vpop.permute.xlu0 %2418 }
 0x40a   : > { %3075 = vmatprep.subr.mxu1 %v2905_v33  ;;  %2963 = vmatpush1.msra.mxu0 %v2902_v25  ;;  %v2891_v33 = vmax.f32 %v2661_v58, 0.0  ;;  %v2893_v25 = vmax.f32 %v2822_v59, 0.0  ;;  %v2641_v59 = vadd.f32 %v5534_v24, %v2439_v2  ;;  %v2888_v21 = vmax.f32 %v2814_v39, 0.0  ;;  %v5865_v58 = vld [vmem:[#allocation42_spill] sm:$0xff] }
 0x40b   : > { %3076 = vmatpush1.msra.mxu1 %v2904_v57  ;;  %2964 = vmatprep.subr.mxu0 %v2899_v14  ;;  %v2808_v14 = vadd.f32 %v5544_v12, %v2444_v47  ;;  %v2637_v47 = vadd.f32 %v5530_v13, %v5554_v63  ;;  %v2798_v61 = vadd.f32 %v5532_v60, %v5554_v63  ;;  %v2883_v12 = vmax.f32 %v2649_v1, 0.0  ;;  %v5870_v1 = vld [vmem:[#allocation27_spill] sm:$0xff] }
 0x40c   : > { %3077 = vmatprep.subr.mxu1 %v2901_v6  ;;  %2965 = vmatpush1.msra.mxu0 %v2898_v4  ;;  %v2885_v0 = vmax.f32 %v2810_v43, 0.0  ;;  %v2635_v24 = vadd.f32 %v5526_v30, %v5554_v63  ;;  %v2796_v2 = vadd.f32 %v5528_v29, %v5554_v63  ;;  %v2882_v37 = vmax.f32 %v2647_v38, 0.0  ;;  %v2414_v23 = vpop.permute.xlu1 %2413 }
 0x40d   : > { %3078 = vmatpush1.msra.mxu1 %v2900_v17  ;;  %2966 = vmatprep.subr.mxu0 %v2895_v35  ;;  %v2884_v26 = vmax.f32 %v2808_v14, 0.0  ;;  %v2631_v13 = vadd.f32 %v5522_v54, %v2429_v16  ;;  %v2792_v56 = vadd.f32 %v5524_v28, %v2429_v16  ;;  %v2879_v60 = vmax.f32 %v2643_v46, 0.0  ;;  %v5867_v17 = vld [vmem:[#allocation44_spill] sm:$0xff]  ;;  %v5868_v35 = vld [vmem:[#allocation29_spill] sm:$0xff] }
 0x40e   : > { %3079 = vmatprep.subr.mxu1 %v2897_v55  ;;  %2967 = vmatpush1.msra.mxu0 %v2894_v41  ;;  %v2881_v31 = vmax.f32 %v2804_v48, 0.0  ;;  %v2629_v36 = vadd.f32 %v5518_v45, %v2429_v16  ;;  %v2790_v30 = vadd.f32 %v5520_v10, %v2429_v16  ;;  %v2878_v22 = vmax.f32 %v2641_v59, 0.0  ;;  %v5864_v10 = vld [vmem:[#allocation45_spill] sm:$0xff]  ;;  %v5869_v16 = vld [vmem:[#allocation46_spill] sm:$0xff] }
 0x40f   : > { %3080 = vmatpush1.msra.mxu1 %v2896_v5  ;;  %2968 = vmatprep.subr.mxu0 %v2891_v33  ;;  %v2880_v42 = vmax.f32 %v2802_v52, 0.0  ;;  %v2625_v63 = vadd.f32 %v5514_v34, %v2424_v20  ;;  %v2786_v29 = vadd.f32 %v5516_v9, %v2424_v20  ;;  %v2875_v54 = vmax.f32 %v2637_v47, 0.0  ;;  %v2409_v9 = vpop.permute.xlu0 %2408  ;;  %v5871_v33 = vld [vmem:[#allocation28_spill] sm:$0xff]  ;;  %v5872_v14 = vld [vmem:[#allocation25_spill] sm:$0xff] }
 0x410   : > { %3081 = vmatprep.subr.mxu1 %v2893_v25  ;;  %2969 = vmatpush1.msra.mxu0 %v2890_v40  ;;  %v2877_v50 = vmax.f32 %v2798_v61, 0.0  ;;  %v2623_v28 = vadd.f32 %v5510_v8, %v2424_v20  ;;  %v2784_v32 = vadd.f32 %v5863_v51, %v2424_v20  ;;  %v2874_v18 = vmax.f32 %v2635_v24, 0.0  ;;  %v2404_v5 = vpop.permute.xlu1 %2403  ;;  %v5875_v52 = vld [vmem:[#allocation24_spill] sm:$0xff]  ;;  %v5876_v61 = vld [vmem:[#allocation6_spill] sm:$0xff]  ;;  %v5883_v51 = vld [vmem:[#allocation13_spill] sm:$0xff] }
 0x411   : > { %3082 = vmatpush1.msra.mxu1 %v2892_v62  ;;  %2970 = vmatprep.subr.mxu0 %v2887_v7  ;;  %v2876_v45 = vmax.f32 %v2796_v2, 0.0  ;;  %v2619_v57 = vadd.f32 %v5864_v10, %v2419_v44  ;;  %v2780_v6 = vadd.f32 %v5865_v58, %v2419_v44  ;;  %v2871_v27 = vmax.f32 %v2631_v13, 0.0  ;;  %v5873_v62 = vld [vmem:[#allocation26_spill] sm:$0xff]  ;;  %v5885_v58 = vld [vmem:[#allocation15_spill] sm:$0xff] }
 0x412   : > { %3083 = vmatprep.subr.mxu1 %v2889_v11  ;;  %2971 = vmatpush1.msra.mxu0 %v2886_v53  ;;  %v2873_v34 = vmax.f32 %v2792_v56, 0.0  ;;  %v2617_v4 = vadd.f32 %v5866_v49, %v2419_v44  ;;  %v2778_v3 = vadd.f32 %v5867_v17, %v2419_v44  ;;  %v2870_v8 = vmax.f32 %v2629_v36, 0.0  ;;  %v5874_v11 = vld [vmem:[#allocation22_spill] sm:$0xff]  ;;  %v5879_v56 = vld [vmem:[#allocation9_spill] sm:$0xff] }
 0x413   : > { %3084 = vmatpush1.msra.mxu1 %v2888_v21  ;;  %2972 = vmatprep.subr.mxu0 %v2883_v12  ;;  %v2872_v19 = vmax.f32 %v2790_v30, 0.0  ;;  %v2613_v55 = vadd.f32 %v5868_v35, %v2414_v23  ;;  %v2774_v15 = vadd.f32 %v5869_v16, %v2414_v23  ;;  %v2867_v39 = vmax.f32 %v2625_v63, 0.0  ;;  %v5880_v36 = vld [vmem:[#allocation10_spill] sm:$0xff] }
 0x414   : > { %3085 = vmatprep.subr.mxu1 %v2885_v0  ;;  %2973 = vmatpush1.msra.mxu0 %v2882_v37  ;;  %v2869_v41 = vmax.f32 %v2786_v29, 0.0  ;;  %v2611_v43 = vadd.f32 %v5870_v1, %v2414_v23  ;;  %v2772_v25 = vadd.f32 %v5871_v33, %v2414_v23  ;;  %v2866_v20 = vmax.f32 %v2623_v28, 0.0  ;;  %v5877_v0 = vld [vmem:[#allocation7_spill] sm:$0xff]  ;;  %v2399_v37 = vpop.permute.xlu0 %2398  ;;  %v5884_v10 = vld [vmem:[#allocation14_spill] sm:$0xff]  ;;  %v2907_v33 = vld [vmem:[%s5717_s7 + $0x8] sm:$0xff] }
 0x415   : > { %3086 = vmatpush1.msra.mxu1 %v2884_v26  ;;  %2974 = vmatprep.subr.mxu0 %v2879_v60  ;;  %v2868_v38 = vmax.f32 %v2784_v32, 0.0  ;;  %v2607_v40 = vadd.f32 %v5872_v14, %v2409_v9  ;;  %v2768_v46 = vadd.f32 %v5873_v62, %v2409_v9  ;;  %v2863_v48 = vmax.f32 %v2619_v57, 0.0  ;;  %v5878_v26 = vld [vmem:[#allocation8_spill] sm:$0xff]  ;;  %v2913_v62 = vld [vmem:[%s5717_s7 + $0x38] sm:$0xff] }
 0x416   : > { %3087 = vmatprep.subr.mxu1 %v2881_v31  ;;  %2975 = vmatpush1.msra.mxu0 %v2878_v22  ;;  %v2865_v7 = vmax.f32 %v2780_v6, 0.0  ;;  %v2605_v59 = vadd.f32 %v5874_v11, %v2409_v9  ;;  %v2766_v53 = vadd.f32 %v5875_v52, %v2409_v9  ;;  %v2862_v21 = vmax.f32 %v2617_v4, 0.0  ;;  %v5881_v22 = vld [vmem:[#allocation11_spill] sm:$0xff]  ;;  %v5886_v9 = vld [vmem:[#allocation16_spill] sm:$0xff]  ;;  %v5887_v4 = vld [vmem:[#allocation17_spill] sm:$0xff] }
 0x417   : > { %3088 = vmatpush1.msra.mxu1 %v2880_v42  ;;  %2976 = vmatprep.subr.mxu0 %v2875_v54  ;;  %v2864_v47 = vmax.f32 %v2778_v3, 0.0  ;;  %v2601_v12 = vadd.f32 %v5876_v61, %v2404_v5  ;;  %v2762_v44 = vadd.f32 %v5877_v0, %v2404_v5  ;;  %v2859_v24 = vmax.f32 %v2613_v55, 0.0  ;;  %v2394_v54 = vpop.permute.xlu1 %2393  ;;  %v2906_v1 = vld [vmem:[%s5717_s7] sm:$0xff]  ;;  %v2911_v14 = vld [vmem:[%s5717_s7 + $0x28] sm:$0xff] }
 0x418   : > { %3089 = vmatprep.subr.mxu1 %v2877_v50  ;;  %2977 = vmatpush1.msra.mxu0 %v2874_v18  ;;  %v2861_v2 = vmax.f32 %v2774_v15, 0.0  ;;  %v2599_v13 = vadd.f32 %v5878_v26, %v2404_v5  ;;  %v2760_v60 = vadd.f32 %v5879_v56, %v2404_v5  ;;  %v2858_v31 = vmax.f32 %v2611_v43, 0.0  ;;  %v5882_v50 = vld [vmem:[#allocation12_spill] sm:$0xff] }
 0x419   : > { %3090 = vmatpush1.msra.mxu1 %v2876_v45  ;;  %2978 = vmatprep.subr.mxu0 %v2871_v27  ;;  %v2860_v23 = vmax.f32 %v2772_v25, 0.0  ;;  %v2595_v30 = vadd.f32 %v5880_v36, %v2399_v37  ;;  %v2756_v42 = vadd.f32 %v5881_v22, %v2399_v37  ;;  %v2855_v63 = vmax.f32 %v2607_v40, 0.0  ;;  %v2908_v25 = vld [vmem:[%s5717_s7 + $0x10] sm:$0xff] }
 0x41a   : > { %3091 = vmatprep.subr.mxu1 %v2873_v34  ;;  %2979 = vmatpush1.msra.mxu0 %v2870_v8  ;;  %v2857_v29 = vmax.f32 %v2768_v46, 0.0  ;;  %v2593_v28 = vadd.f32 %v5882_v50, %v2399_v37  ;;  %v2754_v32 = vadd.f32 %v5883_v51, %v2399_v37  ;;  %v2854_v18 = vmax.f32 %v2605_v59, 0.0  ;;  %v2912_v40 = vld [vmem:[%s5717_s7 + $0x30] sm:$0xff]  ;;  %v2925_v46 = vpop.permute.xlu0 %2924 }
 0x41b   : > { %3092 = vmatpush1.msra.mxu1 %v2872_v19  ;;  %2980 = vmatprep.subr.mxu0 %v2867_v39  ;;  %v2856_v45 = vmax.f32 %v2766_v53, 0.0  ;;  %v2589_v57 = vadd.f32 %v5884_v10, %v2394_v54  ;;  %v2750_v6 = vadd.f32 %v5885_v58, %v2394_v54  ;;  %v2851_v27 = vmax.f32 %v2601_v12, 0.0 }
 0x41c   : > { %3093 = vmatprep.subr.mxu1 %v2869_v41  ;;  %2981 = vmatpush1.msra.mxu0 %v2866_v20  ;;  %v2853_v34 = vmax.f32 %v2762_v44, 0.0  ;;  %v2587_v49 = vadd.f32 %v5886_v9, %v2394_v54  ;;  %v2748_v17 = vadd.f32 %v5887_v4, %v2394_v54  ;;  %v2850_v3 = vmax.f32 %v2599_v13, 0.0  ;;  %v2909_v20 = vld [vmem:[%s5717_s7 + $0x18] sm:$0xff] }
 0x41d   : > { %3094 = vmatpush1.msra.mxu1 %v2868_v38  ;;  %2982 = vmatprep.subr.mxu0 %v2863_v48  ;;  %v2852_v8 = vmax.f32 %v2760_v60, 0.0  ;;  %v2847_v19 = vmax.f32 %v2595_v30, 0.0  ;;  %v2849_v35 = vmax.f32 %v2756_v42, 0.0  ;;  %v2846_v55 = vmax.f32 %v2593_v28, 0.0  ;;  %v2910_v38 = vld [vmem:[%s5717_s7 + $0x20] sm:$0xff]  ;;  %v2930_v48 = vpop.permute.xlu1 %2929 }
 0x41e   : > { %3095 = vmatprep.subr.mxu1 %v2865_v7  ;;  %2983 = vmatpush1.msra.mxu0 %v2862_v21  ;;  %v2848_v16 = vmax.f32 %v2754_v32, 0.0  ;;  %v2843_v15 = vmax.f32 %v2589_v57, 0.0  ;;  %v2845_v39 = vmax.f32 %v2750_v6, 0.0  ;;  %v2842_v41 = vmax.f32 %v2587_v49, 0.0  ;;  %v2935_v7 = vpop.permute.xlu0 %2934 }
 0x41f   : > { %3096 = vmatpush1.msra.mxu1 %v2864_v47  ;;  %2984 = vmatprep.subr.mxu0 %v2859_v24  ;;  %v2844_v5 = vmax.f32 %v2748_v17, 0.0  ;;  %v5888_v43 = vmov 0.0  }
 0x420   : > { %3097 = vmatprep.subr.mxu1 %v2861_v2  ;;  %2985 = vmatpush1.msra.mxu0 %v2858_v31 }
 0x421   : > { %3098 = vmatpush1.msra.mxu1 %v2860_v23  ;;  %2986 = vmatprep.subr.mxu0 %v2855_v63  ;;  %v5644_v11 = vpop.permute.xlu1 %2939 }
 0x422   : > { %3099 = vmatprep.subr.mxu1 %v2857_v29  ;;  %2987 = vmatpush1.msra.mxu0 %v2854_v18  ;;  %v3231_v59 = vpop.permute.xlu0 %3230 }
 0x423   : > { %3100 = vmatpush1.msra.mxu1 %v2856_v45  ;;  %2988 = vmatprep.subr.mxu0 %v2851_v27 }
 0x424   : > { %3101 = vmatprep.subr.mxu1 %v2853_v34  ;;  %2989 = vmatpush1.msra.mxu0 %v2850_v3 }
 0x425   : > { %3102 = vmatpush1.msra.mxu1 %v2852_v8  ;;  %2990 = vmatprep.subr.mxu0 %v2847_v19  ;;  %v3236_v21 = vpop.permute.xlu1 %3235 }
 0x426   : > { %3103 = vmatprep.subr.mxu1 %v2849_v35  ;;  %2991 = vmatpush1.msra.mxu0 %v2846_v55  ;;  %v5646_v44 = vpop.permute.xlu0 %2944 }
 0x427   : > { %3104 = vmatpush1.msra.mxu1 %v2848_v16  ;;  %2992 = vmatprep.subr.mxu0 %v2843_v15 }
 0x428   : > { %3105 = vmatprep.subr.mxu1 %v2845_v39  ;;  %2993 = vmatpush1.msra.mxu0 %v2842_v41 }
 0x429   : > { %3106 = vmatpush1.msra.mxu1 %v2844_v5  ;;  %3027 = vmatmul.mubr.f32.vlgmr.msra.gmra.mxu0 %v2906_v1  ;;  %v3241_v30 = vpop.permute.xlu1 %3240 }
 0x42a   : > { %3140 = vmatmul.mubr.f32.vlgmr.msra.gmra.mxu1 %v2906_v1  ;;  %3032 = vmatprep.mubr.f32.mxu0 %v5888_v43  ;;  %v5648_v32 = vpop.permute.xlu0 %2949 }
 0x42b   : > { %3145 = vmatprep.mubr.f32.mxu1 %v5888_v43 }
 0x42d   : > { %3033 = vmatmul.mubr.f32.gmra.mxu0 %v2907_v33  ;;  %v3246_v15 = vpop.permute.xlu1 %3245 }
 0x42e   : > { %3146 = vmatmul.mubr.f32.gmra.mxu1 %v2907_v33  ;;  %3038 = vmatprep.mubr.f32.mxu0 %v5888_v43 }
 0x42f   : > { %3151 = vmatprep.mubr.f32.mxu1 %v5888_v43 }
 0x431   : > { %3039 = vmatmul.mubr.f32.gmra.mxu0 %v2908_v25 }
 0x432   : > { %3152 = vmatmul.mubr.f32.gmra.mxu1 %v2908_v25  ;;  %3044 = vmatprep.mubr.f32.mxu0 %v5888_v43 }
 0x433   : > { %3157 = vmatprep.mubr.f32.mxu1 %v5888_v43 }
 0x435   : > { %3045 = vmatmul.mubr.f32.gmra.mxu0 %v2909_v20 }
 0x436   : > { %3158 = vmatmul.mubr.f32.gmra.mxu1 %v2909_v20  ;;  %3050 = vmatprep.mubr.f32.mxu0 %v5888_v43 }
 0x437   : > { %3163 = vmatprep.mubr.f32.mxu1 %v5888_v43 }
 0x439   : > { %3051 = vmatmul.mubr.f32.gmra.mxu0 %v2910_v38 }
 0x43a   : > { %3164 = vmatmul.mubr.f32.gmra.mxu1 %v2910_v38  ;;  %3056 = vmatprep.mubr.f32.mxu0 %v5888_v43 }
 0x43b   : > { %3169 = vmatprep.mubr.f32.mxu1 %v5888_v43 }
 0x43d   : > { %3057 = vmatmul.mubr.f32.gmra.mxu0 %v2911_v14 }
 0x43e   : > { %3170 = vmatmul.mubr.f32.gmra.mxu1 %v2911_v14  ;;  %3062 = vmatprep.mubr.f32.mxu0 %v5888_v43 }
 0x43f   : > { %3175 = vmatprep.mubr.f32.mxu1 %v5888_v43 }
 0x441   : > { %3063 = vmatmul.mubr.f32.gmra.mxu0 %v2912_v40 }
 0x442   : > { %3176 = vmatmul.mubr.f32.gmra.mxu1 %v2912_v40  ;;  %3068 = vmatprep.mubr.f32.mxu0 %v5888_v43  ;;  %v5652_v40 = vpop.permute.xlu0 %2954 }
 0x443   : > { %3181 = vmatprep.mubr.f32.mxu1 %v5888_v43 }
 0x445   : > { %3069 = vmatmul.mubr.f32.gmra.mxu0 %v2913_v62 }
 0x446   : > { %3182 = vmatmul.mubr.f32.gmra.mxu1 %v2913_v62 }
 0x4e9   : > { %v3028_v52 = vpop.f32.mrf.mxu0 }
 0x4ea   : > { %v3141_v53 = vpop.f32.mrf.mxu1  ;;  %v3029_v47 = vadd.f32 %v3028_v52, %v2925_v46 }
 0x4eb   : > { %v3142_v61 = vadd.f32 %v3141_v53, %v2925_v46  ;;  %v3030_v12 = vpop.f32.mrf.mxu0 }
 0x4ec   : > { %v3143_v0 = vpop.f32.mrf.mxu1  ;;  %v3031_v24 = vadd.f32 %v3030_v12, %v2925_v46  ;;  %v3188_v13 = vmax.f32 %v3029_v47, 0.0 }
 0x4ed   : > { %v3144_v2 = vadd.f32 %v3143_v0, %v2925_v46  ;;  %v3034_v37 = vpop.f32.mrf.mxu0  ;;  %v3190_v56 = vmax.f32 %v3142_v61, 0.0 }
 0x4ee   : > { %v3147_v26 = vpop.f32.mrf.mxu1  ;;  %v3035_v60 = vadd.f32 %v3034_v37, %v2930_v48  ;;  %v3189_v63 = vmax.f32 %v3031_v24, 0.0  ;;  %v3268_v58 = vmul.f32 %v3231_v59, %v3188_v13 }
 0x4ef   : > { %v3148_v31 = vadd.f32 %v3147_v26, %v2930_v48  ;;  %v3036_v23 = vpop.f32.mrf.mxu0  ;;  %v3191_v29 = vmax.f32 %v3144_v2, 0.0  ;;  %v3270_v6 = vmul.f32 %v3231_v59, %v3190_v56 }
 0x4f0   : > { %v3149_v36 = vpop.f32.mrf.mxu1  ;;  %v3037_v22 = vadd.f32 %v3036_v23, %v2930_v48  ;;  %v3192_v54 = vmax.f32 %v3035_v60, 0.0  ;;  %v3269_v3 = vmul.f32 %v3231_v59, %v3189_v63  ;;  %v3251_v23 = vpop.permute.xlu1 %3250 }
 0x4f1   : > { %v3150_v42 = vadd.f32 %v3149_v36, %v2930_v48  ;;  %v3194_v50 = vmax.f32 %v3148_v31, 0.0  ;;  %v3040_v28 = vpop.f32.mrf.mxu0  ;;  %v3271_v8 = vmul.f32 %v3231_v59, %v3191_v29 }
 0x4f2   : > { %v3153_v51 = vpop.f32.mrf.mxu1  ;;  %v3193_v18 = vmax.f32 %v3037_v22, 0.0  ;;  %v3041_v10 = vadd.f32 %v3040_v28, %v2935_v7  ;;  %v3272_v9 = vmul.f32 %v3236_v21, %v3192_v54 }
 0x4f3   : > { %v3195_v45 = vmax.f32 %v3150_v42, 0.0  ;;  %v3154_v57 = vadd.f32 %v3153_v51, %v2935_v7  ;;  %v3042_v27 = vpop.f32.mrf.mxu0  ;;  %v3274_v49 = vmul.f32 %v3236_v21, %v3194_v50  ;;  %v2960_v51 = vpop.permute.xlu0 %2959 }
 0x4f4   : > { %v3155_v34 = vpop.f32.mrf.mxu1  ;;  %v3196_v4 = vmax.f32 %v3041_v10, 0.0  ;;  %v3043_v19 = vadd.f32 %v3042_v27, %v2935_v7  ;;  %v3273_v39 = vmul.f32 %v3236_v21, %v3193_v18  ;;  %v3300_v62 = vadd.f32 %v3272_v9, %v3268_v58 }
 0x4f5   : > { %v3198_v17 = vmax.f32 %v3154_v57, 0.0  ;;  %v3156_v35 = vadd.f32 %v3155_v34, %v2935_v7  ;;  %v3046_v55 = vpop.f32.mrf.mxu0  ;;  %v3275_v41 = vmul.f32 %v3236_v21, %v3195_v45  ;;  %v3326_v46 = vadd.f32 %v3274_v49, %v3270_v6 }
 0x4f6   : > { %v3159_v16 = vpop.f32.mrf.mxu1  ;;  %v3276_v5 = vmul.f32 %v3241_v30, %v3196_v4  ;;  %v3197_v43 = vmax.f32 %v3043_v19, 0.0  ;;  %v3047_v25 = vadd.f32 %v3046_v55, %v5644_v11  ;;  %v3313_v37 = vadd.f32 %v3273_v39, %v3269_v3  ;;  %v3256_v39 = vpop.permute.xlu1 %3255 }
 0x4f7   : > { %v3278_v1 = vmul.f32 %v3241_v30, %v3198_v17  ;;  %v3199_v33 = vmax.f32 %v3156_v35, 0.0  ;;  %v3160_v20 = vadd.f32 %v3159_v16, %v5644_v11  ;;  %v3048_v38 = vpop.f32.mrf.mxu0  ;;  %v3339_v26 = vadd.f32 %v3275_v41, %v3271_v8 }
 0x4f8   : > { %v3161_v14 = vpop.f32.mrf.mxu1  ;;  %v3049_v48 = vadd.f32 %v3048_v38, %v5644_v11  ;;  %v3277_v59 = vmul.f32 %v3241_v30, %v3197_v43  ;;  %v3200_v53 = vmax.f32 %v3047_v25, 0.0  ;;  %v3301_v13 = vadd.f32 %v3300_v62, %v3276_v5 }
 0x4f9   : > { %v3162_v7 = vadd.f32 %v3161_v14, %v5644_v11  ;;  %v3279_v52 = vmul.f32 %v3241_v30, %v3199_v33  ;;  %v3202_v21 = vmax.f32 %v3160_v20, 0.0  ;;  %v3052_v47 = vpop.f32.mrf.mxu0  ;;  %v3327_v56 = vadd.f32 %v3326_v46, %v3278_v1 }
 0x4fa   : > { %v3165_v61 = vpop.f32.mrf.mxu1  ;;  %v3201_v12 = vmax.f32 %v3049_v48, 0.0  ;;  %v3053_v24 = vadd.f32 %v3052_v47, %v5646_v44  ;;  %v3280_v11 = vmul.f32 %v3246_v15, %v3200_v53  ;;  %v3314_v42 = vadd.f32 %v3313_v37, %v3277_v59 }
 0x4fb   : > { %v3203_v0 = vmax.f32 %v3162_v7, 0.0  ;;  %v3166_v2 = vadd.f32 %v3165_v61, %v5646_v44  ;;  %v3054_v60 = vpop.f32.mrf.mxu0  ;;  %v3282_v36 = vmul.f32 %v3246_v15, %v3202_v21  ;;  %v3340_v63 = vadd.f32 %v3339_v26, %v3279_v52 }
 0x4fc   : > { %v3167_v31 = vpop.f32.mrf.mxu1  ;;  %v3204_v30 = vmax.f32 %v3053_v24, 0.0  ;;  %v3055_v29 = vadd.f32 %v3054_v60, %v5646_v44  ;;  %v3281_v18 = vmul.f32 %v3246_v15, %v3201_v12  ;;  %v3302_v4 = vadd.f32 %v3301_v13, %v3280_v11 }
 0x4fd   : > { %v3206_v22 = vmax.f32 %v3166_v2, 0.0  ;;  %v3168_v54 = vadd.f32 %v3167_v31, %v5646_v44  ;;  %v3058_v50 = vpop.f32.mrf.mxu0  ;;  %v3283_v45 = vmul.f32 %v3246_v15, %v3203_v0  ;;  %v3328_v17 = vadd.f32 %v3327_v56, %v3282_v36 }
 0x4fe   : > { %v3171_v28 = vpop.f32.mrf.mxu1  ;;  %v3284_v10 = vmul.f32 %v3251_v23, %v3204_v30  ;;  %v3205_v58 = vmax.f32 %v3055_v29, 0.0  ;;  %v3059_v27 = vadd.f32 %v3058_v50, %v5648_v32  ;;  %v3315_v33 = vadd.f32 %v3314_v42, %v3281_v18 }
 0x4ff   : > { %v3286_v57 = vmul.f32 %v3251_v23, %v3206_v22  ;;  %v3207_v6 = vmax.f32 %v3168_v54, 0.0  ;;  %v3172_v34 = vadd.f32 %v3171_v28, %v5648_v32  ;;  %v3060_v9 = vpop.f32.mrf.mxu0  ;;  %v3341_v25 = vadd.f32 %v3340_v63, %v3283_v45  ;;  %v3266_v54 = vpop.permute.xlu1 %3265 }
 0x500   : > { %v3173_v49 = vpop.f32.mrf.mxu1  ;;  %v3061_v3 = vadd.f32 %v3060_v9, %v5648_v32  ;;  %v3285_v8 = vmul.f32 %v3251_v23, %v3205_v58  ;;  %v3208_v35 = vmax.f32 %v3059_v27, 0.0  ;;  %v3303_v20 = vadd.f32 %v3302_v4, %v3284_v10 }
 0x501   : > { %v3174_v44 = vadd.f32 %v3173_v49, %v5648_v32  ;;  %v3287_v19 = vmul.f32 %v3251_v23, %v3207_v6  ;;  %v3210_v55 = vmax.f32 %v3172_v34, 0.0  ;;  %v3064_v16 = vpop.f32.mrf.mxu0  ;;  %v3329_v38 = vadd.f32 %v3328_v17, %v3286_v57  ;;  %v3261_v32 = vpop.permute.xlu0 %3260 }
 0x502   : > { %v3177_v15 = vpop.f32.mrf.mxu1  ;;  %v3209_v41 = vmax.f32 %v3061_v3, 0.0  ;;  %v3065_v1 = vadd.f32 %v3064_v16, %v5652_v40  ;;  %v3288_v46 = vmul.f32 %v3256_v39, %v3208_v35  ;;  %v3316_v52 = vadd.f32 %v3315_v33, %v3285_v8 }
 0x503   : > { %v3211_v5 = vmax.f32 %v3174_v44, 0.0  ;;  %v3178_v43 = vadd.f32 %v3177_v15, %v5652_v40  ;;  %v3066_v14 = vpop.f32.mrf.mxu0  ;;  %v3290_v48 = vmul.f32 %v3256_v39, %v3210_v55  ;;  %v3342_v53 = vadd.f32 %v3341_v25, %v3287_v19 }
 0x504   : > { %v3179_v62 = vpop.f32.mrf.mxu1  ;;  %v3212_v7 = vmax.f32 %v3065_v1, 0.0  ;;  %v3067_v21 = vadd.f32 %v3066_v14, %v5652_v40  ;;  %v3289_v0 = vmul.f32 %v3256_v39, %v3209_v41  ;;  %v3304_v11 = vadd.f32 %v3303_v20, %v3288_v46 }
 0x505   : > { %v3214_v59 = vmax.f32 %v3178_v43, 0.0  ;;  %v3180_v47 = vadd.f32 %v3179_v62, %v5652_v40  ;;  %v3070_v61 = vpop.f32.mrf.mxu0  ;;  %v3291_v24 = vmul.f32 %v3256_v39, %v3211_v5  ;;  %v3330_v36 = vadd.f32 %v3329_v38, %v3290_v48  ;;  %v3356_v46 = vpop.permute.xlu0 %3355 }
 0x506   : > { %v3183_v12 = vpop.f32.mrf.mxu1  ;;  %v3292_v2 = vmul.f32 %v3261_v32, %v3212_v7  ;;  %v3213_v26 = vmax.f32 %v3067_v21, 0.0  ;;  %v3071_v56 = vadd.f32 %v3070_v61, %v2960_v51  ;;  %v3317_v50 = vadd.f32 %v3316_v52, %v3289_v0 }
 0x507   : > { %v3294_v37 = vmul.f32 %v3261_v32, %v3214_v59  ;;  %v3215_v13 = vmax.f32 %v3180_v47, 0.0  ;;  %v3184_v60 = vadd.f32 %v3183_v12, %v2960_v51  ;;  %v3072_v31 = vpop.f32.mrf.mxu0  ;;  %v3343_v28 = vadd.f32 %v3342_v53, %v3291_v24 }
 0x508   : > { %v3185_v23 = vpop.f32.mrf.mxu1  ;;  %v3073_v30 = vadd.f32 %v3072_v31, %v2960_v51  ;;  %v3293_v42 = vmul.f32 %v3261_v32, %v3213_v26  ;;  %v3216_v29 = vmax.f32 %v3071_v56, 0.0  ;;  %v3305_v10 = vadd.f32 %v3304_v11, %v3292_v2  ;;  %v5889_v31 = vld [vmem:[#allocation20_spill] sm:$0xff]  ;;  %v5890_v11 = vld [vmem:[#allocation21_spill] sm:$0xff] }
 0x509   : > { %v3186_v22 = vadd.f32 %v3185_v23, %v2960_v51  ;;  %v3295_v63 = vmul.f32 %v3261_v32, %v3215_v13  ;;  %v3218_v40 = vmax.f32 %v3184_v60, 0.0  ;;  %v3331_v57 = vadd.f32 %v3330_v36, %v3294_v37 }
 0x50a   : > { %v3217_v18 = vmax.f32 %v3073_v30, 0.0  ;;  %v3296_v58 = vmul.f32 %v3266_v54, %v3216_v29  ;;  %v3318_v27 = vadd.f32 %v3317_v50, %v3293_v42  ;;  %v3358_v4 = vlaneseq  ;;  %v5891_v30 = vld [vmem:[#allocation19_spill] sm:$0xff]  ;;  %v5892_v42 = vld [vmem:[#allocation18_spill] sm:$0xff] }
 0x50b   : > { %v3219_v45 = vmax.f32 %v3186_v22, 0.0  ;;  %v3298_v6 = vmul.f32 %v3266_v54, %v3218_v40  ;;  %v3344_v34 = vadd.f32 %v3343_v28, %v3295_v63  ;;  %v3961_v38 = vmov 1983009808  }
 0x50c   : > { %v3297_v9 = vmul.f32 %v3266_v54, %v3217_v18  ;;  %v3306_v17 = vadd.f32 %v3305_v10, %v3296_v58  ;;  %v3359_v16 = vshrl.u32 %v3358_v4, 7  ;;  %v3378_v14 = vunpack.c.l.s4 %v3961_v38 }
 0x50d   : > { %v3299_v49 = vmul.f32 %v3266_v54, %v3219_v45  ;;  %v3332_v51 = vadd.f32 %v3331_v57, %v3298_v6 }
 0x50e   : > { %v3319_v3 = vadd.f32 %v3318_v27, %v3297_v9  ;;  %v3307_v8 = vrot.slane %v3306_v17, 4  ;;  %v3360_v20 = vsub.s32 0, %v3359_v16  ;;  %v3379_v47 = vunpack.c.0.s8 %v3378_v14 }
 0x50f   : > { %v3345_v44 = vadd.f32 %v3344_v34, %v3299_v49  ;;  %v3333_v19 = vrot.slane %v3332_v51, 4 }
 0x510   : > { %v3320_v35 = vrot.slane %v3319_v3, 4  ;;  %v3308_v15 = vadd.f32 %v3307_v8, %v3306_v17  ;;  %v3361_v61 = vrot.slane %v3356_v46, %v3360_v20  ;;  %v3382_v60 = vsub.s32 %v3379_v47, %v3359_v16 }
 0x511   : > { %v3346_v55 = vrot.slane %v3345_v44, 4  ;;  %v3334_v39 = vadd.f32 %v3333_v19, %v3332_v51 }
 0x512   : > { %v3321_v41 = vadd.f32 %v3320_v35, %v3319_v3  ;;  %v3309_v1 = vrot.slane %v3308_v15, 2 }
 0x513   : > { %v3347_v5 = vadd.f32 %v3346_v55, %v3345_v44  ;;  %v3335_v43 = vrot.slane %v3334_v39, 2 }
 0x514   : > { %v3322_v33 = vrot.slane %v3321_v41, 2  ;;  %v3310_v62 = vadd.f32 %v3309_v1, %v3308_v15 }
 0x515   : > { %v3348_v25 = vrot.slane %v3347_v5, 2  ;;  %v3336_v32 = vadd.f32 %v3335_v43, %v3334_v39 }
 0x516   : > { %v3323_v48 = vadd.f32 %v3322_v33, %v3321_v41  ;;  %v3311_v59 = vrot.slane %v3310_v62, 1 }
 0x517   : > { %v3349_v7 = vadd.f32 %v3348_v25, %v3347_v5  ;;  %v3337_v52 = vrot.slane %v3336_v32, 1 }
 0x518   : > { %v3324_v53 = vrot.slane %v3323_v48, 1  ;;  %v3312_v12 = vadd.f32 %v3311_v59, %v3310_v62 }
 0x519   : > { %v3350_v21 = vrot.slane %v3349_v7, 1  ;;  %v3338_v0 = vadd.f32 %v3337_v52, %v3336_v32 }
 0x51a   : > { %v3325_v24 = vadd.f32 %v3324_v53, %v3323_v48  ;;  %v3362_v37 = vadd.f32 %v3361_v61, %v3312_v12 }
 0x51b   : > { %v3351_v2 = vadd.f32 %v3350_v21, %v3349_v7  ;;  %v3364_v26 = vadd.f32 %v3361_v61, %v3338_v0 }
 0x51c   : > { %v3363_v13 = vadd.f32 %v3361_v61, %v3325_v24  ;;  %v3367_v23 = vsel %vm3366_vm2, %v3362_v37, %v5889_v31 }
 0x51d   : > { %v3365_v56 = vadd.f32 %v3361_v61, %v3351_v2  ;;  %v3369_v22 = vsel %vm3366_vm2, %v3364_v26, %v5891_v30 }
 0x51e   : > { %v3368_v36 = vsel %vm3366_vm2, %v3363_v13, %v5890_v11 }
 0x51f   : > { %v3370_v63 = vsel %vm3366_vm2, %v3365_v56, %v5892_v42  ;;  %v3375_v29 = vcombine.low %v3367_v23, %v3368_v36 }
 0x520   : > { %v3376_v40 = vcombine.low %v3369_v22, %v3370_v63 }
 0x521   : > { %v3383_v54 = vrot.slane %v3375_v29, %v3382_v60 }
 0x522   : > { %v3390_v50 = vrot.slane %v3376_v40, %v3382_v60 }
 0x524   : > { %v3391_v28 = vcombine.low %v3383_v54, %v3390_v50 }
 0x526   : > { %3393 = vst [vmem:[%s382_s13] sm:$0xff] %v3391_v28 }
 0x527   : > { %3910 = shalt.err (!%p3907_p3)
}
 0x528   : > { %s3911_s16 = scalar_lea.hbm %s3407_s30, 128  ;;  %s3915_s13 = scalar_lea.hbm %s5721_s11, 256 }
 0x529   : > { %p3912_p4 = scmp.ne.s32.totalorder %s3407_s30, %s3911_s16  ;;  %p3916_p9 = scmp.lt.s32.totalorder %s3407_s30, %s5721_s11 }
 0x52a   : > { %p3917_p10 = scmp.lt.s32.totalorder %s3915_s13, %s3911_s16 }
 0x52b   : > { %p3913_p7 = pnand %p3912_p4, %p4064_p5 }
 0x52c   : > { %p3918_p11 = por %p3917_p10, %p3916_p9 }
 0x52d   : > { %p3914_p8 = pneg %p3913_p7 }
 0x52f   : > { %p3919_p12 = pnand %p3918_p11, %p3914_p8 }
 0x531   : > { %3922 = shalt.err (!%p3919_p12)
}
 0x532   : > { %3837 = dma.vmem_to_hbm [thread:$0]  (%p4064_p5), %s3410_s14, 128, %s3407_s30, %s3395_s18  }
 0x533 PF: > { %p3843_p13 = scmp.ge.s32.totalorder %s3957_s22, 2  ;;  %s3421_s23 = sand.u32 1, %s3945_s19  }
 0x534   : > { %s3422_s25 = scalar_lea.sflag [#allocation4], %s3421_s23 }
 0x535   : > { %p3840_p0 = pnand %p3843_p13, %p4068_p6 }
 0x537   : > { %p3841_p1 = pneg %p3840_p0 }
 0x539   : > { %3940 = dma.done.wait (%p3841_p1), %s3422_s25, 128  }
 0x53a   : > { %3942 = vsyncadd (%p3841_p1), %s3422_s25, 4294967168  ;;  %p23_p2 = scmp.ge.s32.totalorder %s4051_s24, 4   ;;  %s5893_s19 = smov %s3949_s20 }
 0x53b   : > { %s5894_s20 = smov %s3953_s21  ;;  %s5895_s21 = smov %s4062_s27 }
 0x53c   : > { %s5896_s22 = smov %s4051_s24  ;;  %25 = sbr.rel (!%p23_p2) target bundleno = 6 (0x6), region = 99 }
 0x541   :  { %3427 = vsyncpa [#allocation4], 1 }
 0x542   :  { %3429 = vsyncpa [#allocation4 + $0x1], 1 }

</bundles_post_ra>
